<compile_context>
chip_gen: v7x
topology: tpu7x:2x2x1
jax: 0.10.0
libtpu: 0.0.40
codegen_flags: <defaults>
</compile_context>

<pallas_src>
import functools

import jax
import jax.numpy as jnp
import numpy as np
from jax.experimental import pallas as pl
from jax.experimental.pallas import tpu as pltpu

# Hyperparameters fixed by CNN.__init__
KERNEL_COUNT = 100      # conv out channels
REVIEW_COUNT = 10
KERNEL_SIZE = 3
REVIEW_LENGTH = 40
CNN_OUT_DIM = 50

# Lane-dense padded sizes (kept at 128 — the kernel is HBM-bound; padding
# further toward the 256-wide MXU would only add bytes for zero useful FLOPs).
COUT_PAD = 128          # conv out channels padded 100 -> 128
OUT_PAD = 128           # linear out padded 50 -> 128


def _round_up(x, m):
    return (x + m - 1) // m * m


def fused_cnn_kernel(x_ref, cw_ref, cb_ref, lw_ref, lb_ref, o_ref):
    """TU users (TU * REVIEW_COUNT stacked reviews) per grid step, fully fused.

    x_ref : (TU*R*L, Kc)            bf16 im2col'd reviews (Kc = K * word_dim)
    cw_ref: (Kc, COUT_PAD)          bf16 folded conv taps (zero-padded cols)
    cb_ref: (1, COUT_PAD)           f32 conv bias (zero in padded lanes)
    lw_ref: (R, COUT_PAD, OUT_PAD)  bf16 linear weight (zero-padded rows/cols)
    lb_ref: (1, OUT_PAD)            f32 linear bias
    o_ref : (TU, OUT_PAD)           f32 per-user output rows (lane/sublane dense)
    """
    tu = o_ref.shape[0]
    rl = REVIEW_COUNT * REVIEW_LENGTH

    # Conv1d(k=3) for all TU*R reviews as ONE MXU matmul (the im2col folds the
    # K taps and the zero padding): (TU*400, Kc) @ (Kc, 128) -> f32.
    conv = jnp.dot(x_ref[...], cw_ref[...], preferred_element_type=jnp.float32)
    conv = jnp.maximum(conv + cb_ref[...], 0.0)            # bias + ReLU (f32)
    conv = conv.reshape(tu, rl, COUT_PAD)                  # tile-aligned split

    # Per-review max-pool over review_length, immediately consumed by the
    # Linear(1000 -> 50): ten (TU,128)@(128,128) partials accumulated in f32
    # (avoids any sublane->lane reshape of the pooled features in-kernel).
    acc = jnp.zeros((tu, OUT_PAD), jnp.float32)
    for r in range(REVIEW_COUNT):                          # static unroll (10)
        blk = conv[:, r * REVIEW_LENGTH:(r + 1) * REVIEW_LENGTH, :]   # (TU,40,128)
        pooled = jnp.max(blk, axis=1)                                 # (TU,128)
        acc = acc + jnp.dot(pooled.astype(jnp.bfloat16), lw_ref[r],
                            preferred_element_type=jnp.float32)
    o_ref[...] = jnp.maximum(acc + lb_ref[...], 0.0)       # final ReLU


@functools.partial(jax.jit, static_argnames=("users_per_step",))
def cnn_forward(vec, conv_w, conv_b, lin_w, lin_b, *, users_per_step=32):
    """Fused CNN forward pass.

    vec   : (N, review_length, word_dim) f32, N % review_count == 0
    conv_w: (kernel_count, word_dim, kernel_size)      PyTorch Conv1d layout
    conv_b: (kernel_count,)
    lin_w : (cnn_out_dim, kernel_count * review_count) PyTorch Linear layout
    lin_b : (cnn_out_dim,)
    returns (N // review_count, cnn_out_dim) f32
    """
    N, L, Cin = vec.shape
    assert L == REVIEW_LENGTH and N % REVIEW_COUNT == 0
    B = N // REVIEW_COUNT
    pad = (KERNEL_SIZE - 1) // 2
    Kc = KERNEL_SIZE * Cin

    # Users per grid step: multiple of 8 (sublane-dense output blocks), clamped
    # so tiny batches still yield a valid single-step grid.
    tu = max(8, min(_round_up(users_per_step, 8), _round_up(B, 8)))
    b_pad = _round_up(B, tu)

    # im2col of the zero-padded reviews in bf16 (folds Conv1d padding + K taps
    # into one contraction). Last dim stays Kc: no 96->128 zero-pad in HBM.
    xb = vec.astype(jnp.bfloat16)
    xp = jnp.pad(xb, ((0, 0), (pad, pad), (0, 0)))
    cols = jnp.concatenate([xp[:, k:k + L, :] for k in range(KERNEL_SIZE)], axis=-1)
    x = cols.reshape(N * L, Kc)
    if b_pad != B:
        x = jnp.pad(x, ((0, (b_pad - B) * REVIEW_COUNT * L), (0, 0)))

    # Conv weight (out, in, k) -> folded (k*in, out) matching the im2col lane
    # order (lane = k*Cin + c), zero-padded to 128 output lanes.
    cw = jnp.transpose(conv_w, (2, 1, 0)).reshape(Kc, KERNEL_COUNT)
    cw = jnp.pad(cw, ((0, 0), (0, COUT_PAD - KERNEL_COUNT))).astype(jnp.bfloat16)
    cb = jnp.pad(conv_b.reshape(1, KERNEL_COUNT),
                 ((0, 0), (0, COUT_PAD - KERNEL_COUNT))).astype(jnp.float32)

    # Linear weight (out, in) with in-index = r*100 + c -> (R, 128, 128).
    lw = jnp.transpose(lin_w, (1, 0)).reshape(REVIEW_COUNT, KERNEL_COUNT, CNN_OUT_DIM)
    lw = jnp.pad(lw, ((0, 0), (0, COUT_PAD - KERNEL_COUNT),
                      (0, OUT_PAD - CNN_OUT_DIM))).astype(jnp.bfloat16)
    lb = jnp.pad(lin_b.reshape(1, CNN_OUT_DIM),
                 ((0, 0), (0, OUT_PAD - CNN_OUT_DIM))).astype(jnp.float32)

    rows_per_step = tu * REVIEW_COUNT * L
    out = pl.pallas_call(
        fused_cnn_kernel,
        out_shape=jax.ShapeDtypeStruct((b_pad, OUT_PAD), jnp.float32),
        grid=(b_pad // tu,),
        in_specs=[
            pl.BlockSpec((rows_per_step, Kc), lambda i: (i, 0)),
            pl.BlockSpec((Kc, COUT_PAD), lambda i: (0, 0)),            # VMEM-resident
            pl.BlockSpec((1, COUT_PAD), lambda i: (0, 0)),
            pl.BlockSpec((REVIEW_COUNT, COUT_PAD, OUT_PAD), lambda i: (0, 0, 0)),
            pl.BlockSpec((1, OUT_PAD), lambda i: (0, 0)),
        ],
        out_specs=pl.BlockSpec((tu, OUT_PAD), lambda i: (i, 0)),
        compiler_params=pltpu.CompilerParams(
            dimension_semantics=("parallel",),
            vmem_limit_bytes=48 * 1024 * 1024,
        ),
    )(x, cw, cb, lw, lb)

    return out[:B, :CNN_OUT_DIM]


def ref_forward(vec, conv_w, conv_b, lin_w, lin_b, mm_dtype=jnp.float32):
    """Pure-JAX reference of the forward pass (dropout = identity at eval).
    mm_dtype=bfloat16 mirrors the kernel's MXU operand dtype for a tight check."""
    pad = (KERNEL_SIZE - 1) // 2
    xp = jnp.pad(vec, ((0, 0), (pad, pad), (0, 0))).astype(mm_dtype)
    conv = sum(
        jnp.einsum("nlc,oc->nlo", xp[:, k:k + REVIEW_LENGTH, :],
                   conv_w[:, :, k].astype(mm_dtype),
                   preferred_element_type=jnp.float32)
        for k in range(KERNEL_SIZE))
    conv = jnp.maximum(conv + conv_b.reshape(1, 1, KERNEL_COUNT), 0.0)
    pooled = jnp.max(conv, axis=1)                                   # (N, 100)
    flat = pooled.reshape(-1, REVIEW_COUNT * KERNEL_COUNT)           # (B, 1000)
    out = jnp.dot(flat.astype(mm_dtype), lin_w.T.astype(mm_dtype),
                  preferred_element_type=jnp.float32) + lin_b.reshape(1, CNN_OUT_DIM)
    return jnp.maximum(out, 0.0)


if __name__ == "__main__":
    word_dim = 32
    key = jax.random.PRNGKey(0)
    k1, k2, k3, k4, k5 = jax.random.split(key, 5)

    # Parameters in PyTorch layouts (Conv1d: (out, in, k); Linear: (out, in)).
    conv_w = 0.10 * jax.random.normal(k2, (KERNEL_COUNT, word_dim, KERNEL_SIZE), jnp.float32)
    conv_b = 0.10 * jax.random.normal(k3, (KERNEL_COUNT,), jnp.float32)
    lin_w = 0.05 * jax.random.normal(k4, (CNN_OUT_DIM, KERNEL_COUNT * REVIEW_COUNT), jnp.float32)
    lin_b = 0.05 * jax.random.normal(k5, (CNN_OUT_DIM,), jnp.float32)

    # Case 1: modest batch exercising multiple grid steps + user padding
    # (B=20 users, TU=8 -> padded to 24 users -> grid of 3 steps).
    batch_users = 20
    N = batch_users * REVIEW_COUNT
    vec = jax.random.normal(k1, (N, REVIEW_LENGTH, word_dim), jnp.float32)

    out = jax.block_until_ready(
        cnn_forward(vec, conv_w, conv_b, lin_w, lin_b, users_per_step=8))
    assert out.shape == (batch_users, CNN_OUT_DIM), out.shape

    # Tight check vs a reference that mirrors the kernel's bf16 MXU operands.
    ref_bf16 = jax.block_until_ready(
        ref_forward(vec, conv_w, conv_b, lin_w, lin_b, mm_dtype=jnp.bfloat16))
    np.testing.assert_allclose(np.asarray(out), np.asarray(ref_bf16), rtol=2e-2, atol=2e-2)

    # Loose check vs the exact f32 PyTorch-semantics reference (absorbs bf16 drift).
    ref_f32 = jax.block_until_ready(
        ref_forward(vec, conv_w, conv_b, lin_w, lin_b, mm_dtype=jnp.float32))
    np.testing.assert_allclose(np.asarray(out), np.asarray(ref_f32), rtol=1e-1, atol=1e-1)

    # Case 2: tiny batch (2 users) exercising the TU clamp (single-step grid).
    vec2 = jax.random.normal(jax.random.PRNGKey(1),
                             (2 * REVIEW_COUNT, REVIEW_LENGTH, word_dim), jnp.float32)
    out2 = jax.block_until_ready(cnn_forward(vec2, conv_w, conv_b, lin_w, lin_b))
    assert out2.shape == (2, CNN_OUT_DIM), out2.shape
    ref2 = jax.block_until_ready(
        ref_forward(vec2, conv_w, conv_b, lin_w, lin_b, mm_dtype=jnp.float32))
    np.testing.assert_allclose(np.asarray(out2), np.asarray(ref2), rtol=1e-1, atol=1e-1)

    print("KERNEL_OK")
</pallas_src>

<mosaic_0001>
module attributes {stable_mosaic.version = 11 : i64} {
  func.func @fused_cnn_kernel(%arg0: i32, %arg1: memref<3200x96xbf16, #tpu.memory_space<vmem>>, %arg2: memref<96x128xbf16, #tpu.memory_space<vmem>>, %arg3: memref<1x128xf32, #tpu.memory_space<vmem>>, %arg4: memref<10x128x128xbf16, #tpu.memory_space<vmem>>, %arg5: memref<1x128xf32, #tpu.memory_space<vmem>>, %arg6: memref<8x128xf32, #tpu.memory_space<vmem>>) attributes {dimension_semantics = [#tpu.dimension_semantics<parallel>], iteration_bounds = array<i64: 3>, scalar_prefetch = 0 : i64, scratch_operands = 0 : i64, tpu.core_type = #tpu.core_type<tc>, window_params = [{transform_indices = @transform_0, window_bounds = array<i64: 3200, 96>}, {pipeline_mode = #tpu.pipeline_mode<synchronous>, transform_indices = @transform_1, window_bounds = array<i64: 96, 128>}, {pipeline_mode = #tpu.pipeline_mode<synchronous>, transform_indices = @transform_2, window_bounds = array<i64: 1, 128>}, {pipeline_mode = #tpu.pipeline_mode<synchronous>, transform_indices = @transform_3, window_bounds = array<i64: 10, 128, 128>}, {pipeline_mode = #tpu.pipeline_mode<synchronous>, transform_indices = @transform_4, window_bounds = array<i64: 1, 128>}, {transform_indices = @transform_5, window_bounds = array<i64: 8, 128>}]} {
    %c0 = arith.constant 0 : index
    %c0_0 = arith.constant 0 : index
    %0 = vector.load %arg1[%c0, %c0_0] : memref<3200x96xbf16, #tpu.memory_space<vmem>>, vector<3200x96xbf16>
    %c0_1 = arith.constant 0 : index
    %c0_2 = arith.constant 0 : index
    %1 = vector.load %arg2[%c0_1, %c0_2] : memref<96x128xbf16, #tpu.memory_space<vmem>>, vector<96x128xbf16>
    %cst = arith.constant dense<0.000000e+00> : vector<3200x128xf32>
    %2 = tpu.matmul %0, %1, %cst {dimension_numbers = #tpu.dot_dimension_numbers<[1], [0], [0], [1], [0, 0, 1, 1], [], []>} : vector<3200x96xbf16>, vector<96x128xbf16>, vector<3200x128xf32> -> vector<3200x128xf32>
    %c0_3 = arith.constant 0 : index
    %c0_4 = arith.constant 0 : index
    %3 = vector.load %arg3[%c0_3, %c0_4] : memref<1x128xf32, #tpu.memory_space<vmem>>, vector<1x128xf32>
    %4 = vector.broadcast %3 : vector<1x128xf32> to vector<3200x128xf32>
    %5 = arith.addf %2, %4 : vector<3200x128xf32>
    %cst_5 = arith.constant 0.000000e+00 : f32
    %6 = vector.broadcast %cst_5 : f32 to vector<3200x128xf32>
    %7 = arith.maximumf %5, %6 : vector<3200x128xf32>
    %8 = vector.shape_cast %7 : vector<3200x128xf32> to vector<8x400x128xf32>
    %cst_6 = arith.constant 0.000000e+00 : f32
    %9 = vector.broadcast %cst_6 : f32 to vector<8x128xf32>
    %10 = vector.extract_strided_slice %8 {offsets = [0, 0, 0], sizes = [8, 40, 128], strides = [1, 1, 1]} : vector<8x400x128xf32> to vector<8x40x128xf32>
    %cst_7 = arith.constant dense<0xFF800000> : vector<8x128xf32>
    %11 = vector.multi_reduction <maximumf>, %10, %cst_7 [1] : vector<8x40x128xf32> to vector<8x128xf32>
    %12 = arith.truncf %11 : vector<8x128xf32> to vector<8x128xbf16>
    %c0_8 = arith.constant 0 : index
    %c0_9 = arith.constant 0 : index
    %c0_10 = arith.constant 0 : index
    %13 = vector.load %arg4[%c0_8, %c0_9, %c0_10] : memref<10x128x128xbf16, #tpu.memory_space<vmem>>, vector<1x128x128xbf16>
    %14 = vector.shape_cast %13 : vector<1x128x128xbf16> to vector<128x128xbf16>
    %cst_11 = arith.constant dense<0.000000e+00> : vector<8x128xf32>
    %15 = tpu.matmul %12, %14, %cst_11 {dimension_numbers = #tpu.dot_dimension_numbers<[1], [0], [0], [1], [0, 0, 1, 1], [], []>} : vector<8x128xbf16>, vector<128x128xbf16>, vector<8x128xf32> -> vector<8x128xf32>
    %16 = arith.addf %9, %15 : vector<8x128xf32>
    %17 = vector.extract_strided_slice %8 {offsets = [0, 40, 0], sizes = [8, 40, 128], strides = [1, 1, 1]} : vector<8x400x128xf32> to vector<8x40x128xf32>
    %cst_12 = arith.constant dense<0xFF800000> : vector<8x128xf32>
    %18 = vector.multi_reduction <maximumf>, %17, %cst_12 [1] : vector<8x40x128xf32> to vector<8x128xf32>
    %19 = arith.truncf %18 : vector<8x128xf32> to vector<8x128xbf16>
    %c1 = arith.constant 1 : index
    %c0_13 = arith.constant 0 : index
    %c0_14 = arith.constant 0 : index
    %20 = vector.load %arg4[%c1, %c0_13, %c0_14] : memref<10x128x128xbf16, #tpu.memory_space<vmem>>, vector<1x128x128xbf16>
    %21 = vector.shape_cast %20 : vector<1x128x128xbf16> to vector<128x128xbf16>
    %cst_15 = arith.constant dense<0.000000e+00> : vector<8x128xf32>
    %22 = tpu.matmul %19, %21, %cst_15 {dimension_numbers = #tpu.dot_dimension_numbers<[1], [0], [0], [1], [0, 0, 1, 1], [], []>} : vector<8x128xbf16>, vector<128x128xbf16>, vector<8x128xf32> -> vector<8x128xf32>
    %23 = arith.addf %16, %22 : vector<8x128xf32>
    %24 = vector.extract_strided_slice %8 {offsets = [0, 80, 0], sizes = [8, 40, 128], strides = [1, 1, 1]} : vector<8x400x128xf32> to vector<8x40x128xf32>
    %cst_16 = arith.constant dense<0xFF800000> : vector<8x128xf32>
    %25 = vector.multi_reduction <maximumf>, %24, %cst_16 [1] : vector<8x40x128xf32> to vector<8x128xf32>
    %26 = arith.truncf %25 : vector<8x128xf32> to vector<8x128xbf16>
    %c2 = arith.constant 2 : index
    %c0_17 = arith.constant 0 : index
    %c0_18 = arith.constant 0 : index
    %27 = vector.load %arg4[%c2, %c0_17, %c0_18] : memref<10x128x128xbf16, #tpu.memory_space<vmem>>, vector<1x128x128xbf16>
    %28 = vector.shape_cast %27 : vector<1x128x128xbf16> to vector<128x128xbf16>
    %cst_19 = arith.constant dense<0.000000e+00> : vector<8x128xf32>
    %29 = tpu.matmul %26, %28, %cst_19 {dimension_numbers = #tpu.dot_dimension_numbers<[1], [0], [0], [1], [0, 0, 1, 1], [], []>} : vector<8x128xbf16>, vector<128x128xbf16>, vector<8x128xf32> -> vector<8x128xf32>
    %30 = arith.addf %23, %29 : vector<8x128xf32>
    %31 = vector.extract_strided_slice %8 {offsets = [0, 120, 0], sizes = [8, 40, 128], strides = [1, 1, 1]} : vector<8x400x128xf32> to vector<8x40x128xf32>
    %cst_20 = arith.constant dense<0xFF800000> : vector<8x128xf32>
    %32 = vector.multi_reduction <maximumf>, %31, %cst_20 [1] : vector<8x40x128xf32> to vector<8x128xf32>
    %33 = arith.truncf %32 : vector<8x128xf32> to vector<8x128xbf16>
    %c3 = arith.constant 3 : index
    %c0_21 = arith.constant 0 : index
    %c0_22 = arith.constant 0 : index
    %34 = vector.load %arg4[%c3, %c0_21, %c0_22] : memref<10x128x128xbf16, #tpu.memory_space<vmem>>, vector<1x128x128xbf16>
    %35 = vector.shape_cast %34 : vector<1x128x128xbf16> to vector<128x128xbf16>
    %cst_23 = arith.constant dense<0.000000e+00> : vector<8x128xf32>
    %36 = tpu.matmul %33, %35, %cst_23 {dimension_numbers = #tpu.dot_dimension_numbers<[1], [0], [0], [1], [0, 0, 1, 1], [], []>} : vector<8x128xbf16>, vector<128x128xbf16>, vector<8x128xf32> -> vector<8x128xf32>
    %37 = arith.addf %30, %36 : vector<8x128xf32>
    %38 = vector.extract_strided_slice %8 {offsets = [0, 160, 0], sizes = [8, 40, 128], strides = [1, 1, 1]} : vector<8x400x128xf32> to vector<8x40x128xf32>
    %cst_24 = arith.constant dense<0xFF800000> : vector<8x128xf32>
    %39 = vector.multi_reduction <maximumf>, %38, %cst_24 [1] : vector<8x40x128xf32> to vector<8x128xf32>
    %40 = arith.truncf %39 : vector<8x128xf32> to vector<8x128xbf16>
    %c4 = arith.constant 4 : index
    %c0_25 = arith.constant 0 : index
    %c0_26 = arith.constant 0 : index
    %41 = vector.load %arg4[%c4, %c0_25, %c0_26] : memref<10x128x128xbf16, #tpu.memory_space<vmem>>, vector<1x128x128xbf16>
    %42 = vector.shape_cast %41 : vector<1x128x128xbf16> to vector<128x128xbf16>
    %cst_27 = arith.constant dense<0.000000e+00> : vector<8x128xf32>
    %43 = tpu.matmul %40, %42, %cst_27 {dimension_numbers = #tpu.dot_dimension_numbers<[1], [0], [0], [1], [0, 0, 1, 1], [], []>} : vector<8x128xbf16>, vector<128x128xbf16>, vector<8x128xf32> -> vector<8x128xf32>
    %44 = arith.addf %37, %43 : vector<8x128xf32>
    %45 = vector.extract_strided_slice %8 {offsets = [0, 200, 0], sizes = [8, 40, 128], strides = [1, 1, 1]} : vector<8x400x128xf32> to vector<8x40x128xf32>
    %cst_28 = arith.constant dense<0xFF800000> : vector<8x128xf32>
    %46 = vector.multi_reduction <maximumf>, %45, %cst_28 [1] : vector<8x40x128xf32> to vector<8x128xf32>
    %47 = arith.truncf %46 : vector<8x128xf32> to vector<8x128xbf16>
    %c5 = arith.constant 5 : index
    %c0_29 = arith.constant 0 : index
    %c0_30 = arith.constant 0 : index
    %48 = vector.load %arg4[%c5, %c0_29, %c0_30] : memref<10x128x128xbf16, #tpu.memory_space<vmem>>, vector<1x128x128xbf16>
    %49 = vector.shape_cast %48 : vector<1x128x128xbf16> to vector<128x128xbf16>
    %cst_31 = arith.constant dense<0.000000e+00> : vector<8x128xf32>
    %50 = tpu.matmul %47, %49, %cst_31 {dimension_numbers = #tpu.dot_dimension_numbers<[1], [0], [0], [1], [0, 0, 1, 1], [], []>} : vector<8x128xbf16>, vector<128x128xbf16>, vector<8x128xf32> -> vector<8x128xf32>
    %51 = arith.addf %44, %50 : vector<8x128xf32>
    %52 = vector.extract_strided_slice %8 {offsets = [0, 240, 0], sizes = [8, 40, 128], strides = [1, 1, 1]} : vector<8x400x128xf32> to vector<8x40x128xf32>
    %cst_32 = arith.constant dense<0xFF800000> : vector<8x128xf32>
    %53 = vector.multi_reduction <maximumf>, %52, %cst_32 [1] : vector<8x40x128xf32> to vector<8x128xf32>
    %54 = arith.truncf %53 : vector<8x128xf32> to vector<8x128xbf16>
    %c6 = arith.constant 6 : index
    %c0_33 = arith.constant 0 : index
    %c0_34 = arith.constant 0 : index
    %55 = vector.load %arg4[%c6, %c0_33, %c0_34] : memref<10x128x128xbf16, #tpu.memory_space<vmem>>, vector<1x128x128xbf16>
    %56 = vector.shape_cast %55 : vector<1x128x128xbf16> to vector<128x128xbf16>
    %cst_35 = arith.constant dense<0.000000e+00> : vector<8x128xf32>
    %57 = tpu.matmul %54, %56, %cst_35 {dimension_numbers = #tpu.dot_dimension_numbers<[1], [0], [0], [1], [0, 0, 1, 1], [], []>} : vector<8x128xbf16>, vector<128x128xbf16>, vector<8x128xf32> -> vector<8x128xf32>
    %58 = arith.addf %51, %57 : vector<8x128xf32>
    %59 = vector.extract_strided_slice %8 {offsets = [0, 280, 0], sizes = [8, 40, 128], strides = [1, 1, 1]} : vector<8x400x128xf32> to vector<8x40x128xf32>
    %cst_36 = arith.constant dense<0xFF800000> : vector<8x128xf32>
    %60 = vector.multi_reduction <maximumf>, %59, %cst_36 [1] : vector<8x40x128xf32> to vector<8x128xf32>
    %61 = arith.truncf %60 : vector<8x128xf32> to vector<8x128xbf16>
    %c7 = arith.constant 7 : index
    %c0_37 = arith.constant 0 : index
    %c0_38 = arith.constant 0 : index
    %62 = vector.load %arg4[%c7, %c0_37, %c0_38] : memref<10x128x128xbf16, #tpu.memory_space<vmem>>, vector<1x128x128xbf16>
    %63 = vector.shape_cast %62 : vector<1x128x128xbf16> to vector<128x128xbf16>
    %cst_39 = arith.constant dense<0.000000e+00> : vector<8x128xf32>
    %64 = tpu.matmul %61, %63, %cst_39 {dimension_numbers = #tpu.dot_dimension_numbers<[1], [0], [0], [1], [0, 0, 1, 1], [], []>} : vector<8x128xbf16>, vector<128x128xbf16>, vector<8x128xf32> -> vector<8x128xf32>
    %65 = arith.addf %58, %64 : vector<8x128xf32>
    %66 = vector.extract_strided_slice %8 {offsets = [0, 320, 0], sizes = [8, 40, 128], strides = [1, 1, 1]} : vector<8x400x128xf32> to vector<8x40x128xf32>
    %cst_40 = arith.constant dense<0xFF800000> : vector<8x128xf32>
    %67 = vector.multi_reduction <maximumf>, %66, %cst_40 [1] : vector<8x40x128xf32> to vector<8x128xf32>
    %68 = arith.truncf %67 : vector<8x128xf32> to vector<8x128xbf16>
    %c8 = arith.constant 8 : index
    %c0_41 = arith.constant 0 : index
    %c0_42 = arith.constant 0 : index
    %69 = vector.load %arg4[%c8, %c0_41, %c0_42] : memref<10x128x128xbf16, #tpu.memory_space<vmem>>, vector<1x128x128xbf16>
    %70 = vector.shape_cast %69 : vector<1x128x128xbf16> to vector<128x128xbf16>
    %cst_43 = arith.constant dense<0.000000e+00> : vector<8x128xf32>
    %71 = tpu.matmul %68, %70, %cst_43 {dimension_numbers = #tpu.dot_dimension_numbers<[1], [0], [0], [1], [0, 0, 1, 1], [], []>} : vector<8x128xbf16>, vector<128x128xbf16>, vector<8x128xf32> -> vector<8x128xf32>
    %72 = arith.addf %65, %71 : vector<8x128xf32>
    %73 = vector.extract_strided_slice %8 {offsets = [0, 360, 0], sizes = [8, 40, 128], strides = [1, 1, 1]} : vector<8x400x128xf32> to vector<8x40x128xf32>
    %cst_44 = arith.constant dense<0xFF800000> : vector<8x128xf32>
    %74 = vector.multi_reduction <maximumf>, %73, %cst_44 [1] : vector<8x40x128xf32> to vector<8x128xf32>
    %75 = arith.truncf %74 : vector<8x128xf32> to vector<8x128xbf16>
    %c9 = arith.constant 9 : index
    %c0_45 = arith.constant 0 : index
    %c0_46 = arith.constant 0 : index
    %76 = vector.load %arg4[%c9, %c0_45, %c0_46] : memref<10x128x128xbf16, #tpu.memory_space<vmem>>, vector<1x128x128xbf16>
    %77 = vector.shape_cast %76 : vector<1x128x128xbf16> to vector<128x128xbf16>
    %cst_47 = arith.constant dense<0.000000e+00> : vector<8x128xf32>
    %78 = tpu.matmul %75, %77, %cst_47 {dimension_numbers = #tpu.dot_dimension_numbers<[1], [0], [0], [1], [0, 0, 1, 1], [], []>} : vector<8x128xbf16>, vector<128x128xbf16>, vector<8x128xf32> -> vector<8x128xf32>
    %79 = arith.addf %72, %78 : vector<8x128xf32>
    %c0_48 = arith.constant 0 : index
    %c0_49 = arith.constant 0 : index
    %80 = vector.load %arg5[%c0_48, %c0_49] : memref<1x128xf32, #tpu.memory_space<vmem>>, vector<1x128xf32>
    %81 = vector.broadcast %80 : vector<1x128xf32> to vector<8x128xf32>
    %82 = arith.addf %79, %81 : vector<8x128xf32>
    %cst_50 = arith.constant 0.000000e+00 : f32
    %83 = vector.broadcast %cst_50 : f32 to vector<8x128xf32>
    %84 = arith.maximumf %82, %83 : vector<8x128xf32>
    %c0_51 = arith.constant 0 : index
    %c0_52 = arith.constant 0 : index
    %85 = vector.load %arg6[%c0_51, %c0_52] : memref<8x128xf32, #tpu.memory_space<vmem>>, vector<8x128xf32>
    tpu.vector_store %arg6[%c0_51, %c0_52], %84 {strides = array<i32>} : memref<8x128xf32, #tpu.memory_space<vmem>>, vector<8x128xf32>,
    return
  }
  func.func @transform_0(%arg0: i32) -> (i32, i32) {
    %c0_i32 = arith.constant 0 : i32
    %c0_i32_0 = arith.constant 0 : i32
    return %arg0, %c0_i32 : i32, i32
  }
  func.func @transform_1(%arg0: i32) -> (i32, i32) {
    %c0_i32 = arith.constant 0 : i32
    %c0_i32_0 = arith.constant 0 : i32
    %c0_i32_1 = arith.constant 0 : i32
    return %c0_i32, %c0_i32_0 : i32, i32
  }
  func.func @transform_2(%arg0: i32) -> (i32, i32) {
    %c0_i32 = arith.constant 0 : i32
    %c0_i32_0 = arith.constant 0 : i32
    %c0_i32_1 = arith.constant 0 : i32
    return %c0_i32, %c0_i32_0 : i32, i32
  }
  func.func @transform_3(%arg0: i32) -> (i32, i32, i32) {
    %c0_i32 = arith.constant 0 : i32
    %c0_i32_0 = arith.constant 0 : i32
    %c0_i32_1 = arith.constant 0 : i32
    %c0_i32_2 = arith.constant 0 : i32
    return %c0_i32, %c0_i32_0, %c0_i32_1 : i32, i32, i32
  }
  func.func @transform_4(%arg0: i32) -> (i32, i32) {
    %c0_i32 = arith.constant 0 : i32
    %c0_i32_0 = arith.constant 0 : i32
    %c0_i32_1 = arith.constant 0 : i32
    return %c0_i32, %c0_i32_0 : i32, i32
  }
  func.func @transform_5(%arg0: i32) -> (i32, i32) {
    %c0_i32 = arith.constant 0 : i32
    %c0_i32_0 = arith.constant 0 : i32
    return %arg0, %c0_i32 : i32, i32
  }
}

</mosaic_0001>

<bundles_post_ra>
// kernel: cnn_forward.1
= control target key start
LH: loop header
LB: loop body
LE: loop exit
PB: predicated region body
PF: predicated region fallthrough
CT: control target
= control target key end

     0   :  { %10 = vsyncpa [#allocation3], 0  ;;  %s10705_s0 = inlined_call_operand.vmem [shape: bf16[9600,96], index: 0, kind: input, shape index: {}]   ;;  %s10706_s1 = inlined_call_operand.vmem [shape: bf16[96,128], index: 1, kind: input, shape index: {}]   ;;  %s10707_s2 = inlined_call_operand.vmem [shape: f32[1,128], index: 2, kind: input, shape index: {}]   ;;  %s10708_s3 = inlined_call_operand.vmem [shape: bf16[10,128,128], index: 3, kind: input, shape index: {}]   ;;  %s10709_s4 = inlined_call_operand.vmem [shape: f32[1,128], index: 4, kind: input, shape index: {}]   ;;  %s10710_s5 = inlined_call_operand.hbm [shape: f32[24,128], index: 5, kind: output, shape index: {}]  }
   0x1   :  { %12 = vsyncpa [#allocation3 + $0x1], 0  ;;  %s8582_s18 = smov 0   ;;  %s8584_s19 = smov 0  }
   0x2   :  { %s8586_s20 = smov 0   ;;  %s8588_s21 = smov 0  }
   0x3 LB: > { %s8603_s22 = sadd.s32 4294967295, %s8547_s21   ;;  %s6592_s23 = sadd.s32 4294967294, %s8547_s21   ;;  %s8547_s21 = sphi %s8588_s21, %s10850_s21   ;;  %s8543_s20 = sphi %s8586_s20, %s10849_s20   ;;  %s8539_s19 = sphi %s8584_s19, %s10848_s19   ;;  %s8535_s18 = sphi %s8582_s18, %s10847_s18  }
   0x4   : > { %s8607_s24 = sadd.s32 1, %s8547_s21   ;;  %s135_s25 = sadd.s32 1, %s8543_s20 }
   0x5   : > { %s132_s26 = ssub.s32 %s8547_s21, %s8607_s24  ;;  %p145_p0 = scmp.ne.s32.totalorder %s8543_s20, %s8539_s19 }
   0x6   : > { %p133_p1 = scmp.eq.s32.totalorder %s132_s26, 0  ;;  %p146_p2 = scmp.eq.s32.totalorder %s8603_s22, 2 }
   0x7   : > { %p151_p3 = scmp.ne.s32.totalorder %s8539_s19, %s8535_s18  ;;  %p152_p4 = scmp.eq.s32.totalorder %s6592_s23, 2 }
   0x8   : > { %s8618_s27 = scalar_select %p133_p1, %s8543_s20, %s135_s25  }
   0x9   : > { %p8620_p5 = por %p146_p2, %p145_p0  ;;  %p8624_p6 = por %p152_p4, %p151_p3 }
   0xa   : > { %p6595_p7 = scmp.ge.s32.totalorder %s8547_s21, 1  ;;  %p191_p8 = scmp.lt.s32.totalorder %s8547_s21, 4 }
   0xc   : > { %p192_p9 = pnand %p6595_p7, %p191_p8 }
   0xe   : > { %195 = sbr.rel (%p192_p9) target bundleno = 1329 (0x531), region = 40 }
  0x15   : > { %v8195_v0 = vld [vmem:[%s10706_s1] sm:$0xff]   ;;  %s219_s7 = smul.u32 400, %s8603_s22  ;;  %v8196_v1 = vld [vmem:[%s10706_s1 + $0x8] sm:$0xff]   ;;  %v8197_v2 = vld [vmem:[%s10706_s1 + $0x10] sm:$0xff]   ;;  %vm1681_vm0 = vcmask 785408   ;;  %vm4540_vm1 = vcmask 1041409  }
  0x16   : > { %7530 = vmatprep.subr.bf16.mxu0 %v8195_v0  ;;  %8142 = vmatprep.subr.bf16.mxu1 %v8195_v0  ;;  %v8198_v3 = vld [vmem:[%s10706_s1 + $0x18] sm:$0xff]   ;;  %v8199_v5 = vld [vmem:[%s10706_s1 + $0x20] sm:$0xff]   ;;  %v8200_v6 = vld [vmem:[%s10706_s1 + $0x28] sm:$0xff]   ;;  %vm4542_vm2 = vcmask 1042434   ;;  %vm4544_vm3 = vcmask 1043459   ;;  %vm4546_vm4 = vcmask 1044484  }
  0x17   : > { %p220_p10 = scmp.lt.s32.totalorder %s219_s7, 1199  ;;  %7531 = vmatpush3.bf16.msra.mxu0 %v8195_v0  ;;  %8148 = vmatpush3.bf16.msra.mxu1 %v8195_v0  ;;  %vm8550_vm5 = vmmov 0   ;;  %vm4548_vm6 = vcmask 1045509   ;;  %vm4550_vm7 = vcmask 1046534   ;;  %vm4552_vm8 = vcmask 1047559   ;;  %s216_s16 = sand.u32 1, %s8539_s19  }
  0x18   : > { %7532 = vmatprep.subr.bf16.mxu0 %v8196_v1  ;;  %8143 = vmatprep.subr.bf16.mxu1 %v8196_v1  ;;  %s6596_s23 = sshll.u32 %s216_s16, 3  ;;  %s7231_s30 = sshll.u32 %s8603_s22, 7 }
  0x19   : > { %s10852_s7 = smov (!%p220_p10, %s219_s7), 1199  ;;  %s218_s6 = scalar_lea.vmem [#allocation2], %s6596_s23 }
  0x1a   : > { %s6597_s14 = sshll.u32 %s10852_s7, 2  ;;  %s10663_s9 = scalar_lea.hbm %s10710_s5, %s7231_s30 }
  0x1b   : > { %7533 = vmatpush3.bf16.msra.mxu0 %v8196_v1  ;;  %s8646_s17 = scalar_lea.vmem %s10705_s0, %s6597_s14  ;;  %8149 = vmatpush3.bf16.msra.mxu1 %v8196_v1  ;;  %s6520_s10 = scalar_lea.sflag [#allocation3], %s216_s16 }
  0x1c   : > { %7534 = vmatprep.subr.bf16.mxu0 %v8197_v2  ;;  %v8201_v4 = vld [vmem:[%s8646_s17] sm:$0xff]   ;;  %8144 = vmatprep.subr.bf16.mxu1 %v8197_v2  ;;  %v8202_v7 = vld [vmem:[%s8646_s17 + $0x8] sm:$0xff]   ;;  %v8203_v8 = vld [vmem:[%s8646_s17 + $0x10] sm:$0xff]   ;;  %s8551_s22 = smov [#allocation2]  }
  0x1d   : > { %7542 = vmatprep.mubr.msk.bf16.mxu0 %vm1681_vm0, %v8201_v4  ;;  %v8204_v9 = vld [vmem:[%s8646_s17 + $0x18] sm:$0xff]   ;;  %v8205_v10 = vld [vmem:[%s8646_s17 + $0x20] sm:$0xff]   ;;  %v8206_v11 = vld [vmem:[%s8646_s17 + $0x28] sm:$0xff]   ;;  %s8489_s12 = sshll.u32 %s8551_s22, 4  ;;  %s8490_s12 = int_to_ptr.vmem [resolvable:$false] %s8489_s12 }
  0x1e   : > { %v8207_v12 = vld [vmem:[%s8646_s17 + $0x30] sm:$0xff]   ;;  %v8208_v13 = vld [vmem:[%s8646_s17 + $0x38] sm:$0xff]   ;;  %v8209_v14 = vld [vmem:[%s8646_s17 + $0x40] sm:$0xff]   ;;  %s8491_s13 = scalar_lea.vmem %s8490_s12, 256 }
  0x1f   : > { %7535 = vmatpush3.bf16.msra.mxu0 %v8197_v2  ;;  %8150 = vmatpush3.bf16.msra.mxu1 %v8197_v2  ;;  %v8210_v15 = vld [vmem:[%s8646_s17 + $0x48] sm:$0xff]   ;;  %v8211_v16 = vld [vmem:[%s8646_s17 + $0x50] sm:$0xff]   ;;  %v8212_v17 = vld [vmem:[%s8646_s17 + $0x58] sm:$0xff]  }
  0x20   : > { %7536 = vmatprep.subr.bf16.mxu0 %v8198_v3  ;;  %8145 = vmatprep.subr.bf16.mxu1 %v8198_v3  ;;  %v8213_v18 = vld [vmem:[%s8646_s17 + $0x60] sm:$0xff]   ;;  %v8214_v19 = vld [vmem:[%s8646_s17 + $0x68] sm:$0xff]   ;;  %v8215_v20 = vld [vmem:[%s8646_s17 + $0x70] sm:$0xff]  }
  0x21   : > { %v8216_v21 = vld [vmem:[%s8646_s17 + $0x78] sm:$0xff]   ;;  %v8217_v22 = vld [vmem:[%s8646_s17 + $0x80] sm:$0xff]   ;;  %v8218_v23 = vld [vmem:[%s8646_s17 + $0x88] sm:$0xff]  }
  0x22   : > { %v8219_v24 = vld [vmem:[%s8646_s17 + $0x90] sm:$0xff]   ;;  %v8220_v25 = vld [vmem:[%s8646_s17 + $0x98] sm:$0xff]   ;;  %v8221_v26 = vld [vmem:[%s8646_s17 + $0xa0] sm:$0xff]  }
  0x23   : > { %7537 = vmatpush3.bf16.msra.mxu0 %v8198_v3  ;;  %8151 = vmatpush3.bf16.msra.mxu1 %v8198_v3  ;;  %v8222_v27 = vld [vmem:[%s8646_s17 + $0xa8] sm:$0xff]   ;;  %v8223_v28 = vld [vmem:[%s8646_s17 + $0xb0] sm:$0xff]   ;;  %v8224_v29 = vld [vmem:[%s8646_s17 + $0xb8] sm:$0xff]  }
  0x24   : > { %7538 = vmatprep.subr.bf16.mxu0 %v8199_v5  ;;  %8146 = vmatprep.subr.bf16.mxu1 %v8199_v5  ;;  %v8225_v30 = vld [vmem:[%s8646_s17 + $0xc0] sm:$0xff]   ;;  %v8226_v31 = vld [vmem:[%s8646_s17 + $0xc8] sm:$0xff]   ;;  %v8227_v32 = vld [vmem:[%s8646_s17 + $0xd0] sm:$0xff]  }
  0x25   : > { %v8228_v33 = vld [vmem:[%s8646_s17 + $0xd8] sm:$0xff]   ;;  %v8229_v34 = vld [vmem:[%s8646_s17 + $0xe0] sm:$0xff]   ;;  %v8230_v35 = vld [vmem:[%s8646_s17 + $0xe8] sm:$0xff]  }
  0x26   : > { %v8231_v36 = vld [vmem:[%s8646_s17 + $0xf0] sm:$0xff]   ;;  %v8232_v37 = vld [vmem:[%s8646_s17 + $0xf8] sm:$0xff]   ;;  %v8233_v38 = vld [vmem:[%s8646_s17 + $0x100] sm:$0xff]  }
  0x27   : > { %7539 = vmatpush3.bf16.msra.mxu0 %v8199_v5  ;;  %8152 = vmatpush3.bf16.msra.mxu1 %v8199_v5  ;;  %v8234_v39 = vld [vmem:[%s8646_s17 + $0x108] sm:$0xff]   ;;  %v8265_v40 = vld [vmem:[%s8646_s17 + $0x450] sm:$0xff]   ;;  %v8267_v42 = vld [vmem:[%s8646_s17 + $0x458] sm:$0xff]  }
  0x28   : > { %7540 = vmatprep.subr.bf16.mxu0 %v8200_v6  ;;  %8147 = vmatprep.subr.bf16.mxu1 %v8200_v6  ;;  %v8235_v41 = vld [vmem:[%s8646_s17 + $0x110] sm:$0xff]   ;;  %v8236_v43 = vld [vmem:[%s8646_s17 + $0x118] sm:$0xff]   ;;  %v8269_v44 = vld [vmem:[%s8646_s17 + $0x460] sm:$0xff]  }
  0x29   : > { %7818 = vmatprep.mubr.msk.bf16.mxu1 %vm1681_vm0, %v8265_v40  ;;  %v8237_v45 = vld [vmem:[%s8646_s17 + $0x120] sm:$0xff]   ;;  %v8271_v46 = vld [vmem:[%s8646_s17 + $0x468] sm:$0xff]   ;;  %v8273_v48 = vld [vmem:[%s8646_s17 + $0x470] sm:$0xff]  }
  0x2a   : > { %v8238_v47 = vld [vmem:[%s8646_s17 + $0x128] sm:$0xff]   ;;  %v8239_v49 = vld [vmem:[%s8646_s17 + $0x130] sm:$0xff]   ;;  %v8275_v50 = vld [vmem:[%s8646_s17 + $0x478] sm:$0xff]  }
  0x2b   : > { %7541 = vmatpush3.bf16.msra.mxu0 %v8200_v6  ;;  %8153 = vmatpush3.bf16.msra.mxu1 %v8200_v6  ;;  %v8240_v51 = vld [vmem:[%s8646_s17 + $0x138] sm:$0xff]   ;;  %v8277_v52 = vld [vmem:[%s8646_s17 + $0x480] sm:$0xff]   ;;  %v8279_v54 = vld [vmem:[%s8646_s17 + $0x488] sm:$0xff]  }
  0x2c   : > { %v8241_v53 = vld [vmem:[%s8646_s17 + $0x140] sm:$0xff]   ;;  %v8242_v55 = vld [vmem:[%s8646_s17 + $0x148] sm:$0xff]   ;;  %v8281_v56 = vld [vmem:[%s8646_s17 + $0x490] sm:$0xff]  }
  0x2d   : > { %v8243_v57 = vld [vmem:[%s8646_s17 + $0x150] sm:$0xff]   ;;  %v8283_v58 = vld [vmem:[%s8646_s17 + $0x498] sm:$0xff]   ;;  %v8285_v60 = vld [vmem:[%s8646_s17 + $0x4a0] sm:$0xff]  }
  0x2e   : > { %7543 = vmatmul.mubr.msk.bf16.vlgmr.msra.gmra.mrb[0].mxu0 %vm1681_vm0, %v8202_v7  ;;  %7819 = vmatmul.mubr.msk.bf16.vlgmr.msra.gmra.mrb[0].mxu1 %vm1681_vm0, %v8267_v42  ;;  %v8244_v59 = vld [vmem:[%s8646_s17 + $0x158] sm:$0xff]   ;;  %v8245_v61 = vld [vmem:[%s8646_s17 + $0x160] sm:$0xff]   ;;  %v8287_v62 = vld [vmem:[%s8646_s17 + $0x4a8] sm:$0xff]  }
  0x2f   : > { %7546 = vmatprep.mubr.msk.bf16.mxu0 %vm1681_vm0, %v8203_v8  ;;  %7822 = vmatprep.mubr.msk.bf16.mxu1 %vm1681_vm0, %v8269_v44  ;;  %v8246_v63 = vld [vmem:[%s8646_s17 + $0x168] sm:$0xff]   ;;  %v8289_v0 = vld [vmem:[%s8646_s17 + $0x4b0] sm:$0xff]   ;;  %v8291_v2 = vld [vmem:[%s8646_s17 + $0x4b8] sm:$0xff]  }
  0x30   : > { %v8247_v1 = vld [vmem:[%s8646_s17 + $0x170] sm:$0xff]   ;;  %v8248_v3 = vld [vmem:[%s8646_s17 + $0x178] sm:$0xff]   ;;  %v8293_v4 = vld [vmem:[%s8646_s17 + $0x4c0] sm:$0xff]  }
  0x31   : > { %v8249_v5 = vld [vmem:[%s8646_s17 + $0x180] sm:$0xff]   ;;  %v8295_v6 = vld [vmem:[%s8646_s17 + $0x4c8] sm:$0xff]   ;;  %v8297_v8 = vld [vmem:[%s8646_s17 + $0x4d0] sm:$0xff]  }
  0x32   : > { %v8250_v7 = vld [vmem:[%s8646_s17 + $0x188] sm:$0xff]   ;;  %v8259_v44 = vld [vmem:[%s8646_s17 + $0x1d0] sm:$0xff]  }
  0x36   : > { %7547 = vmatmul.mubr.msk.bf16.gmra.mrb[4].mxu0 %vm1681_vm0, %v8204_v9  ;;  %7823 = vmatmul.mubr.msk.bf16.gmra.mrb[4].mxu1 %vm1681_vm0, %v8271_v46  ;;  %v8251_v9 = vld [vmem:[%s8646_s17 + $0x190] sm:$0xff]  }
  0x37   : > { %7550 = vmatprep.mubr.msk.bf16.mxu0 %vm1681_vm0, %v8205_v10  ;;  %7826 = vmatprep.mubr.msk.bf16.mxu1 %vm1681_vm0, %v8273_v48  ;;  %v8299_v10 = vld [vmem:[%s8646_s17 + $0x4d8] sm:$0xff]  }
  0x3e   : > { %7551 = vmatmul.mubr.msk.bf16.gmra.mrb[8].mxu0 %vm1681_vm0, %v8206_v11  ;;  %7827 = vmatmul.mubr.msk.bf16.gmra.mrb[8].mxu1 %vm1681_vm0, %v8275_v50  ;;  %v8252_v11 = vld [vmem:[%s8646_s17 + $0x198] sm:$0xff]  }
  0x3f   : > { %7554 = vmatprep.mubr.msk.bf16.mxu0 %vm1681_vm0, %v8207_v12  ;;  %7830 = vmatprep.mubr.msk.bf16.mxu1 %vm1681_vm0, %v8277_v52  ;;  %v8301_v12 = vld [vmem:[%s8646_s17 + $0x4e0] sm:$0xff]  }
  0x46   : > { %7555 = vmatmul.mubr.msk.bf16.gmra.mrb[12].mxu0 %vm1681_vm0, %v8208_v13  ;;  %7831 = vmatmul.mubr.msk.bf16.gmra.mrb[12].mxu1 %vm1681_vm0, %v8279_v54  ;;  %v8253_v13 = vld [vmem:[%s8646_s17 + $0x1a0] sm:$0xff]  }
  0x47   : > { %7558 = vmatprep.mubr.msk.bf16.mxu0 %vm1681_vm0, %v8209_v14  ;;  %7834 = vmatprep.mubr.msk.bf16.mxu1 %vm1681_vm0, %v8281_v56  ;;  %v8303_v14 = vld [vmem:[%s8646_s17 + $0x4e8] sm:$0xff]  }
  0x4e   : > { %7559 = vmatmul.mubr.msk.bf16.gmra.mrb[16].mxu0 %vm1681_vm0, %v8210_v15  ;;  %7835 = vmatmul.mubr.msk.bf16.gmra.mrb[16].mxu1 %vm1681_vm0, %v8283_v58  ;;  %v8254_v15 = vld [vmem:[%s8646_s17 + $0x1a8] sm:$0xff]  }
  0x4f   : > { %7562 = vmatprep.mubr.msk.bf16.mxu0 %vm1681_vm0, %v8211_v16  ;;  %7838 = vmatprep.mubr.msk.bf16.mxu1 %vm1681_vm0, %v8285_v60  ;;  %v8305_v16 = vld [vmem:[%s8646_s17 + $0x4f0] sm:$0xff]   ;;  %v8260_v60 = vld [vmem:[%s8646_s17 + $0x1d8] sm:$0xff]  }
  0x56   : > { %7563 = vmatmul.mubr.msk.bf16.gmra.mrb[20].mxu0 %vm1681_vm0, %v8212_v17  ;;  %7839 = vmatmul.mubr.msk.bf16.gmra.mrb[20].mxu1 %vm1681_vm0, %v8287_v62  ;;  %v8255_v17 = vld [vmem:[%s8646_s17 + $0x1b0] sm:$0xff]  }
  0x57   : > { %7566 = vmatprep.mubr.msk.bf16.mxu0 %vm1681_vm0, %v8213_v18  ;;  %7842 = vmatprep.mubr.msk.bf16.mxu1 %vm1681_vm0, %v8289_v0  ;;  %v8307_v18 = vld [vmem:[%s8646_s17 + $0x4f8] sm:$0xff]   ;;  %v8261_v0 = vld [vmem:[%s8646_s17 + $0x1e0] sm:$0xff]  }
  0x5e   : > { %7567 = vmatmul.mubr.msk.bf16.gmra.mrb[24].mxu0 %vm1681_vm0, %v8214_v19  ;;  %7843 = vmatmul.mubr.msk.bf16.gmra.mrb[24].mxu1 %vm1681_vm0, %v8291_v2  ;;  %v8811_v19 = vld [vmem:[%s10707_s2] ss:$0 sm:$0xff] }
  0x5f   : > { %7570 = vmatprep.mubr.msk.bf16.mxu0 %vm1681_vm0, %v8215_v20  ;;  %7846 = vmatprep.mubr.msk.bf16.mxu1 %vm1681_vm0, %v8293_v4  ;;  %v8319_v4 = vld [vmem:[%s8646_s17 + $0x528] sm:$0xff]  }
  0x66   : > { %7571 = vmatmul.mubr.msk.bf16.gmra.mrb[28].mxu0 %vm1681_vm0, %v8216_v21  ;;  %7847 = vmatmul.mubr.msk.bf16.gmra.mrb[28].mxu1 %vm1681_vm0, %v8295_v6 }
  0x67   : > { %7574 = vmatprep.mubr.msk.bf16.mxu0 %vm1681_vm0, %v8217_v22  ;;  %7850 = vmatprep.mubr.msk.bf16.mxu1 %vm1681_vm0, %v8297_v8  ;;  %v8256_v22 = vld [vmem:[%s8646_s17 + $0x1b8] sm:$0xff]  }
  0x6e   : > { %7575 = vmatmul.mubr.msk.bf16.gmra.mrb[32].mxu0 %vm1681_vm0, %v8218_v23  ;;  %7851 = vmatmul.mubr.msk.bf16.gmra.mrb[32].mxu1 %vm1681_vm0, %v8299_v10 }
  0x6f   : > { %7578 = vmatprep.mubr.msk.bf16.mxu0 %vm1681_vm0, %v8219_v24  ;;  %7854 = vmatprep.mubr.msk.bf16.mxu1 %vm1681_vm0, %v8301_v12 }
  0x76   : > { %7579 = vmatmul.mubr.msk.bf16.gmra.mrb[36].mxu0 %vm1681_vm0, %v8220_v25  ;;  %7855 = vmatmul.mubr.msk.bf16.gmra.mrb[36].mxu1 %vm1681_vm0, %v8303_v14  ;;  %v8257_v25 = vld [vmem:[%s8646_s17 + $0x1c0] sm:$0xff]  }
  0x77   : > { %7582 = vmatprep.mubr.msk.bf16.mxu0 %vm1681_vm0, %v8221_v26  ;;  %7858 = vmatprep.mubr.msk.bf16.mxu1 %vm1681_vm0, %v8305_v16  ;;  %v8309_v26 = vld [vmem:[%s8646_s17 + $0x500] sm:$0xff]  }
  0x7e   : > { %7583 = vmatmul.mubr.msk.bf16.gmra.mrb[40].mxu0 %vm1681_vm0, %v8222_v27  ;;  %7859 = vmatmul.mubr.msk.bf16.gmra.mrb[40].mxu1 %vm1681_vm0, %v8307_v18  ;;  %v8263_v18 = vld [vmem:[%s8646_s17 + $0x1f0] sm:$0xff]  }
  0x7f   : > { %7586 = vmatprep.mubr.msk.bf16.mxu0 %vm1681_vm0, %v8223_v28  ;;  %v8311_v28 = vld [vmem:[%s8646_s17 + $0x508] sm:$0xff]   ;;  %7862 = vmatprep.mubr.msk.bf16.mxu1 %vm1681_vm0, %v8309_v26 }
  0x86   : > { %7587 = vmatmul.mubr.msk.bf16.gmra.mrb[44].mxu0 %vm1681_vm0, %v8224_v29  ;;  %7863 = vmatmul.mubr.msk.bf16.gmra.mrb[44].mxu1 %vm1681_vm0, %v8311_v28 }
  0x87   : > { %7590 = vmatprep.mubr.msk.bf16.mxu0 %vm1681_vm0, %v8225_v30 }
  0x8e   : > { %7591 = vmatmul.mubr.msk.bf16.gmra.mrb[48].mxu0 %vm1681_vm0, %v8226_v31 }
  0x8f   : > { %7594 = vmatprep.mubr.msk.bf16.mxu0 %vm1681_vm0, %v8227_v32 }
  0x96   : > { %7595 = vmatmul.mubr.msk.bf16.gmra.mrb[52].mxu0 %vm1681_vm0, %v8228_v33 }
  0x97   : > { %7598 = vmatprep.mubr.msk.bf16.mxu0 %vm1681_vm0, %v8229_v34 }
  0x9e   : > { %7599 = vmatmul.mubr.msk.bf16.gmra.mrb[56].mxu0 %vm1681_vm0, %v8230_v35 }
  0x9f   : > { %7602 = vmatprep.mubr.msk.bf16.mxu0 %vm1681_vm0, %v8231_v36 }
  0xa6   : > { %7603 = vmatmul.mubr.msk.bf16.gmra.mrb[60].mxu0 %vm1681_vm0, %v8232_v37 }
  0xa7   : > { %7606 = vmatprep.mubr.msk.bf16.mxu0 %vm1681_vm0, %v8233_v38  ;;  %v8258_v38 = vld [vmem:[%s8646_s17 + $0x1c8] sm:$0xff]  }
  0xae   : > { %7607 = vmatmul.mubr.msk.bf16.gmra.mrb[64].mxu0 %vm1681_vm0, %v8234_v39 }
  0xaf   : > { %7610 = vmatprep.mubr.msk.bf16.mxu0 %vm1681_vm0, %v8235_v41 }
  0xb6   : > { %7611 = vmatmul.mubr.msk.bf16.gmra.mrb[68].mxu0 %vm1681_vm0, %v8236_v43 }
  0xb7   : > { %7614 = vmatprep.mubr.msk.bf16.mxu0 %vm1681_vm0, %v8237_v45  ;;  %v8313_v45 = vld [vmem:[%s8646_s17 + $0x510] sm:$0xff]  }
  0xb8   : > { %7866 = vmatprep.mubr.msk.bf16.mxu1 %vm1681_vm0, %v8313_v45 }
  0xbe   : > { %7615 = vmatmul.mubr.msk.bf16.gmra.mrb[72].mxu0 %vm1681_vm0, %v8238_v47  ;;  %v8315_v47 = vld [vmem:[%s8646_s17 + $0x518] sm:$0xff]  }
  0xbf   : > { %7618 = vmatprep.mubr.msk.bf16.mxu0 %vm1681_vm0, %v8239_v49  ;;  %7867 = vmatmul.mubr.msk.bf16.gmra.mrb[48].mxu1 %vm1681_vm0, %v8315_v47 }
  0xc6   : > { %7619 = vmatmul.mubr.msk.bf16.gmra.mrb[76].mxu0 %vm1681_vm0, %v8240_v51 }
  0xc7   : > { %7622 = vmatprep.mubr.msk.bf16.mxu0 %vm1681_vm0, %v8241_v53 }
  0xce   : > { %7623 = vmatmul.mubr.msk.bf16.gmra.mrb[80].mxu0 %vm1681_vm0, %v8242_v55 }
  0xcf   : > { %7626 = vmatprep.mubr.msk.bf16.mxu0 %vm1681_vm0, %v8243_v57 }
  0xd6   : > { %7627 = vmatmul.mubr.msk.bf16.gmra.mrb[84].mxu0 %vm1681_vm0, %v8244_v59 }
  0xd7   : > { %7630 = vmatprep.mubr.msk.bf16.mxu0 %vm1681_vm0, %v8245_v61 }
  0xde   : > { %7631 = vmatmul.mubr.msk.bf16.gmra.mrb[88].mxu0 %vm1681_vm0, %v8246_v63 }
  0xdf   : > { %7634 = vmatprep.mubr.msk.bf16.mxu0 %vm1681_vm0, %v8247_v1  ;;  %v8317_v1 = vld [vmem:[%s8646_s17 + $0x520] sm:$0xff]  }
  0xe0   : > { %7870 = vmatprep.mubr.msk.bf16.mxu1 %vm1681_vm0, %v8317_v1 }
  0xe1   : > { %7871 = vmatmul.mubr.msk.bf16.gmra.mrb[52].mxu1 %vm1681_vm0, %v8319_v4 }
  0xe6   : > { %7635 = vmatmul.mubr.msk.bf16.gmra.mrb[92].mxu0 %vm1681_vm0, %v8248_v3 }
  0xe7   : > { %7638 = vmatprep.mubr.msk.bf16.mxu0 %vm1681_vm0, %v8249_v5 }
  0xee   : > { %7639 = vmatmul.mubr.msk.bf16.gmra.mrb[96].mxu0 %vm1681_vm0, %v8250_v7 }
  0xef   : > { %7642 = vmatprep.mubr.msk.bf16.mxu0 %vm1681_vm0, %v8251_v9 }
  0xf6   : > { %7643 = vmatmul.mubr.msk.bf16.gmra.mrb[100].mxu0 %vm1681_vm0, %v8252_v11 }
  0xf7   : > { %7646 = vmatprep.mubr.msk.bf16.mxu0 %vm1681_vm0, %v8253_v13 }
  0xfe   : > { %7647 = vmatmul.mubr.msk.bf16.gmra.mrb[104].mxu0 %vm1681_vm0, %v8254_v15  ;;  %v8262_v15 = vld [vmem:[%s8646_s17 + $0x1e8] sm:$0xff]  }
  0xff   : > { %7650 = vmatprep.mubr.msk.bf16.mxu0 %vm1681_vm0, %v8255_v17 }
 0x101   : > { %v7544_v20 = vpop.f32.mrb[0].mxu0 }
 0x102   : > { %v2316_v21 = vpop.f32.mrb[1].mxu0  ;;  %v2325_v29 = vadd.f32 %v7544_v20, %v8811_v19  ;;  %v8321_v20 = vld [vmem:[%s8646_s17 + $0x530] sm:$0xff]  }
 0x103   : > { %v2317_v23 = vadd.f32 %v8811_v19, %v2316_v21  ;;  %v7545_v24 = vpop.f32.mrb[2].mxu0  ;;  %7874 = vmatprep.mubr.msk.bf16.mxu1 %vm1681_vm0, %v8321_v20 }
 0x104   : > { %v2319_v27 = vpop.f32.mrb[3].mxu0  ;;  %v2328_v32 = vadd.f32 %v7545_v24, %v8811_v19  ;;  %v3917_v34 = vmax.f32 %v2325_v29, 0.0 }
 0x105   : > { %v2320_v30 = vadd.f32 %v8811_v19, %v2319_v27  ;;  %v3915_v31 = vmax.f32 %v2317_v23, 0.0 }
 0x106   : > { %7651 = vmatmul.mubr.msk.bf16.gmra.mrb[108].mxu0 %vm1681_vm0, %v8256_v22  ;;  %v3918_v39 = vmax.f32 %v2328_v32, 0.0  ;;  %v8323_v22 = vld [vmem:[%s8646_s17 + $0x538] sm:$0xff]  }
 0x107   : > { %v3916_v33 = vmax.f32 %v2320_v30, 0.0  ;;  %7654 = vmatprep.mubr.msk.bf16.mxu0 %vm1681_vm0, %v8257_v25  ;;  %7875 = vmatmul.mubr.msk.bf16.gmra.mrb[56].mxu1 %vm1681_vm0, %v8323_v22 }
 0x109   : > { %v4315_v35 = vmax.f32 %v3915_v31, %v3916_v33  ;;  %v7548_v36 = vpop.f32.mrb[4].mxu0  ;;  %v8264_v33 = vld [vmem:[%s8646_s17 + $0x1f8] sm:$0xff]  }
 0x10a   : > { %v2332_v37 = vpop.f32.mrb[5].mxu0  ;;  %v2341_v41 = vadd.f32 %v7548_v36, %v8811_v19 }
 0x10b   : > { %v4316_v40 = vmax.f32 %v4315_v35, %v3917_v34  ;;  %v2333_v42 = vadd.f32 %v8811_v19, %v2332_v37  ;;  %v7549_v43 = vpop.f32.mrb[6].mxu0  ;;  %v8266_v37 = vld [vmem:[%s8646_s17 + $0x200] sm:$0xff]  }
 0x10c   : > { %v2335_v46 = vpop.f32.mrb[7].mxu0  ;;  %v2344_v50 = vadd.f32 %v7549_v43, %v8811_v19  ;;  %v3921_v52 = vmax.f32 %v2341_v41, 0.0 }
 0x10d   : > { %v3919_v48 = vmax.f32 %v2333_v42, 0.0  ;;  %v4317_v49 = vmax.f32 %v4316_v40, %v3918_v39  ;;  %v2336_v51 = vadd.f32 %v8811_v19, %v2335_v46  ;;  %v8327_v40 = vld [vmem:[%s8646_s17 + $0x548] sm:$0xff]  }
 0x10e   : > { %7655 = vmatmul.mubr.msk.bf16.gmra.mrb[112].mxu0 %vm1681_vm0, %v8258_v38  ;;  %v3922_v55 = vmax.f32 %v2344_v50, 0.0  ;;  %v8325_v38 = vld [vmem:[%s8646_s17 + $0x540] sm:$0xff]  }
 0x10f   : > { %v8836_v53 = vmax.f32 %v4317_v49, %v3919_v48  ;;  %v3920_v54 = vmax.f32 %v2336_v51, 0.0  ;;  %7658 = vmatprep.mubr.msk.bf16.mxu0 %vm1681_vm0, %v8259_v44  ;;  %7878 = vmatprep.mubr.msk.bf16.mxu1 %vm1681_vm0, %v8325_v38  ;;  %v8337_v38 = vld [vmem:[%s8646_s17 + $0x570] sm:$0xff]  }
 0x110   : > { %7879 = vmatmul.mubr.msk.bf16.gmra.mrb[60].mxu1 %vm1681_vm0, %v8327_v40 }
 0x111   : > { %v4419_v56 = vmax.f32 %v3920_v54, %v3921_v52  ;;  %v7552_v57 = vpop.f32.mrb[8].mxu0  ;;  %v8268_v52 = vld [vmem:[%s8646_s17 + $0x208] sm:$0xff]  }
 0x112   : > { %v2357_v58 = vadd.f32 %v7552_v57, %v8811_v19  ;;  %v2348_v59 = vpop.f32.mrb[9].mxu0 }
 0x113   : > { %v2349_v61 = vadd.f32 %v8811_v19, %v2348_v59  ;;  %v4420_v62 = vmax.f32 %v4419_v56, %v3922_v55  ;;  %v7553_v63 = vpop.f32.mrb[10].mxu0  ;;  %v8329_v59 = vld [vmem:[%s8646_s17 + $0x550] sm:$0xff]  }
 0x114   : > { %v2360_v2 = vadd.f32 %v7553_v63, %v8811_v19  ;;  %v2351_v3 = vpop.f32.mrb[11].mxu0  ;;  %v3925_v7 = vmax.f32 %v2357_v58, 0.0  ;;  %v8270_v58 = vld [vmem:[%s8646_s17 + $0x210] sm:$0xff]   ;;  %7882 = vmatprep.mubr.msk.bf16.mxu1 %vm1681_vm0, %v8329_v59  ;;  %v8343_v59 = vld [vmem:[%s8646_s17 + $0x588] sm:$0xff]  }
 0x115   : > { %v3923_v5 = vmax.f32 %v2349_v61, 0.0  ;;  %v2352_v6 = vadd.f32 %v8811_v19, %v2351_v3  ;;  %v8331_v61 = vld [vmem:[%s8646_s17 + $0x558] sm:$0xff]  }
 0x116   : > { %v3926_v8 = vmax.f32 %v2360_v2, 0.0  ;;  %7659 = vmatmul.mubr.msk.bf16.gmra.mrb[116].mxu0 %vm1681_vm0, %v8260_v60 }
 0x117   : > { %v4421_v9 = vmax.f32 %v4420_v62, %v3923_v5  ;;  %v3924_v10 = vmax.f32 %v2352_v6, 0.0  ;;  %7662 = vmatprep.mubr.msk.bf16.mxu0 %vm1681_vm0, %v8261_v0 }
 0x118   : > { %v4757_v11 = vmax.f32 %v3925_v7, %v3926_v8  ;;  %7883 = vmatmul.mubr.msk.bf16.gmra.mrb[64].mxu1 %vm1681_vm0, %v8331_v61  ;;  %v8272_v8 = vld [vmem:[%s8646_s17 + $0x218] sm:$0xff]  }
 0x119   : > { %v8851_v12 = vmax.f32 %v4421_v9, %v3924_v10  ;;  %v7556_v13 = vpop.f32.mrb[12].mxu0 }
 0x11a   : > { %v2364_v14 = vpop.f32.mrb[13].mxu0  ;;  %v2373_v23 = vadd.f32 %v7556_v13, %v8811_v19 }
 0x11b   : > { %v2365_v16 = vadd.f32 %v8811_v19, %v2364_v14  ;;  %v7557_v17 = vpop.f32.mrb[14].mxu0 }
 0x11c   : > { %v2367_v21 = vpop.f32.mrb[15].mxu0  ;;  %v3929_v28 = vmax.f32 %v2373_v23, 0.0  ;;  %v2376_v29 = vadd.f32 %v7557_v17, %v8811_v19 }
 0x11d   : > { %v3927_v24 = vmax.f32 %v2365_v16, 0.0  ;;  %v2368_v25 = vadd.f32 %v8811_v19, %v2367_v21  ;;  %v8333_v16 = vld [vmem:[%s8646_s17 + $0x560] sm:$0xff]  }
 0x11e   : > { %7663 = vmatmul.mubr.msk.bf16.gmra.mrb[120].mxu0 %vm1681_vm0, %v8262_v15  ;;  %v3930_v41 = vmax.f32 %v2376_v29, 0.0  ;;  %v8274_v15 = vld [vmem:[%s8646_s17 + $0x220] sm:$0xff]   ;;  %7886 = vmatprep.mubr.msk.bf16.mxu1 %vm1681_vm0, %v8333_v16 }
 0x11f   : > { %v4758_v26 = vmax.f32 %v4757_v11, %v3927_v24  ;;  %v3928_v27 = vmax.f32 %v2368_v25, 0.0  ;;  %7666 = vmatprep.mubr.msk.bf16.mxu0 %vm1681_vm0, %v8263_v18  ;;  %v8335_v18 = vld [vmem:[%s8646_s17 + $0x568] sm:$0xff]  }
 0x120   : > { %7887 = vmatmul.mubr.msk.bf16.gmra.mrb[68].mxu1 %vm1681_vm0, %v8335_v18 }
 0x121   : > { %v4759_v30 = vmax.f32 %v4758_v26, %v3928_v27  ;;  %v7560_v31 = vpop.f32.mrb[16].mxu0  ;;  %7890 = vmatprep.mubr.msk.bf16.mxu1 %vm1681_vm0, %v8337_v38  ;;  %v8351_v38 = vld [vmem:[%s8646_s17 + $0x5a8] sm:$0xff]  }
 0x122   : > { %v2380_v32 = vpop.f32.mrb[17].mxu0  ;;  %v2389_v42 = vadd.f32 %v7560_v31, %v8811_v19 }
 0x123   : > { %v8866_v34 = vmax.f32 %v4759_v30, %v3929_v28  ;;  %v2381_v35 = vadd.f32 %v8811_v19, %v2380_v32  ;;  %v7561_v36 = vpop.f32.mrb[18].mxu0  ;;  %v8276_v32 = vld [vmem:[%s8646_s17 + $0x228] sm:$0xff]  }
 0x124   : > { %v2383_v39 = vpop.f32.mrb[19].mxu0  ;;  %v2392_v46 = vadd.f32 %v7561_v36, %v8811_v19  ;;  %v3933_v48 = vmax.f32 %v2389_v42, 0.0 }
 0x125   : > { %v3931_v43 = vmax.f32 %v2381_v35, 0.0  ;;  %v2384_v44 = vadd.f32 %v8811_v19, %v2383_v39 }
 0x126   : > { %7667 = vmatmul.mubr.msk.bf16.gmra.mrb[124].mxu0 %vm1681_vm0, %v8264_v33  ;;  %v3934_v54 = vmax.f32 %v2392_v46, 0.0 }
 0x127   : > { %v4976_v45 = vmax.f32 %v3930_v41, %v3931_v43  ;;  %v3932_v47 = vmax.f32 %v2384_v44, 0.0  ;;  %7670 = vmatprep.mubr.msk.bf16.mxu0 %vm1681_vm0, %v8266_v37  ;;  %v8278_v37 = vld [vmem:[%s8646_s17 + $0x230] sm:$0xff]   ;;  %v8339_v41 = vld [vmem:[%s8646_s17 + $0x578] sm:$0xff]  }
 0x128   : > { %7891 = vmatmul.mubr.msk.bf16.gmra.mrb[72].mxu1 %vm1681_vm0, %v8339_v41 }
 0x129   : > { %v4977_v49 = vmax.f32 %v4976_v45, %v3932_v47  ;;  %v7564_v50 = vpop.f32.mrb[20].mxu0 }
 0x12a   : > { %v2396_v51 = vpop.f32.mrb[21].mxu0  ;;  %v2405_v63 = vadd.f32 %v7564_v50, %v8811_v19 }
 0x12b   : > { %v4978_v55 = vmax.f32 %v4977_v49, %v3933_v48  ;;  %v2397_v56 = vadd.f32 %v8811_v19, %v2396_v51  ;;  %v7565_v57 = vpop.f32.mrb[22].mxu0 }
 0x12c   : > { %v2399_v60 = vpop.f32.mrb[23].mxu0  ;;  %v2408_v2 = vadd.f32 %v7565_v57, %v8811_v19  ;;  %v3937_v4 = vmax.f32 %v2405_v63, 0.0  ;;  %v8341_v57 = vld [vmem:[%s8646_s17 + $0x580] sm:$0xff]  }
 0x12d   : > { %v8884_v62 = vmax.f32 %v4978_v55, %v3934_v54  ;;  %v2400_v0 = vadd.f32 %v8811_v19, %v2399_v60  ;;  %v3935_v1 = vmax.f32 %v2397_v56, 0.0  ;;  %v8282_v56 = vld [vmem:[%s8646_s17 + $0x240] sm:$0xff]   ;;  %7894 = vmatprep.mubr.msk.bf16.mxu1 %vm1681_vm0, %v8341_v57  ;;  %v8294_v57 = vld [vmem:[%s8646_s17 + $0x270] sm:$0xff]  }
 0x12e   : > { %7671 = vmatmul.mubr.msk.bf16.gmra.mrb[128].mxu0 %vm1681_vm0, %v8268_v52  ;;  %v3938_v9 = vmax.f32 %v2408_v2, 0.0  ;;  %v8280_v52 = vld [vmem:[%s8646_s17 + $0x238] sm:$0xff]  }
 0x12f   : > { %v3936_v3 = vmax.f32 %v2400_v0, 0.0  ;;  %7674 = vmatprep.mubr.msk.bf16.mxu0 %vm1681_vm0, %v8270_v58 }
 0x130   : > { %7895 = vmatmul.mubr.msk.bf16.gmra.mrb[76].mxu1 %vm1681_vm0, %v8343_v59 }
 0x131   : > { %v5195_v5 = vmax.f32 %v3935_v1, %v3936_v3  ;;  %v7568_v6 = vpop.f32.mrb[24].mxu0 }
 0x132   : > { %v2412_v7 = vpop.f32.mrb[25].mxu0  ;;  %v2421_v11 = vadd.f32 %v7568_v6, %v8811_v19 }
 0x133   : > { %v5196_v10 = vmax.f32 %v5195_v5, %v3937_v4  ;;  %v2413_v13 = vadd.f32 %v8811_v19, %v2412_v7  ;;  %v7569_v14 = vpop.f32.mrb[26].mxu0  ;;  %v8284_v7 = vld [vmem:[%s8646_s17 + $0x248] sm:$0xff]  }
 0x134   : > { %v2415_v17 = vpop.f32.mrb[27].mxu0  ;;  %v2424_v22 = vadd.f32 %v7569_v14, %v8811_v19  ;;  %v3941_v24 = vmax.f32 %v2421_v11, 0.0  ;;  %v8286_v11 = vld [vmem:[%s8646_s17 + $0x250] sm:$0xff]  }
 0x135   : > { %v3939_v20 = vmax.f32 %v2413_v13, 0.0  ;;  %v5197_v21 = vmax.f32 %v5196_v10, %v3938_v9  ;;  %v2416_v23 = vadd.f32 %v8811_v19, %v2415_v17  ;;  %v8345_v13 = vld [vmem:[%s8646_s17 + $0x590] sm:$0xff]  }
 0x136   : > { %7675 = vmatmul.mubr.msk.bf16.gmra.mrb[132].mxu0 %vm1681_vm0, %v8272_v8  ;;  %v3942_v27 = vmax.f32 %v2424_v22, 0.0  ;;  %7898 = vmatprep.mubr.msk.bf16.mxu1 %vm1681_vm0, %v8345_v13 }
 0x137   : > { %v8904_v25 = vmax.f32 %v5197_v21, %v3939_v20  ;;  %v3940_v26 = vmax.f32 %v2416_v23, 0.0  ;;  %7678 = vmatprep.mubr.msk.bf16.mxu0 %vm1681_vm0, %v8274_v15  ;;  %v8347_v15 = vld [vmem:[%s8646_s17 + $0x598] sm:$0xff]  }
 0x138   : > { %7899 = vmatmul.mubr.msk.bf16.gmra.mrb[80].mxu1 %vm1681_vm0, %v8347_v15 }
 0x139   : > { %v5414_v28 = vmax.f32 %v3940_v26, %v3941_v24  ;;  %v7572_v29 = vpop.f32.mrb[28].mxu0 }
 0x13a   : > { %v2437_v30 = vadd.f32 %v7572_v29, %v8811_v19  ;;  %v2428_v31 = vpop.f32.mrb[29].mxu0  ;;  %v8288_v29 = vld [vmem:[%s8646_s17 + $0x258] sm:$0xff]  }
 0x13b   : > { %v2429_v33 = vadd.f32 %v8811_v19, %v2428_v31  ;;  %v5415_v35 = vmax.f32 %v5414_v28, %v3942_v27  ;;  %v7573_v36 = vpop.f32.mrb[30].mxu0 }
 0x13c   : > { %v2440_v39 = vadd.f32 %v7573_v36, %v8811_v19  ;;  %v2431_v40 = vpop.f32.mrb[31].mxu0  ;;  %v3945_v44 = vmax.f32 %v2437_v30, 0.0  ;;  %v8349_v36 = vld [vmem:[%s8646_s17 + $0x5a0] sm:$0xff]  }
 0x13d   : > { %v3943_v42 = vmax.f32 %v2429_v33, 0.0  ;;  %v2432_v43 = vadd.f32 %v8811_v19, %v2431_v40  ;;  %7902 = vmatprep.mubr.msk.bf16.mxu1 %vm1681_vm0, %v8349_v36  ;;  %v8300_v36 = vld [vmem:[%s8646_s17 + $0x288] sm:$0xff]  }
 0x13e   : > { %v3946_v45 = vmax.f32 %v2440_v39, 0.0  ;;  %7679 = vmatmul.mubr.msk.bf16.gmra.mrb[136].mxu0 %vm1681_vm0, %v8276_v32 }
 0x13f   : > { %v5416_v46 = vmax.f32 %v5415_v35, %v3943_v42  ;;  %v3944_v47 = vmax.f32 %v2432_v43, 0.0  ;;  %7682 = vmatprep.mubr.msk.bf16.mxu0 %vm1681_vm0, %v8278_v37  ;;  %v8290_v35 = vld [vmem:[%s8646_s17 + $0x260] sm:$0xff]  }
 0x140   : > { %v5633_v48 = vmax.f32 %v3945_v44, %v3946_v45  ;;  %7903 = vmatmul.mubr.msk.bf16.gmra.mrb[84].mxu1 %vm1681_vm0, %v8351_v38 }
 0x141   : > { %v8919_v49 = vmax.f32 %v5416_v46, %v3944_v47  ;;  %v7576_v50 = vpop.f32.mrb[32].mxu0 }
 0x142   : > { %v2444_v51 = vpop.f32.mrb[33].mxu0  ;;  %v2453_v60 = vadd.f32 %v7576_v50, %v8811_v19  ;;  %v8292_v50 = vld [vmem:[%s8646_s17 + $0x268] sm:$0xff]  }
 0x143   : > { %v2445_v54 = vadd.f32 %v8811_v19, %v2444_v51  ;;  %v7577_v55 = vpop.f32.mrb[34].mxu0 }
 0x144   : > { %v2447_v58 = vpop.f32.mrb[35].mxu0  ;;  %v3949_v2 = vmax.f32 %v2453_v60, 0.0  ;;  %v2456_v3 = vadd.f32 %v7577_v55, %v8811_v19  ;;  %v8355_v60 = vld [vmem:[%s8646_s17 + $0x5b8] sm:$0xff]  }
 0x145   : > { %v3947_v61 = vmax.f32 %v2445_v54, 0.0  ;;  %v2448_v63 = vadd.f32 %v8811_v19, %v2447_v58  ;;  %v8353_v58 = vld [vmem:[%s8646_s17 + $0x5b0] sm:$0xff]  }
 0x146   : > { %7683 = vmatmul.mubr.msk.bf16.gmra.mrb[140].mxu0 %vm1681_vm0, %v8280_v52  ;;  %v3950_v16 = vmax.f32 %v2456_v3, 0.0  ;;  %7906 = vmatprep.mubr.msk.bf16.mxu1 %vm1681_vm0, %v8353_v58  ;;  %v8304_v58 = vld [vmem:[%s8646_s17 + $0x298] sm:$0xff]  }
 0x147   : > { %v5634_v0 = vmax.f32 %v5633_v48, %v3947_v61  ;;  %v3948_v1 = vmax.f32 %v2448_v63, 0.0  ;;  %7686 = vmatprep.mubr.msk.bf16.mxu0 %vm1681_vm0, %v8282_v56 }
 0x148   : > { %7907 = vmatmul.mubr.msk.bf16.gmra.mrb[88].mxu1 %vm1681_vm0, %v8355_v60 }
 0x149   : > { %v5635_v4 = vmax.f32 %v5634_v0, %v3948_v1  ;;  %v7580_v5 = vpop.f32.mrb[36].mxu0 }
 0x14a   : > { %v2460_v6 = vpop.f32.mrb[37].mxu0  ;;  %v2469_v17 = vadd.f32 %v7580_v5, %v8811_v19 }
 0x14b   : > { %v8934_v8 = vmax.f32 %v5635_v4, %v3949_v2  ;;  %v2461_v9 = vadd.f32 %v8811_v19, %v2460_v6  ;;  %v7581_v10 = vpop.f32.mrb[38].mxu0 }
 0x14c   : > { %v2463_v14 = vpop.f32.mrb[39].mxu0  ;;  %v2472_v22 = vadd.f32 %v7581_v10, %v8811_v19  ;;  %v3953_v24 = vmax.f32 %v2469_v17, 0.0  ;;  %v8357_v17 = vld [vmem:[%s8646_s17 + $0x5c0] sm:$0xff]  }
 0x14d   : > { %v3951_v18 = vmax.f32 %v2461_v9, 0.0  ;;  %v2464_v20 = vadd.f32 %v8811_v19, %v2463_v14  ;;  %7910 = vmatprep.mubr.msk.bf16.mxu1 %vm1681_vm0, %v8357_v17 }
 0x14e   : > { %7687 = vmatmul.mubr.msk.bf16.gmra.mrb[144].mxu0 %vm1681_vm0, %v8284_v7  ;;  %v3954_v30 = vmax.f32 %v2472_v22, 0.0 }
 0x14f   : > { %v5852_v21 = vmax.f32 %v3950_v16, %v3951_v18  ;;  %v3952_v23 = vmax.f32 %v2464_v20, 0.0  ;;  %7690 = vmatprep.mubr.msk.bf16.mxu0 %vm1681_vm0, %v8286_v11  ;;  %v8296_v11 = vld [vmem:[%s8646_s17 + $0x278] sm:$0xff]   ;;  %v8298_v16 = vld [vmem:[%s8646_s17 + $0x280] sm:$0xff]  }
 0x151   : > { %v5853_v26 = vmax.f32 %v5852_v21, %v3952_v23  ;;  %v7584_v27 = vpop.f32.mrb[40].mxu0  ;;  %v8359_v21 = vld [vmem:[%s8646_s17 + $0x5c8] sm:$0xff]  }
 0x152   : > { %v2476_v28 = vpop.f32.mrb[41].mxu0  ;;  %v2485_v40 = vadd.f32 %v7584_v27, %v8811_v19  ;;  %7911 = vmatmul.mubr.msk.bf16.gmra.mrb[92].mxu1 %vm1681_vm0, %v8359_v21 }
 0x153   : > { %v5854_v31 = vmax.f32 %v5853_v26, %v3953_v24  ;;  %v2477_v32 = vadd.f32 %v8811_v19, %v2476_v28  ;;  %v7585_v33 = vpop.f32.mrb[42].mxu0  ;;  %v4319_v24 = vrot.slane %v8836_v53, 4 }
 0x154   : > { %v2479_v37 = vpop.f32.mrb[43].mxu0  ;;  %v2488_v43 = vadd.f32 %v7585_v33, %v8811_v19  ;;  %v3957_v45 = vmax.f32 %v2485_v40, 0.0  ;;  %v8302_v40 = vld [vmem:[%s8646_s17 + $0x290] sm:$0xff]  }
 0x155   : > { %v8952_v39 = vmax.f32 %v5854_v31, %v3954_v30  ;;  %v2480_v41 = vadd.f32 %v8811_v19, %v2479_v37  ;;  %v3955_v42 = vmax.f32 %v2477_v32, 0.0  ;;  %v4320_v33 = vmax.f32 %v8836_v53, %v4319_v24 }
 0x156   : > { %7691 = vmatmul.mubr.msk.bf16.gmra.mrb[148].mxu0 %vm1681_vm0, %v8288_v29  ;;  %v3958_v51 = vmax.f32 %v2488_v43, 0.0  ;;  %v8363_v43 = vld [vmem:[%s8646_s17 + $0x5d8] sm:$0xff]  }
 0x157   : > { %v3956_v44 = vmax.f32 %v2480_v41, 0.0  ;;  %7694 = vmatprep.mubr.msk.bf16.mxu0 %vm1681_vm0, %v8290_v35  ;;  %v8361_v41 = vld [vmem:[%s8646_s17 + $0x5d0] sm:$0xff]  }
 0x158   : > { %7914 = vmatprep.mubr.msk.bf16.mxu1 %vm1681_vm0, %v8361_v41 }
 0x159   : > { %v6071_v46 = vmax.f32 %v3955_v42, %v3956_v44  ;;  %v7588_v47 = vpop.f32.mrb[44].mxu0 }
 0x15a   : > { %v2492_v48 = vpop.f32.mrb[45].mxu0  ;;  %v2501_v54 = vadd.f32 %v7588_v47, %v8811_v19  ;;  %v4321_v47 = vrot.slane %v4320_v33, 2  ;;  %7915 = vmatmul.mubr.msk.bf16.gmra.mrb[96].mxu1 %vm1681_vm0, %v8363_v43 }
 0x15b   : > { %v6072_v52 = vmax.f32 %v6071_v46, %v3957_v45  ;;  %v2493_v55 = vadd.f32 %v8811_v19, %v2492_v48  ;;  %v7589_v56 = vpop.f32.mrb[46].mxu0 }
 0x15c   : > { %v2495_v59 = vpop.f32.mrb[47].mxu0  ;;  %v2504_v0 = vadd.f32 %v7589_v56, %v8811_v19  ;;  %v3961_v2 = vmax.f32 %v2501_v54, 0.0  ;;  %v4322_v56 = vmax.f32 %v4320_v33, %v4321_v47  ;;  %v8310_v33 = vld [vmem:[%s8646_s17 + $0x2b0] sm:$0xff]  }
 0x15d   : > { %v3959_v61 = vmax.f32 %v2493_v55, 0.0  ;;  %v6073_v63 = vmax.f32 %v6072_v52, %v3958_v51  ;;  %v2496_v1 = vadd.f32 %v8811_v19, %v2495_v59 }
 0x15e   : > { %7695 = vmatmul.mubr.msk.bf16.gmra.mrb[152].mxu0 %vm1681_vm0, %v8292_v50  ;;  %v3962_v5 = vmax.f32 %v2504_v0, 0.0  ;;  %v4423_v50 = vrot.slane %v8851_v12, 4  ;;  %v8365_v0 = vld [vmem:[%s8646_s17 + $0x5e0] sm:$0xff]  }
 0x15f   : > { %v8972_v3 = vmax.f32 %v6073_v63, %v3959_v61  ;;  %v3960_v4 = vmax.f32 %v2496_v1, 0.0  ;;  %7698 = vmatprep.mubr.msk.bf16.mxu0 %vm1681_vm0, %v8294_v57  ;;  %v8306_v63 = vld [vmem:[%s8646_s17 + $0x2a0] sm:$0xff]   ;;  %7918 = vmatprep.mubr.msk.bf16.mxu1 %vm1681_vm0, %v8365_v0 }
 0x160   : > { %v4424_v1 = vmax.f32 %v8851_v12, %v4423_v50 }
 0x161   : > { %v6290_v6 = vmax.f32 %v3960_v4, %v3961_v2  ;;  %v7592_v7 = vpop.f32.mrb[48].mxu0 }
 0x162   : > { %v2517_v9 = vadd.f32 %v7592_v7, %v8811_v19  ;;  %v2508_v10 = vpop.f32.mrb[49].mxu0 }
 0x163   : > { %v2509_v13 = vadd.f32 %v8811_v19, %v2508_v10  ;;  %v6291_v14 = vmax.f32 %v6290_v6, %v3962_v5  ;;  %v7593_v15 = vpop.f32.mrb[50].mxu0  ;;  %v8367_v5 = vld [vmem:[%s8646_s17 + $0x5e8] sm:$0xff]  }
 0x164   : > { %v2520_v18 = vadd.f32 %v7593_v15, %v8811_v19  ;;  %v2511_v20 = vpop.f32.mrb[51].mxu0  ;;  %v3965_v26 = vmax.f32 %v2517_v9, 0.0  ;;  %7919 = vmatmul.mubr.msk.bf16.gmra.mrb[100].mxu1 %vm1681_vm0, %v8367_v5  ;;  %v8314_v5 = vld [vmem:[%s8646_s17 + $0x2c0] sm:$0xff]  }
 0x165   : > { %v3963_v22 = vmax.f32 %v2509_v13, 0.0  ;;  %v2512_v23 = vadd.f32 %v8811_v19, %v2511_v20 }
 0x166   : > { %v3966_v27 = vmax.f32 %v2520_v18, 0.0  ;;  %7699 = vmatmul.mubr.msk.bf16.gmra.mrb[156].mxu0 %vm1681_vm0, %v8296_v11  ;;  %v4323_v11 = vrot.slane %v4322_v56, 1 }
 0x167   : > { %v6292_v28 = vmax.f32 %v6291_v14, %v3963_v22  ;;  %v3964_v29 = vmax.f32 %v2512_v23, 0.0  ;;  %7702 = vmatprep.mubr.msk.bf16.mxu0 %vm1681_vm0, %v8298_v16  ;;  %v4425_v16 = vrot.slane %v4424_v1, 2  ;;  %v4761_v23 = vrot.slane %v8866_v34, 4 }
 0x168   : > { %v4325_v30 = vmax.f32 %v3965_v26, %v3966_v27  ;;  %v4324_v22 = vmax.f32 %v4322_v56, %v4323_v11  ;;  %v8308_v26 = vld [vmem:[%s8646_s17 + $0x2a8] sm:$0xff]  }
 0x169   : > { %v8988_v31 = vmax.f32 %v6292_v28, %v3964_v29  ;;  %v7596_v32 = vpop.f32.mrb[52].mxu0 }
 0x16a   : > { %v2524_v35 = vpop.f32.mrb[53].mxu0  ;;  %v2533_v44 = vadd.f32 %v7596_v32, %v8811_v19 }
 0x16b   : > { %v2525_v37 = vadd.f32 %v8811_v19, %v2524_v35  ;;  %v7597_v38 = vpop.f32.mrb[54].mxu0  ;;  %v8369_v35 = vld [vmem:[%s8646_s17 + $0x5f0] sm:$0xff]  }
 0x16c   : > { %v2527_v42 = vpop.f32.mrb[55].mxu0  ;;  %v2536_v51 = vadd.f32 %v7597_v38, %v8811_v19  ;;  %v3969_v52 = vmax.f32 %v2533_v44, 0.0  ;;  %v8371_v38 = vld [vmem:[%s8646_s17 + $0x5f8] sm:$0xff]   ;;  %7922 = vmatprep.mubr.msk.bf16.mxu1 %vm1681_vm0, %v8369_v35  ;;  %v4395_v44 = vpack.c.bf16 %v4324_v22, %v4324_v22 }
 0x16d   : > { %v3967_v45 = vmax.f32 %v2525_v37, 0.0  ;;  %v2528_v46 = vadd.f32 %v8811_v19, %v2527_v42  ;;  %7923 = vmatmul.mubr.msk.bf16.gmra.mrb[104].mxu1 %vm1681_vm0, %v8371_v38  ;;  %v8316_v38 = vld [vmem:[%s8646_s17 + $0x2c8] sm:$0xff]  }
 0x16e   : > { %7703 = vmatmul.mubr.msk.bf16.gmra.mrb[160].mxu0 %vm1681_vm0, %v8300_v36  ;;  %v3970_v2 = vmax.f32 %v2536_v51, 0.0  ;;  %v4426_v36 = vmax.f32 %v4424_v1, %v4425_v16 }
 0x16f   : > { %v4326_v53 = vmax.f32 %v4325_v30, %v3967_v45  ;;  %v3968_v48 = vmax.f32 %v2528_v46, 0.0  ;;  %7706 = vmatprep.mubr.msk.bf16.mxu0 %vm1681_vm0, %v8302_v40  ;;  %v4762_v45 = vmax.f32 %v8866_v34, %v4761_v23 }
 0x170   : > { %v4427_v51 = vrot.slane %v4426_v36, 1 }
 0x171   : > { %v4327_v54 = vmax.f32 %v4326_v53, %v3968_v48  ;;  %v7600_v55 = vpop.f32.mrb[56].mxu0 }
 0x172   : > { %v2540_v57 = vpop.f32.mrb[57].mxu0  ;;  %v2549_v7 = vadd.f32 %v7600_v55, %v8811_v19 }
 0x173   : > { %v4328_v59 = vmax.f32 %v4327_v54, %v3969_v52  ;;  %v2541_v60 = vadd.f32 %v8811_v19, %v2540_v57  ;;  %v7601_v61 = vpop.f32.mrb[58].mxu0  ;;  %v4652_v57 = vunpack.c.l.b16 %v4395_v44  ;;  %v8377_v44 = vld [vmem:[%s8646_s17 + $0x610] sm:$0xff]  }
 0x174   : > { %v2543_v4 = vpop.f32.mrb[59].mxu0  ;;  %v2552_v12 = vadd.f32 %v7601_v61, %v8811_v19  ;;  %v3973_v18 = vmax.f32 %v2549_v7, 0.0  ;;  %v8312_v61 = vld [vmem:[%s8646_s17 + $0x2b8] sm:$0xff]   ;;  %v4428_v7 = vmax.f32 %v4426_v36, %v4427_v51 }
 0x175   : > { %v4329_v6 = vrot.slane %v4328_v59, 4  ;;  %v3971_v9 = vmax.f32 %v2541_v60, 0.0  ;;  %v2544_v10 = vadd.f32 %v8811_v19, %v2543_v4 }
 0x176   : > { %7707 = vmatmul.mubr.msk.bf16.gmra.mrb[164].mxu0 %vm1681_vm0, %v8304_v58  ;;  %v3974_v28 = vmax.f32 %v2552_v12, 0.0  ;;  %v4763_v58 = vrot.slane %v4762_v45, 2  ;;  %v4499_v23 = vpack.c.bf16 %v4428_v7, %v4428_v7 }
 0x177   : > { %v4330_v13 = vmax.f32 %v4328_v59, %v4329_v6  ;;  %v4429_v14 = vmax.f32 %v3970_v2, %v3971_v9  ;;  %v3972_v15 = vmax.f32 %v2544_v10, 0.0  ;;  %7710 = vmatprep.mubr.msk.bf16.mxu0 %vm1681_vm0, %v8306_v63  ;;  %v8373_v6 = vld [vmem:[%s8646_s17 + $0x600] sm:$0xff]   ;;  %v4980_v9 = vrot.slane %v8884_v62, 4 }
 0x178   : > { %7926 = vmatprep.mubr.msk.bf16.mxu1 %vm1681_vm0, %v8373_v6 }
 0x179   : > { %v4331_v17 = vrot.slane %v4330_v13, 2  ;;  %v4430_v20 = vmax.f32 %v4429_v14, %v3972_v15  ;;  %v7604_v21 = vpop.f32.mrb[60].mxu0 }
 0x17a   : > { %v2556_v24 = vpop.f32.mrb[61].mxu0  ;;  %v2565_v42 = vadd.f32 %v7604_v21, %v8811_v19 }
 0x17b   : > { %v4332_v27 = vmax.f32 %v4330_v13, %v4331_v17  ;;  %v4431_v29 = vmax.f32 %v4430_v20, %v3973_v18  ;;  %v2557_v30 = vadd.f32 %v8811_v19, %v2556_v24  ;;  %v7605_v32 = vpop.f32.mrb[62].mxu0  ;;  %v8375_v13 = vld [vmem:[%s8646_s17 + $0x608] sm:$0xff]   ;;  %v4764_v17 = vmax.f32 %v4762_v45, %v4763_v58 }
 0x17c   : > { %v2559_v37 = vpop.f32.mrb[63].mxu0  ;;  %v2568_v46 = vadd.f32 %v7605_v32, %v8811_v19  ;;  %v3977_v55 = vmax.f32 %v2565_v42, 0.0  ;;  %7927 = vmatmul.mubr.msk.bf16.gmra.mrb[108].mxu1 %vm1681_vm0, %v8375_v13  ;;  %v4981_v24 = vmax.f32 %v8884_v62, %v4980_v9  ;;  %v4532_v45 = vunpack.c.l.b16 %v4499_v23 }
 0x17d   : > { %v4333_v40 = vrot.slane %v4332_v27, 1  ;;  %v4432_v41 = vmax.f32 %v4431_v29, %v3974_v28  ;;  %v2560_v43 = vadd.f32 %v8811_v19, %v2559_v37  ;;  %v3975_v48 = vmax.f32 %v2557_v30, 0.0  ;;  %7930 = vmatprep.mubr.msk.bf16.mxu1 %vm1681_vm0, %v8377_v44 }
 0x17e   : > { %7711 = vmatmul.mubr.msk.bf16.gmra.mrb[168].mxu0 %vm1681_vm0, %v8308_v26  ;;  %v3978_v59 = vmax.f32 %v2568_v46, 0.0  ;;  %v4765_v32 = vrot.slane %v4764_v17, 1  ;;  %v4982_v46 = vrot.slane %v4981_v24, 2 }
 0x17f   : > { %v4334_v47 = vmax.f32 %v4332_v27, %v4333_v40  ;;  %v4433_v53 = vrot.slane %v4432_v41, 4  ;;  %v3976_v50 = vmax.f32 %v2560_v43, 0.0  ;;  %7714 = vmatprep.mubr.msk.bf16.mxu0 %vm1681_vm0, %v8310_v33  ;;  %v8318_v43 = vld [vmem:[%s8646_s17 + $0x2d0] sm:$0xff]  }
 0x181   : > { %v4396_v52 = vpack.c.bf16 %v4334_v47, %v4334_v47  ;;  %v4434_v54 = vmax.f32 %v4432_v41, %v4433_v53  ;;  %v4767_v34 = vmax.f32 %v3975_v48, %v3976_v50  ;;  %v7608_v56 = vpop.f32.mrb[64].mxu0  ;;  %v8379_v50 = vld [vmem:[%s8646_s17 + $0x618] sm:$0xff]  }
 0x182   : > { %v2572_v60 = vpop.f32.mrb[65].mxu0  ;;  %v2581_v10 = vadd.f32 %v7608_v56, %v8811_v19  ;;  %v5199_v56 = vrot.slane %v8904_v25, 4 }
 0x183   : > { %v4653_v63 = vunpack.c.l.b16 %v4396_v52  ;;  %v4435_v0 = vrot.slane %v4434_v54, 2  ;;  %v4768_v1 = vmax.f32 %v4767_v34, %v3977_v55  ;;  %v2573_v2 = vadd.f32 %v8811_v19, %v2572_v60  ;;  %v7609_v4 = vpop.f32.mrb[66].mxu0 }
 0x184   : > { %v2575_v11 = vpop.f32.mrb[67].mxu0  ;;  %v2584_v18 = vadd.f32 %v7609_v4, %v8811_v19  ;;  %v3981_v26 = vmax.f32 %v2581_v10, 0.0  ;;  %v4766_v34 = vmax.f32 %v4764_v17, %v4765_v32  ;;  %7931 = vmatmul.mubr.msk.bf16.gmra.mrb[112].mxu1 %vm1681_vm0, %v8379_v50  ;;  %v5200_v7 = vmax.f32 %v8904_v25, %v5199_v56  ;;  %v8320_v10 = vld [vmem:[%s8646_s17 + $0x2d8] sm:$0xff]   ;;  %v8381_v17 = vld [vmem:[%s8646_s17 + $0x620] sm:$0xff]   ;;  %v8326_v50 = vld [vmem:[%s8646_s17 + $0x2f0] sm:$0xff]  }
 0x185   : > { %v9039_v14 = vsel %vm4540_vm1, %v4653_v63, %v4652_v57  ;;  %v4436_v12 = vmax.f32 %v4434_v54, %v4435_v0  ;;  %v3979_v15 = vmax.f32 %v2573_v2, 0.0  ;;  %v4769_v16 = vmax.f32 %v4768_v1, %v3978_v59  ;;  %7934 = vmatprep.mubr.msk.bf16.mxu1 %vm1681_vm0, %v8381_v17 }
 0x186   : > { %v2576_v20 = vadd.f32 %v8811_v19, %v2575_v11  ;;  %7715 = vmatmul.mubr.msk.bf16.gmra.mrb[172].mxu0 %vm1681_vm0, %v8312_v61  ;;  %v3982_v33 = vmax.f32 %v2584_v18, 0.0  ;;  %v4983_v0 = vmax.f32 %v4981_v24, %v4982_v46  ;;  %v4837_v6 = vpack.c.bf16 %v4766_v34, %v4766_v34  ;;  %v9089_v34 = vld [vmem:[%s10707_s2] ss:$0 sm:$0xff] }
 0x187   : > { %v4437_v21 = vrot.slane %v4436_v12, 1  ;;  %v4770_v22 = vmax.f32 %v4769_v16, %v3979_v15  ;;  %7718 = vmatprep.mubr.msk.bf16.mxu0 %vm1681_vm0, %v8314_v5  ;;  %v8322_v16 = vld [vmem:[%s8646_s17 + $0x2e0] sm:$0xff]  }
 0x188   : > { %v3980_v27 = vmax.f32 %v2576_v20, 0.0  ;;  %v4984_v18 = vrot.slane %v4983_v0, 1  ;;  %v4870_v25 = vunpack.c.l.b16 %v4837_v6 }
 0x189   : > { %v4438_v28 = vmax.f32 %v4436_v12, %v4437_v21  ;;  %v4771_v29 = vrot.slane %v4770_v22, 4  ;;  %v7612_v30 = vpop.f32.mrb[68].mxu0 }
 0x18a   : > { %v4986_v35 = vmax.f32 %v3980_v27, %v3981_v26  ;;  %v2597_v36 = vadd.f32 %v7612_v30, %v8811_v19  ;;  %v2588_v37 = vpop.f32.mrb[69].mxu0 }
 0x18b   : > { %v4500_v40 = vpack.c.bf16 %v4438_v28, %v4438_v28  ;;  %v4772_v41 = vmax.f32 %v4770_v22, %v4771_v29  ;;  %v2589_v42 = vadd.f32 %v8811_v19, %v2588_v37  ;;  %v7613_v62 = vpop.f32.mrb[70].mxu0  ;;  %v8383_v22 = vld [vmem:[%s8646_s17 + $0x628] sm:$0xff]   ;;  %v5201_v28 = vrot.slane %v5200_v7, 2 }
 0x18c   : > { %v4987_v47 = vmax.f32 %v4986_v35, %v3982_v33  ;;  %v2600_v53 = vadd.f32 %v7613_v62, %v8811_v19  ;;  %v2591_v48 = vpop.f32.mrb[71].mxu0  ;;  %v3985_v57 = vmax.f32 %v2597_v36, 0.0  ;;  %7935 = vmatmul.mubr.msk.bf16.gmra.mrb[116].mxu1 %vm1681_vm0, %v8383_v22  ;;  %v4985_v35 = vmax.f32 %v4983_v0, %v4984_v18 }
 0x18d   : > { %v4533_v51 = vunpack.c.l.b16 %v4500_v40  ;;  %v4773_v52 = vrot.slane %v4772_v41, 2  ;;  %v3983_v54 = vmax.f32 %v2589_v42, 0.0  ;;  %v2592_v55 = vadd.f32 %v8811_v19, %v2591_v48 }
 0x18e   : > { %v3986_v58 = vmax.f32 %v2600_v53, 0.0  ;;  %7719 = vmatmul.mubr.msk.bf16.gmra.mrb[176].mxu0 %vm1681_vm0, %v8316_v38  ;;  %v5418_v36 = vrot.slane %v8919_v49, 4 }
 0x18f   : > { %v4774_v59 = vmax.f32 %v4772_v41, %v4773_v52  ;;  %v4988_v60 = vmax.f32 %v4987_v47, %v3983_v54  ;;  %v3984_v61 = vmax.f32 %v2592_v55, 0.0  ;;  %7722 = vmatprep.mubr.msk.bf16.mxu0 %vm1681_vm0, %v8318_v43  ;;  %v9062_v63 = vsel %vm4540_vm1, %v4533_v51, %v4532_v45  ;;  %v8324_v45 = vld [vmem:[%s8646_s17 + $0x2e8] sm:$0xff]   ;;  %v8385_v51 = vld [vmem:[%s8646_s17 + $0x630] sm:$0xff]  }
 0x190   : > { %v5205_v1 = vmax.f32 %v3985_v57, %v3986_v58  ;;  %v5202_v43 = vmax.f32 %v5200_v7, %v5201_v28  ;;  %v5056_v52 = vpack.c.bf16 %v4985_v35, %v4985_v35  ;;  %v5419_v54 = vmax.f32 %v8919_v49, %v5418_v36  ;;  %v8387_v58 = vld [vmem:[%s8646_s17 + $0x638] sm:$0xff]   ;;  %7938 = vmatprep.mubr.msk.bf16.mxu1 %vm1681_vm0, %v8385_v51 }
 0x191   : > { %v4775_v2 = vrot.slane %v4774_v59, 1  ;;  %v4989_v4 = vmax.f32 %v4988_v60, %v3984_v61  ;;  %v7616_v5 = vpop.f32.mrb[72].mxu0 }
 0x192   : > { %v2604_v9 = vpop.f32.mrb[73].mxu0  ;;  %v2613_v20 = vadd.f32 %v7616_v5, %v8811_v19  ;;  %v5203_v0 = vrot.slane %v5202_v43, 1  ;;  %v5089_v6 = vunpack.c.l.b16 %v5056_v52  ;;  %v5420_v7 = vrot.slane %v5419_v54, 2  ;;  %v8332_v52 = vld [vmem:[%s8646_s17 + $0x308] sm:$0xff]  }
 0x193   : > { %v4776_v11 = vmax.f32 %v4774_v59, %v4775_v2  ;;  %v4990_v13 = vrot.slane %v4989_v4, 4  ;;  %v2605_v12 = vadd.f32 %v8811_v19, %v2604_v9  ;;  %v7617_v15 = vpop.f32.mrb[74].mxu0 }
 0x194   : > { %v2607_v21 = vpop.f32.mrb[75].mxu0  ;;  %v2616_v37 = vadd.f32 %v7617_v15, %v8811_v19  ;;  %v3989_v41 = vmax.f32 %v2613_v20, 0.0  ;;  %7939 = vmatmul.mubr.msk.bf16.gmra.mrb[120].mxu1 %vm1681_vm0, %v8387_v58  ;;  %v5204_v15 = vmax.f32 %v5202_v43, %v5203_v0  ;;  %v8328_v20 = vld [vmem:[%s8646_s17 + $0x2f8] sm:$0xff]  }
 0x195   : > { %v4838_v23 = vpack.c.bf16 %v4776_v11, %v4776_v11  ;;  %v4991_v24 = vmax.f32 %v4989_v4, %v4990_v13  ;;  %v3987_v26 = vmax.f32 %v2605_v12, 0.0  ;;  %v2608_v27 = vadd.f32 %v8811_v19, %v2607_v21 }
 0x196   : > { %7723 = vmatmul.mubr.msk.bf16.gmra.mrb[180].mxu0 %vm1681_vm0, %v8320_v10  ;;  %v3990_v55 = vmax.f32 %v2616_v37, 0.0  ;;  %v5275_v35 = vpack.c.bf16 %v5204_v15, %v5204_v15 }
 0x197   : > { %v4871_v29 = vunpack.c.l.b16 %v4838_v23  ;;  %v4992_v30 = vrot.slane %v4991_v24, 2  ;;  %v5206_v32 = vmax.f32 %v5205_v1, %v3987_v26  ;;  %v3988_v33 = vmax.f32 %v2608_v27, 0.0  ;;  %7726 = vmatprep.mubr.msk.bf16.mxu0 %vm1681_vm0, %v8322_v16  ;;  %v8330_v27 = vld [vmem:[%s8646_s17 + $0x300] sm:$0xff]  }
 0x198   : > { %v5637_v16 = vrot.slane %v8934_v8, 4 }
 0x199   : > { %v9079_v38 = vsel %vm4540_vm1, %v4871_v29, %v4870_v25  ;;  %v4993_v40 = vmax.f32 %v4991_v24, %v4992_v30  ;;  %v5207_v42 = vmax.f32 %v5206_v32, %v3988_v33  ;;  %v7620_v62 = vpop.f32.mrb[76].mxu0  ;;  %v5421_v25 = vmax.f32 %v5419_v54, %v5420_v7 }
 0x19a   : > { %v2620_v44 = vpop.f32.mrb[77].mxu0  ;;  %v2629_v56 = vadd.f32 %v9089_v34, %v7620_v62  ;;  %v5638_v36 = vmax.f32 %v8934_v8, %v5637_v16 }
 0x19b   : > { %v4994_v46 = vrot.slane %v4993_v40, 1  ;;  %v5208_v47 = vmax.f32 %v5207_v42, %v3989_v41  ;;  %v2621_v53 = vadd.f32 %v8811_v19, %v2620_v44  ;;  %v7621_v48 = vpop.f32.mrb[78].mxu0  ;;  %v5422_v43 = vrot.slane %v5421_v25, 1 }
 0x19c   : > { %v2623_v57 = vpop.f32.mrb[79].mxu0  ;;  %v2632_v49 = vadd.f32 %v9089_v34, %v7621_v48  ;;  %v3993_v11 = vmax.f32 %v2629_v56, 0.0  ;;  %v5308_v48 = vunpack.c.l.b16 %v5275_v35  ;;  %v5639_v8 = vrot.slane %v5638_v36, 2 }
 0x19d   : > { %v4995_v59 = vmax.f32 %v4993_v40, %v4994_v46  ;;  %v5209_v60 = vrot.slane %v5208_v47, 4  ;;  %v3991_v61 = vmax.f32 %v2621_v53, 0.0  ;;  %v2624_v19 = vadd.f32 %v9089_v34, %v2623_v57 }
 0x19e   : > { %7727 = vmatmul.mubr.msk.bf16.gmra.mrb[184].mxu0 %vm1681_vm0, %v8324_v45  ;;  %v3994_v17 = vmax.f32 %v2632_v49, 0.0 }
 0x19f   : > { %v5057_v1 = vpack.c.bf16 %v4995_v59, %v4995_v59  ;;  %v5210_v2 = vmax.f32 %v5208_v47, %v5209_v60  ;;  %v5424_v4 = vmax.f32 %v3990_v55, %v3991_v61  ;;  %v3992_v5 = vmax.f32 %v2624_v19, 0.0  ;;  %7730 = vmatprep.mubr.msk.bf16.mxu0 %vm1681_vm0, %v8326_v50  ;;  %v8334_v59 = vld [vmem:[%s8646_s17 + $0x310] sm:$0xff]  }
 0x1a0   : > { %v5423_v60 = vmax.f32 %v5421_v25, %v5422_v43  ;;  %v5856_v61 = vrot.slane %v8952_v39, 4 }
 0x1a1   : > { %v5090_v9 = vunpack.c.l.b16 %v5057_v1  ;;  %v5211_v10 = vrot.slane %v5210_v2, 2  ;;  %v5425_v13 = vmax.f32 %v5424_v4, %v3992_v5  ;;  %v7624_v12 = vpop.f32.mrb[80].mxu0  ;;  %v5640_v5 = vmax.f32 %v5638_v36, %v5639_v8 }
 0x1a2   : > { %v2636_v18 = vpop.f32.mrb[81].mxu0  ;;  %v2645_v32 = vadd.f32 %v9089_v34, %v7624_v12 }
 0x1a3   : > { %v9102_v21 = vsel %vm4540_vm1, %v5090_v9, %v5089_v6  ;;  %v5212_v22 = vmax.f32 %v5210_v2, %v5211_v10  ;;  %v5426_v23 = vmax.f32 %v5425_v13, %v3993_v11  ;;  %v2637_v24 = vadd.f32 %v9089_v34, %v2636_v18  ;;  %v7625_v26 = vpop.f32.mrb[82].mxu0 }
 0x1a4   : > { %v2639_v28 = vpop.f32.mrb[83].mxu0  ;;  %v2648_v37 = vadd.f32 %v9089_v34, %v7625_v26  ;;  %v3997_v46 = vmax.f32 %v2645_v32, 0.0  ;;  %v5494_v11 = vpack.c.bf16 %v5423_v60, %v5423_v60  ;;  %v5857_v13 = vmax.f32 %v8952_v39, %v5856_v61  ;;  %v8338_v32 = vld [vmem:[%s8646_s17 + $0x320] sm:$0xff]  }
 0x1a5   : > { %v5213_v29 = vrot.slane %v5212_v22, 1  ;;  %v5427_v30 = vmax.f32 %v5426_v23, %v3994_v17  ;;  %v2640_v33 = vadd.f32 %v9089_v34, %v2639_v28  ;;  %v3995_v42 = vmax.f32 %v2637_v24, 0.0 }
 0x1a6   : > { %7731 = vmatmul.mubr.msk.bf16.gmra.mrb[188].mxu0 %vm1681_vm0, %v8328_v20  ;;  %v3998_v50 = vmax.f32 %v2648_v37, 0.0  ;;  %v5641_v20 = vrot.slane %v5640_v5, 1  ;;  %v5527_v39 = vunpack.c.l.b16 %v5494_v11  ;;  %v10711_v60 = vmov 0.0  }
 0x1a7   : > { %v5214_v40 = vmax.f32 %v5212_v22, %v5213_v29  ;;  %v5428_v41 = vrot.slane %v5427_v30, 4  ;;  %v3996_v62 = vmax.f32 %v2640_v33, 0.0  ;;  %7734 = vmatprep.mubr.msk.bf16.mxu0 %vm1681_vm0, %v8330_v27  ;;  %v8336_v27 = vld [vmem:[%s8646_s17 + $0x318] sm:$0xff]   ;;  %v5858_v33 = vrot.slane %v5857_v13, 2  ;;  %7942 = vmatprep.subr.bf16.mxu1 %v10711_v60 }
 0x1a8   : > { %v5642_v43 = vmax.f32 %v5640_v5, %v5641_v20  ;;  %v6294_v20 = vrot.slane %v8988_v31, 4 }
 0x1a9   : > { %v5276_v44 = vpack.c.bf16 %v5214_v40, %v5214_v40  ;;  %v5429_v45 = vmax.f32 %v5427_v30, %v5428_v41  ;;  %v5643_v47 = vmax.f32 %v3995_v42, %v3996_v62  ;;  %v7628_v53 = vpop.f32.mrb[84].mxu0 }
 0x1aa   : > { %v2652_v51 = vpop.f32.mrb[85].mxu0  ;;  %v2661_v19 = vadd.f32 %v9089_v34, %v7628_v53 }
 0x1ab   : > { %v5309_v54 = vunpack.c.l.b16 %v5276_v44  ;;  %v5430_v55 = vrot.slane %v5429_v45, 2  ;;  %v5644_v56 = vmax.f32 %v5643_v47, %v3997_v46  ;;  %v2653_v57 = vadd.f32 %v9089_v34, %v2652_v51  ;;  %v7629_v58 = vpop.f32.mrb[86].mxu0 }
 0x1ac   : > { %v2655_v0 = vpop.f32.mrb[87].mxu0  ;;  %v2664_v6 = vadd.f32 %v9089_v34, %v7629_v58  ;;  %v4001_v12 = vmax.f32 %v2661_v19, 0.0  ;;  %v6075_v44 = vrot.slane %v8972_v3, 4 }
 0x1ad   : > { %v9118_v49 = vsel %vm4540_vm1, %v5309_v54, %v5308_v48  ;;  %v5431_v1 = vmax.f32 %v5429_v45, %v5430_v55  ;;  %v3999_v2 = vmax.f32 %v2653_v57, 0.0  ;;  %v5645_v4 = vmax.f32 %v5644_v56, %v3998_v50 }
 0x1ae   : > { %v2656_v7 = vadd.f32 %v9089_v34, %v2655_v0  ;;  %7735 = vmatmul.mubr.msk.bf16.gmra.mrb[192].mxu0 %vm1681_vm0, %v8332_v52  ;;  %v4002_v22 = vmax.f32 %v2664_v6, 0.0  ;;  %v5859_v50 = vmax.f32 %v5857_v13, %v5858_v33  ;;  %v5713_v56 = vpack.c.bf16 %v5642_v43, %v5642_v43 }
 0x1af   : > { %v5432_v9 = vrot.slane %v5431_v1, 1  ;;  %v5646_v10 = vmax.f32 %v5645_v4, %v3999_v2  ;;  %7738 = vmatprep.mubr.msk.bf16.mxu0 %vm1681_vm0, %v8334_v59  ;;  %v6076_v57 = vmax.f32 %v8972_v3, %v6075_v44  ;;  %v8340_v59 = vld [vmem:[%s8646_s17 + $0x328] sm:$0xff]   ;;  %v8342_v2 = vld [vmem:[%s8646_s17 + $0x330] sm:$0xff]  }
 0x1b0   : > { %v4000_v15 = vmax.f32 %v2656_v7, 0.0  ;;  %v5860_v4 = vrot.slane %v5859_v50, 1  ;;  %v5746_v11 = vunpack.c.l.b16 %v5713_v56 }
 0x1b1   : > { %v5433_v16 = vmax.f32 %v5431_v1, %v5432_v9  ;;  %v5647_v17 = vrot.slane %v5646_v10, 4  ;;  %v7632_v18 = vpop.f32.mrb[88].mxu0  ;;  %v6077_v13 = vrot.slane %v6076_v57, 2 }
 0x1b2   : > { %v5862_v23 = vmax.f32 %v4000_v15, %v4001_v12  ;;  %v2677_v24 = vadd.f32 %v9089_v34, %v7632_v18  ;;  %v2668_v26 = vpop.f32.mrb[89].mxu0  ;;  %v5861_v18 = vmax.f32 %v5859_v50, %v5860_v4 }
 0x1b3   : > { %v5495_v25 = vpack.c.bf16 %v5433_v16, %v5433_v16  ;;  %v5648_v28 = vmax.f32 %v5646_v10, %v5647_v17  ;;  %v2669_v29 = vadd.f32 %v9089_v34, %v2668_v26  ;;  %v7633_v30 = vpop.f32.mrb[90].mxu0 }
 0x1b4   : > { %v5863_v35 = vmax.f32 %v5862_v23, %v4002_v22  ;;  %v2680_v36 = vadd.f32 %v9089_v34, %v7633_v30  ;;  %v2671_v37 = vpop.f32.mrb[91].mxu0  ;;  %v4005_v45 = vmax.f32 %v2677_v24, 0.0  ;;  %v8344_v30 = vld [vmem:[%s8646_s17 + $0x338] sm:$0xff]  }
 0x1b5   : > { %v5528_v40 = vunpack.c.l.b16 %v5495_v25  ;;  %v5649_v41 = vrot.slane %v5648_v28, 2  ;;  %v4003_v42 = vmax.f32 %v2669_v29, 0.0  ;;  %v2672_v62 = vadd.f32 %v9089_v34, %v2671_v37  ;;  %v8391_v37 = vld [vmem:[%s10708_s3 + $0x40] sm:$0xff]  }
 0x1b6   : > { %v4006_v46 = vmax.f32 %v2680_v36, 0.0  ;;  %7739 = vmatmul.mubr.msk.bf16.gmra.mrb[196].mxu0 %vm1681_vm0, %v8336_v27  ;;  %v8346_v36 = vld [vmem:[%s8646_s17 + $0x340] sm:$0xff]   ;;  %7943 = vmatpush3.bf16.msra.mxu1 %v8391_v37 }
 0x1b7   : > { %v5650_v47 = vmax.f32 %v5648_v28, %v5649_v41  ;;  %v5864_v53 = vmax.f32 %v5863_v35, %v4003_v42  ;;  %v4004_v48 = vmax.f32 %v2672_v62, 0.0  ;;  %7742 = vmatprep.mubr.msk.bf16.mxu0 %vm1681_vm0, %v8338_v32  ;;  %v9135_v8 = vsel %vm4540_vm1, %v5528_v40, %v5527_v39  ;;  %7944 = vmatprep.subr.bf16.mxu1 %v10711_v60 }
 0x1b8   : > { %v6081_v51 = vmax.f32 %v4005_v45, %v4006_v46  ;;  %v6078_v28 = vmax.f32 %v6076_v57, %v6077_v13  ;;  %v5932_v40 = vpack.c.bf16 %v5861_v18, %v5861_v18  ;;  %v6295_v41 = vmax.f32 %v8988_v31, %v6294_v20 }
 0x1b9   : > { %v5651_v52 = vrot.slane %v5650_v47, 1  ;;  %v5865_v54 = vmax.f32 %v5864_v53, %v4004_v48  ;;  %v7636_v55 = vpop.f32.mrb[92].mxu0 }
 0x1ba   : > { %v2684_v58 = vpop.f32.mrb[93].mxu0  ;;  %v2693_v5 = vadd.f32 %v9089_v34, %v7636_v55  ;;  %v6079_v53 = vrot.slane %v6078_v28, 1  ;;  %v6296_v55 = vrot.slane %v6295_v41, 2 }
 0x1bb   : > { %v5652_v61 = vmax.f32 %v5650_v47, %v5651_v52  ;;  %v5866_v19 = vrot.slane %v5865_v54, 4  ;;  %v2685_v0 = vadd.f32 %v9089_v34, %v2684_v58  ;;  %v7637_v1 = vpop.f32.mrb[94].mxu0 }
 0x1bc   : > { %v2687_v6 = vpop.f32.mrb[95].mxu0  ;;  %v2696_v22 = vadd.f32 %v9089_v34, %v7637_v1  ;;  %v4009_v26 = vmax.f32 %v2693_v5, 0.0 }
 0x1bd   : > { %v5714_v7 = vpack.c.bf16 %v5652_v61, %v5652_v61  ;;  %v5867_v9 = vmax.f32 %v5865_v54, %v5866_v19  ;;  %v4007_v10 = vmax.f32 %v2685_v0, 0.0  ;;  %v2688_v3 = vadd.f32 %v9089_v34, %v2687_v6 }
 0x1be   : > { %7743 = vmatmul.mubr.msk.bf16.gmra.mrb[200].mxu0 %vm1681_vm0, %v8340_v59  ;;  %v4010_v42 = vmax.f32 %v2696_v22, 0.0  ;;  %v5965_v54 = vunpack.c.l.b16 %v5932_v40  ;;  %v6080_v19 = vmax.f32 %v6078_v28, %v6079_v53 }
 0x1bf   : > { %v5747_v12 = vunpack.c.l.b16 %v5714_v7  ;;  %v5868_v15 = vrot.slane %v5867_v9, 2  ;;  %v6082_v16 = vmax.f32 %v6081_v51, %v4007_v10  ;;  %v4008_v17 = vmax.f32 %v2688_v3, 0.0  ;;  %7746 = vmatprep.mubr.msk.bf16.mxu0 %vm1681_vm0, %v8342_v2  ;;  %v8348_v2 = vld [vmem:[%s8646_s17 + $0x348] sm:$0xff]   ;;  %v8350_v10 = vld [vmem:[%s8646_s17 + $0x350] sm:$0xff]  }
 0x1c0   : > { %v6297_v3 = vmax.f32 %v6295_v41, %v6296_v55 }
 0x1c1   : > { %v9149_v23 = vsel %vm4540_vm1, %v5747_v12, %v5746_v11  ;;  %v5869_v24 = vmax.f32 %v5867_v9, %v5868_v15  ;;  %v6083_v27 = vmax.f32 %v6082_v16, %v4008_v17  ;;  %v7640_v25 = vpop.f32.mrb[96].mxu0  ;;  %v6151_v17 = vpack.c.bf16 %v6080_v19, %v6080_v19 }
 0x1c2   : > { %v2700_v29 = vpop.f32.mrb[97].mxu0  ;;  %v2709_v62 = vadd.f32 %v9089_v34, %v7640_v25 }
 0x1c3   : > { %v5870_v32 = vrot.slane %v5869_v24, 1  ;;  %v6084_v39 = vmax.f32 %v6083_v27, %v4009_v26  ;;  %v2701_v33 = vadd.f32 %v9089_v34, %v2700_v29  ;;  %v7641_v35 = vpop.f32.mrb[98].mxu0  ;;  %v6298_v27 = vrot.slane %v6297_v3, 1 }
 0x1c4   : > { %v2703_v43 = vpop.f32.mrb[99].mxu0  ;;  %v2712_v48 = vadd.f32 %v9089_v34, %v7641_v35  ;;  %v4013_v58 = vmax.f32 %v2709_v62, 0.0 }
 0x1c5   : > { %v5871_v44 = vmax.f32 %v5869_v24, %v5870_v32  ;;  %v6085_v45 = vrot.slane %v6084_v39, 4  ;;  %v4011_v46 = vmax.f32 %v2701_v33, 0.0  ;;  %v2704_v47 = vadd.f32 %v9089_v34, %v2703_v43  ;;  %v8354_v43 = vld [vmem:[%s8646_s17 + $0x360] sm:$0xff]  }
 0x1c6   : > { %7747 = vmatmul.mubr.msk.bf16.gmra.mrb[204].mxu0 %vm1681_vm0, %v8344_v30  ;;  %v4014_v0 = vmax.f32 %v2712_v48, 0.0 }
 0x1c7   : > { %v5933_v50 = vpack.c.bf16 %v5871_v44, %v5871_v44  ;;  %v6086_v31 = vmax.f32 %v6084_v39, %v6085_v45  ;;  %v6300_v51 = vmax.f32 %v4010_v42, %v4011_v46  ;;  %v4012_v52 = vmax.f32 %v2704_v47, 0.0  ;;  %7750 = vmatprep.mubr.msk.bf16.mxu0 %vm1681_vm0, %v8346_v36  ;;  %v8352_v36 = vld [vmem:[%s8646_s17 + $0x358] sm:$0xff]  }
 0x1c8   : > { %v6184_v39 = vunpack.c.l.b16 %v6151_v17  ;;  %v6299_v44 = vmax.f32 %v6297_v3, %v6298_v27  ;;  %v8358_v3 = vld [vmem:[%s8646_s17 + $0x370] sm:$0xff]  }
 0x1c9   : > { %v5966_v56 = vunpack.c.l.b16 %v5933_v50  ;;  %v6087_v57 = vrot.slane %v6086_v31, 2  ;;  %v6301_v59 = vmax.f32 %v6300_v51, %v4012_v52  ;;  %v7644_v61 = vpop.f32.mrb[100].mxu0 }
 0x1ca   : > { %v2716_v1 = vpop.f32.mrb[101].mxu0  ;;  %v2725_v15 = vadd.f32 %v9089_v34, %v7644_v61  ;;  %v6370_v55 = vpack.c.bf16 %v6299_v44, %v6299_v44  ;;  %v8360_v44 = vld [vmem:[%s8646_s17 + $0x378] sm:$0xff]  }
 0x1cb   : > { %v9166_v4 = vsel %vm4540_vm1, %v5966_v56, %v5965_v54  ;;  %v6088_v5 = vmax.f32 %v6086_v31, %v6087_v57  ;;  %v6302_v6 = vmax.f32 %v6301_v59, %v4013_v58  ;;  %v2717_v7 = vadd.f32 %v9089_v34, %v2716_v1  ;;  %v7645_v9 = vpop.f32.mrb[102].mxu0 }
 0x1cc   : > { %v2719_v11 = vpop.f32.mrb[103].mxu0  ;;  %v2728_v18 = vadd.f32 %v9089_v34, %v7645_v9  ;;  %v4017_v29 = vmax.f32 %v2725_v15, 0.0 }
 0x1cd   : > { %v6089_v13 = vrot.slane %v6088_v5, 1  ;;  %v6303_v12 = vmax.f32 %v6302_v6, %v4014_v0  ;;  %v2720_v16 = vadd.f32 %v9089_v34, %v2719_v11  ;;  %v4015_v24 = vmax.f32 %v2717_v7, 0.0  ;;  %v9190_v11 = vpop.f32.mrb[0].mxu1 }
 0x1ce   : > { %7751 = vmatmul.mubr.msk.bf16.gmra.mrb[208].mxu0 %vm1681_vm0, %v8348_v2  ;;  %v4018_v33 = vmax.f32 %v2728_v18, 0.0  ;;  %v9193_v17 = vpop.f32.mrb[1].mxu1 }
 0x1cf   : > { %v6090_v20 = vmax.f32 %v6088_v5, %v6089_v13  ;;  %v6304_v22 = vrot.slane %v6303_v12, 4  ;;  %v4016_v26 = vmax.f32 %v2720_v16, 0.0  ;;  %7754 = vmatprep.mubr.msk.bf16.mxu0 %vm1681_vm0, %v8350_v10  ;;  %v8356_v5 = vld [vmem:[%s8646_s17 + $0x368] sm:$0xff]   ;;  %v6403_v13 = vunpack.c.l.b16 %v6370_v55 }
 0x1d1   : > { %v6152_v25 = vpack.c.bf16 %v6090_v20, %v6090_v20  ;;  %v6305_v28 = vmax.f32 %v6303_v12, %v6304_v22  ;;  %v4335_v30 = vmax.f32 %v4015_v24, %v4016_v26  ;;  %v7648_v32 = vpop.f32.mrb[104].mxu0  ;;  %v9196_v26 = vpop.f32.mrb[2].mxu1 }
 0x1d2   : > { %v2732_v35 = vpop.f32.mrb[105].mxu0  ;;  %v2741_v45 = vadd.f32 %v9089_v34, %v7648_v32 }
 0x1d3   : > { %v6185_v37 = vunpack.c.l.b16 %v6152_v25  ;;  %v6306_v40 = vrot.slane %v6305_v28, 2  ;;  %v4336_v41 = vmax.f32 %v4335_v30, %v4017_v29  ;;  %v2733_v42 = vadd.f32 %v9089_v34, %v2732_v35  ;;  %v7649_v62 = vpop.f32.mrb[106].mxu0 }
 0x1d4   : > { %v2735_v46 = vpop.f32.mrb[107].mxu0  ;;  %v2744_v31 = vadd.f32 %v9089_v34, %v7649_v62  ;;  %v4021_v56 = vmax.f32 %v2741_v45, 0.0 }
 0x1d5   : > { %v9180_v47 = vsel %vm4540_vm1, %v6185_v37, %v6184_v39  ;;  %v6307_v53 = vmax.f32 %v6305_v28, %v6306_v40  ;;  %v4019_v48 = vmax.f32 %v2733_v42, 0.0  ;;  %v4337_v50 = vmax.f32 %v4336_v41, %v4018_v33  ;;  %v9199_v28 = vpop.f32.mrb[3].mxu1  ;;  %v8400_v42 = vld [vmem:[%s10708_s3 + $0x48] sm:$0xff]  }
 0x1d6   : > { %v2736_v51 = vadd.f32 %v9089_v34, %v2735_v46  ;;  %7755 = vmatmul.mubr.msk.bf16.gmra.mrb[212].mxu0 %vm1681_vm0, %v8352_v36  ;;  %v4022_v19 = vmax.f32 %v2744_v31, 0.0  ;;  %v7824_v33 = vpop.f32.mrb[4].mxu1  ;;  %v8362_v31 = vld [vmem:[%s8646_s17 + $0x380] sm:$0xff]   ;;  %7945 = vmatpush3.bf16.msra.mxu1 %v8400_v42 }
 0x1d7   : > { %v6308_v52 = vrot.slane %v6307_v53, 1  ;;  %v4338_v54 = vmax.f32 %v4337_v50, %v4019_v48  ;;  %7758 = vmatprep.mubr.msk.bf16.mxu0 %vm1681_vm0, %v8354_v43  ;;  %v3436_v36 = vpop.f32.mrb[5].mxu1  ;;  %7946 = vmatprep.subr.bf16.mxu1 %v10711_v60 }
 0x1d8   : > { %v4020_v57 = vmax.f32 %v2736_v51, 0.0  ;;  %v7825_v62 = vpop.f32.mrb[6].mxu1 }
 0x1d9   : > { %v6309_v58 = vmax.f32 %v6307_v53, %v6308_v52  ;;  %v4339_v59 = vrot.slane %v4338_v54, 4  ;;  %v7652_v61 = vpop.f32.mrb[108].mxu0  ;;  %v3439_v45 = vpop.f32.mrb[7].mxu1 }
 0x1da   : > { %v4439_v0 = vmax.f32 %v4020_v57, %v4021_v56  ;;  %v2757_v1 = vadd.f32 %v9089_v34, %v7652_v61  ;;  %v2748_v2 = vpop.f32.mrb[109].mxu0 }
 0x1db   : > { %v6371_v6 = vpack.c.bf16 %v6309_v58, %v6309_v58  ;;  %v4340_v7 = vmax.f32 %v4338_v54, %v4339_v59  ;;  %v2749_v9 = vadd.f32 %v9089_v34, %v2748_v2  ;;  %v7653_v10 = vpop.f32.mrb[110].mxu0  ;;  %v3437_v59 = vadd.f32 %v9089_v34, %v3436_v36  ;;  %v7828_v2 = vpop.f32.mrb[8].mxu1 }
 0x1dc   : > { %v4440_v12 = vmax.f32 %v4439_v0, %v4022_v19  ;;  %v2760_v15 = vadd.f32 %v9089_v34, %v7653_v10  ;;  %v2751_v16 = vpop.f32.mrb[111].mxu0  ;;  %v4025_v27 = vmax.f32 %v2757_v1, 0.0 }
 0x1dd   : > { %v6404_v18 = vunpack.c.l.b16 %v6371_v6  ;;  %v4341_v20 = vrot.slane %v4340_v7, 2  ;;  %v4023_v22 = vmax.f32 %v2749_v9, 0.0  ;;  %v2752_v24 = vadd.f32 %v9089_v34, %v2751_v16  ;;  %v8364_v16 = vld [vmem:[%s8646_s17 + $0x388] sm:$0xff]  }
 0x1de   : > { %v4026_v25 = vmax.f32 %v2760_v15, 0.0  ;;  %7759 = vmatmul.mubr.msk.bf16.gmra.mrb[216].mxu0 %vm1681_vm0, %v8356_v5  ;;  %v3440_v6 = vadd.f32 %v9089_v34, %v3439_v45 }
 0x1df   : > { %v4342_v29 = vmax.f32 %v4340_v7, %v4341_v20  ;;  %v4441_v30 = vmax.f32 %v4440_v12, %v4023_v22  ;;  %v4024_v32 = vmax.f32 %v2752_v24, 0.0  ;;  %7762 = vmatprep.mubr.msk.bf16.mxu0 %vm1681_vm0, %v8358_v3  ;;  %v9203_v39 = vsel %vm4540_vm1, %v6404_v18, %v6403_v13  ;;  %v3452_v7 = vpop.f32.mrb[9].mxu1 }
 0x1e0   : > { %v4777_v35 = vmax.f32 %v4025_v27, %v4026_v25  ;;  %v3445_v12 = vadd.f32 %v9089_v34, %v7824_v33  ;;  %v4195_v18 = vmax.f32 %v3437_v59, 0.0  ;;  %v3448_v20 = vadd.f32 %v9089_v34, %v7825_v62 }
 0x1e1   : > { %v4343_v37 = vrot.slane %v4342_v29, 1  ;;  %v4442_v40 = vmax.f32 %v4441_v30, %v4024_v32  ;;  %v7656_v41 = vpop.f32.mrb[112].mxu0  ;;  %v8366_v30 = vld [vmem:[%s8646_s17 + $0x390] sm:$0xff]   ;;  %v7829_v32 = vpop.f32.mrb[10].mxu1  ;;  %v4196_v33 = vmax.f32 %v3440_v6, 0.0 }
 0x1e2   : > { %v2764_v43 = vpop.f32.mrb[113].mxu0  ;;  %v2773_v51 = vadd.f32 %v9089_v34, %v7656_v41 }
 0x1e3   : > { %v4344_v46 = vmax.f32 %v4342_v29, %v4343_v37  ;;  %v4443_v53 = vrot.slane %v4442_v40, 4  ;;  %v2765_v48 = vadd.f32 %v9089_v34, %v2764_v43  ;;  %v7657_v50 = vpop.f32.mrb[114].mxu0  ;;  %v4197_v37 = vmax.f32 %v3445_v12, 0.0 }
 0x1e4   : > { %v2767_v52 = vpop.f32.mrb[115].mxu0  ;;  %v2776_v58 = vadd.f32 %v9089_v34, %v7657_v50  ;;  %v4029_v5 = vmax.f32 %v2773_v51, 0.0  ;;  %v5683_v45 = vmax.f32 %v4195_v18, %v4196_v33 }
 0x1e5   : > { %v4397_v54 = vpack.c.bf16 %v4344_v46, %v4344_v46  ;;  %v4444_v55 = vmax.f32 %v4442_v40, %v4443_v53  ;;  %v4027_v56 = vmax.f32 %v2765_v48, 0.0  ;;  %v2768_v57 = vadd.f32 %v9089_v34, %v2767_v52  ;;  %v3455_v40 = vpop.f32.mrb[11].mxu1 }
 0x1e6   : > { %7763 = vmatmul.mubr.msk.bf16.gmra.mrb[220].mxu0 %vm1681_vm0, %v8360_v44  ;;  %v4030_v24 = vmax.f32 %v2776_v58, 0.0  ;;  %v4198_v44 = vmax.f32 %v3448_v20, 0.0  ;;  %v3461_v46 = vadd.f32 %v9089_v34, %v7828_v2  ;;  %v3453_v53 = vadd.f32 %v9089_v34, %v3452_v7  ;;  %v7832_v52 = vpop.f32.mrb[12].mxu1  ;;  %v8368_v7 = vld [vmem:[%s8646_s17 + $0x398] sm:$0xff]  }
 0x1e7   : > { %v4654_v61 = vunpack.c.l.b16 %v4397_v54  ;;  %v4445_v19 = vrot.slane %v4444_v55, 2  ;;  %v4778_v0 = vmax.f32 %v4777_v35, %v4027_v56  ;;  %v4028_v1 = vmax.f32 %v2768_v57, 0.0  ;;  %7766 = vmatprep.mubr.msk.bf16.mxu0 %vm1681_vm0, %v8362_v31  ;;  %v3468_v58 = vpop.f32.mrb[13].mxu1 }
 0x1e8   : > { %v4199_v56 = vmax.f32 %v3453_v53, 0.0  ;;  %v3464_v57 = vadd.f32 %v9089_v34, %v7829_v32  ;;  %v7833_v2 = vpop.f32.mrb[14].mxu1 }
 0x1e9   : > { %v9221_v9 = vsel %vm4542_vm2, %v4654_v61, %v9039_v14  ;;  %v4446_v10 = vmax.f32 %v4444_v55, %v4445_v19  ;;  %v4779_v3 = vmax.f32 %v4778_v0, %v4028_v1  ;;  %v7660_v13 = vpop.f32.mrb[116].mxu0  ;;  %v5684_v55 = vmax.f32 %v5683_v45, %v4197_v37  ;;  %v3471_v12 = vpop.f32.mrb[15].mxu1 }
 0x1ea   : > { %v2780_v15 = vpop.f32.mrb[117].mxu0  ;;  %v2789_v14 = vadd.f32 %v9089_v34, %v7660_v13  ;;  %v3456_v1 = vadd.f32 %v9089_v34, %v3455_v40  ;;  %v3469_v13 = vadd.f32 %v9089_v34, %v3468_v58  ;;  %v3480_v53 = vadd.f32 %v9089_v34, %v7833_v2 }
 0x1eb   : > { %v4447_v22 = vrot.slane %v4446_v10, 1  ;;  %v4780_v27 = vmax.f32 %v4779_v3, %v4029_v5  ;;  %v2781_v25 = vadd.f32 %v9089_v34, %v2780_v15  ;;  %v7661_v29 = vpop.f32.mrb[118].mxu0  ;;  %v5685_v3 = vmax.f32 %v5684_v55, %v4198_v44  ;;  %v9253_v44 = vpop.f32.mrb[16].mxu1 }
 0x1ec   : > { %v2792_v35 = vadd.f32 %v9089_v34, %v7661_v29  ;;  %v2783_v36 = vpop.f32.mrb[119].mxu0  ;;  %v4033_v54 = vmax.f32 %v2789_v14, 0.0  ;;  %v4200_v32 = vmax.f32 %v3456_v1, 0.0  ;;  %v4203_v40 = vmax.f32 %v3469_v13, 0.0 }
 0x1ed   : > { %v4448_v41 = vmax.f32 %v4446_v10, %v4447_v22  ;;  %v4781_v42 = vrot.slane %v4780_v27, 4  ;;  %v4031_v43 = vmax.f32 %v2781_v25, 0.0  ;;  %v2784_v62 = vadd.f32 %v9089_v34, %v2783_v36 }
 0x1ee   : > { %7767 = vmatmul.mubr.msk.bf16.gmra.mrb[224].mxu0 %vm1681_vm0, %v8364_v16  ;;  %v4034_v5 = vmax.f32 %v2792_v35, 0.0  ;;  %v4201_v10 = vmax.f32 %v3461_v46, 0.0  ;;  %v9246_v29 = vmax.f32 %v5685_v3, %v4199_v56 }
 0x1ef   : > { %v4501_v48 = vpack.c.bf16 %v4448_v41, %v4448_v41  ;;  %v4782_v50 = vmax.f32 %v4780_v27, %v4781_v42  ;;  %v4996_v31 = vmax.f32 %v4030_v24, %v4031_v43  ;;  %v4032_v51 = vmax.f32 %v2784_v62, 0.0  ;;  %7770 = vmatprep.mubr.msk.bf16.mxu0 %vm1681_vm0, %v8366_v30  ;;  %v8370_v24 = vld [vmem:[%s8646_s17 + $0x3a0] sm:$0xff]  }
 0x1f0   : > { %v4202_v30 = vmax.f32 %v3464_v57, 0.0  ;;  %v5902_v33 = vmax.f32 %v4200_v32, %v4201_v10  ;;  %v3477_v62 = vadd.f32 %v9089_v34, %v7832_v52  ;;  %v4206_v52 = vmax.f32 %v3480_v53, 0.0  ;;  %v8374_v10 = vld [vmem:[%s8646_s17 + $0x3b0] sm:$0xff]  }
 0x1f1   : > { %v4534_v59 = vunpack.c.l.b16 %v4501_v48  ;;  %v4783_v61 = vrot.slane %v4782_v50, 2  ;;  %v4997_v19 = vmax.f32 %v4996_v31, %v4032_v51  ;;  %v7664_v0 = vpop.f32.mrb[120].mxu0  ;;  %v3484_v48 = vpop.f32.mrb[17].mxu1 }
 0x1f2   : > { %v2796_v6 = vpop.f32.mrb[121].mxu0  ;;  %v2805_v27 = vadd.f32 %v9089_v34, %v7664_v0  ;;  %v5903_v46 = vmax.f32 %v5902_v33, %v4202_v30  ;;  %v4205_v55 = vmax.f32 %v3477_v62, 0.0  ;;  %v9256_v56 = vpop.f32.mrb[18].mxu1 }
 0x1f3   : > { %v9241_v15 = vsel %vm4542_vm2, %v4534_v59, %v9062_v63  ;;  %v4784_v16 = vmax.f32 %v4782_v50, %v4783_v61  ;;  %v4998_v18 = vmax.f32 %v4997_v19, %v4033_v54  ;;  %v2797_v20 = vadd.f32 %v9089_v34, %v2796_v6  ;;  %v7665_v22 = vpop.f32.mrb[122].mxu0  ;;  %v8372_v59 = vld [vmem:[%s8646_s17 + $0x3a8] sm:$0xff]   ;;  %v9260_v0 = vpop.f32.mrb[19].mxu1 }
 0x1f4   : > { %10722 = vst [vmem:[#allocation5_spill] sm:$0xff] %v9241_v15  ;;  %v2799_v25 = vpop.f32.mrb[123].mxu0  ;;  %v2808_v63 = vadd.f32 %v9089_v34, %v7665_v22  ;;  %v4037_v45 = vmax.f32 %v2805_v27, 0.0  ;;  %v5904_v61 = vmax.f32 %v5903_v46, %v4203_v40  ;;  %v3472_v19 = vadd.f32 %v9089_v34, %v3471_v12  ;;  %v9272_v27 = vpop.f32.mrb[20].mxu1 }
 0x1f5   : > { %v4785_v14 = vrot.slane %v4784_v16, 1  ;;  %v4999_v35 = vmax.f32 %v4998_v18, %v4034_v5  ;;  %v2800_v36 = vadd.f32 %v9089_v34, %v2799_v25  ;;  %v4035_v37 = vmax.f32 %v2797_v20, 0.0 }
 0x1f6   : > { %7771 = vmatmul.mubr.msk.bf16.gmra.mrb[228].mxu0 %vm1681_vm0, %v8368_v7  ;;  %v4038_v57 = vmax.f32 %v2808_v63, 0.0  ;;  %v4204_v32 = vmax.f32 %v3472_v19, 0.0 }
 0x1f7   : > { %v4786_v41 = vmax.f32 %v4784_v16, %v4785_v14  ;;  %v5000_v42 = vrot.slane %v4999_v35, 4  ;;  %v4036_v43 = vmax.f32 %v2800_v36, 0.0  ;;  %7774 = vmatprep.mubr.msk.bf16.mxu0 %vm1681_vm0, %v8370_v24  ;;  %v6121_v16 = vmax.f32 %v4205_v55, %v4206_v52  ;;  %v8403_v24 = vld [vmem:[%s10708_s3 + $0x50] sm:$0xff]   ;;  %v3500_v14 = vpop.f32.mrb[21].mxu1 }
 0x1f8   : > { %7947 = vmatpush3.bf16.msra.mxu1 %v8403_v24  ;;  %v3485_v36 = vadd.f32 %v9089_v34, %v3484_v48  ;;  %v9281_v40 = vmax.f32 %v5904_v61, %v4204_v32  ;;  %v8378_v61 = vld [vmem:[%s8646_s17 + $0x3c0] sm:$0xff]   ;;  %v3496_v24 = vadd.f32 %v9089_v34, %v9256_v56 }
 0x1f9   : > { %v4839_v50 = vpack.c.bf16 %v4786_v41, %v4786_v41  ;;  %v5001_v31 = vmax.f32 %v4999_v35, %v5000_v42  ;;  %v5215_v51 = vmax.f32 %v4035_v37, %v4036_v43  ;;  %v7668_v54 = vpop.f32.mrb[124].mxu0  ;;  %v9279_v37 = vpop.f32.mrb[22].mxu1  ;;  %7948 = vmatprep.subr.bf16.mxu1 %v10711_v60 }
 0x1fa   : > { %v2812_v58 = vpop.f32.mrb[125].mxu0  ;;  %v2821_v3 = vadd.f32 %v9089_v34, %v7668_v54  ;;  %v9283_v41 = vpop.f32.mrb[23].mxu1 }
 0x1fb   : > { %v4872_v1 = vunpack.c.l.b16 %v4839_v50  ;;  %v5002_v2 = vrot.slane %v5001_v31, 2  ;;  %v5216_v5 = vmax.f32 %v5215_v51, %v4037_v45  ;;  %v2813_v6 = vadd.f32 %v9089_v34, %v2812_v58  ;;  %v7669_v7 = vpop.f32.mrb[126].mxu0  ;;  %v9286_v46 = vpop.f32.mrb[24].mxu1  ;;  %v8376_v51 = vld [vmem:[%s8646_s17 + $0x3b8] sm:$0xff]  }
 0x1fc   : > { %v2815_v13 = vpop.f32.mrb[127].mxu0  ;;  %v2824_v25 = vadd.f32 %v9089_v34, %v7669_v7  ;;  %v4041_v63 = vmax.f32 %v2821_v3, 0.0  ;;  %v4207_v45 = vmax.f32 %v3485_v36, 0.0  ;;  %v9290_v54 = vpop.f32.mrb[25].mxu1 }
 0x1fd   : > { %v9267_v18 = vsel %vm4542_vm2, %v4872_v1, %v9079_v38  ;;  %v5003_v20 = vmax.f32 %v5001_v31, %v5002_v2  ;;  %v4039_v22 = vmax.f32 %v2813_v6, 0.0  ;;  %v5217_v12 = vmax.f32 %v5216_v5, %v4038_v57  ;;  %v9294_v19 = vpop.f32.mrb[26].mxu1 }
 0x1fe   : > { %10723 = vst [vmem:[#allocation6_spill] sm:$0xff] %v9267_v18  ;;  %v2816_v30 = vadd.f32 %v9089_v34, %v2815_v13  ;;  %7775 = vmatmul.mubr.msk.bf16.gmra.mrb[232].mxu0 %vm1681_vm0, %v8372_v59  ;;  %v4042_v53 = vmax.f32 %v2824_v25, 0.0  ;;  %v6122_v52 = vmax.f32 %v6121_v16, %v4207_v45  ;;  %v3493_v6 = vadd.f32 %v9089_v34, %v9253_v44  ;;  %v9299_v7 = vpop.f32.mrb[27].mxu1 }
 0x1ff   : > { %v5004_v35 = vrot.slane %v5003_v20, 1  ;;  %v5218_v38 = vmax.f32 %v5217_v12, %v4039_v22  ;;  %7778 = vmatprep.mubr.msk.bf16.mxu0 %vm1681_vm0, %v8374_v10  ;;  %v9302_v22 = vpop.f32.mrb[28].mxu1  ;;  %v3488_v25 = vadd.f32 %v9089_v34, %v9260_v0  ;;  %v3501_v45 = vadd.f32 %v9089_v34, %v3500_v14 }
 0x200   : > { %v4040_v33 = vmax.f32 %v2816_v30, 0.0  ;;  %v9309_v44 = vpop.f32.mrb[29].mxu1 }
 0x201   : > { %v5005_v42 = vmax.f32 %v5003_v20, %v5004_v35  ;;  %v5219_v43 = vrot.slane %v5218_v38, 4  ;;  %v7672_v62 = vpop.f32.mrb[128].mxu0  ;;  %v9316_v36 = vpop.f32.mrb[30].mxu1  ;;  %v4208_v56 = vmax.f32 %v3488_v25, 0.0 }
 0x202   : > { %v5434_v48 = vmax.f32 %v4040_v33, %v4041_v63  ;;  %v2837_v50 = vadd.f32 %v9089_v34, %v7672_v62  ;;  %v2828_v31 = vpop.f32.mrb[129].mxu0  ;;  %v4209_v33 = vmax.f32 %v3493_v6, 0.0 }
 0x203   : > { %v5058_v55 = vpack.c.bf16 %v5005_v42, %v5005_v42  ;;  %v5220_v57 = vmax.f32 %v5218_v38, %v5219_v43  ;;  %v2829_v58 = vadd.f32 %v9089_v34, %v2828_v31  ;;  %v7673_v59 = vpop.f32.mrb[130].mxu0  ;;  %v9318_v42 = vpop.f32.mrb[31].mxu1  ;;  %v4210_v31 = vmax.f32 %v3496_v24, 0.0 }
 0x204   : > { %v5435_v1 = vmax.f32 %v5434_v48, %v4042_v53  ;;  %v2840_v2 = vadd.f32 %v9089_v34, %v7673_v59  ;;  %v2831_v5 = vpop.f32.mrb[131].mxu0  ;;  %v4045_v12 = vmax.f32 %v2837_v50, 0.0  ;;  %v9321_v53 = vpop.f32.mrb[32].mxu1  ;;  %v8380_v50 = vld [vmem:[%s8646_s17 + $0x3c8] sm:$0xff]  }
 0x205   : > { %v5091_v10 = vunpack.c.l.b16 %v5058_v55  ;;  %v5221_v3 = vrot.slane %v5220_v57, 2  ;;  %v4043_v13 = vmax.f32 %v2829_v58, 0.0  ;;  %v2832_v20 = vadd.f32 %v9089_v34, %v2831_v5 }
 0x206   : > { %v4046_v16 = vmax.f32 %v2840_v2, 0.0  ;;  %7779 = vmatmul.mubr.msk.bf16.gmra.mrb[236].mxu0 %vm1681_vm0, %v8376_v51  ;;  %v9324_v51 = vpop.f32.mrb[33].mxu1 }
 0x207   : > { %v5222_v30 = vmax.f32 %v5220_v57, %v5221_v3  ;;  %v5436_v32 = vmax.f32 %v5435_v1, %v4043_v13  ;;  %v4044_v35 = vmax.f32 %v2832_v20, 0.0  ;;  %7782 = vmatprep.mubr.msk.bf16.mxu0 %vm1681_vm0, %v8378_v61  ;;  %v9314_v38 = vsel %vm4542_vm2, %v5091_v10, %v9102_v21  ;;  %v8382_v61 = vld [vmem:[%s8646_s17 + $0x3d0] sm:$0xff]   ;;  %v9328_v2 = vpop.f32.mrb[34].mxu1  ;;  %v9338_v20 = vld [vmem:[%s10707_s2] ss:$0 sm:$0xff] }
 0x208   : > { %10724 = vst [vmem:[#allocation7_spill] sm:$0xff] %v9314_v38  ;;  %v5653_v63 = vmax.f32 %v4045_v12, %v4046_v16  ;;  %v6123_v21 = vmax.f32 %v6122_v52, %v4208_v56  ;;  %v4211_v1 = vmax.f32 %v3501_v45, 0.0  ;;  %v9333_v10 = vpop.f32.mrb[35].mxu1 }
 0x209   : > { %v5223_v0 = vrot.slane %v5222_v30, 1  ;;  %v5437_v43 = vmax.f32 %v5436_v32, %v4044_v35  ;;  %v7676_v62 = vpop.f32.mrb[132].mxu0  ;;  %v9341_v16 = vpop.f32.mrb[36].mxu1 }
 0x20a   : > { %v2844_v48 = vpop.f32.mrb[133].mxu0  ;;  %v2853_v5 = vadd.f32 %v9089_v34, %v7676_v62  ;;  %v9331_v6 = vmax.f32 %v6123_v21, %v4209_v33  ;;  %v6340_v24 = vmax.f32 %v4210_v31, %v4211_v1  ;;  %v9346_v25 = vpop.f32.mrb[37].mxu1 }
 0x20b   : > { %v5224_v55 = vmax.f32 %v5222_v30, %v5223_v0  ;;  %v5438_v57 = vrot.slane %v5437_v43, 4  ;;  %v2845_v58 = vadd.f32 %v9089_v34, %v2844_v48  ;;  %v7677_v59 = vpop.f32.mrb[134].mxu0  ;;  %v3509_v34 = vadd.f32 %v9338_v20, %v9272_v27  ;;  %v9349_v56 = vpop.f32.mrb[38].mxu1 }
 0x20c   : > { %v2847_v14 = vpop.f32.mrb[135].mxu0  ;;  %v2856_v0 = vadd.f32 %v9338_v20, %v7677_v59  ;;  %v3504_v27 = vadd.f32 %v9338_v20, %v9283_v41  ;;  %v9356_v62 = vpop.f32.mrb[39].mxu1  ;;  %v4049_v48 = vmax.f32 %v2853_v5, 0.0  ;;  %v8386_v5 = vld [vmem:[%s8646_s17 + $0x3e0] sm:$0xff]  }
 0x20d   : > { %v5277_v3 = vpack.c.bf16 %v5224_v55, %v5224_v55  ;;  %v5439_v52 = vmax.f32 %v5437_v43, %v5438_v57  ;;  %v4047_v13 = vmax.f32 %v2845_v58, 0.0  ;;  %v2848_v12 = vadd.f32 %v9338_v20, %v2847_v14  ;;  %v9362_v21 = vpop.f32.mrb[40].mxu1  ;;  %v8384_v57 = vld [vmem:[%s8646_s17 + $0x3d8] sm:$0xff]  }
 0x20e   : > { %7783 = vmatmul.mubr.msk.bf16.gmra.mrb[240].mxu0 %vm1681_vm0, %v8380_v50  ;;  %v3512_v43 = vadd.f32 %v9338_v20, %v9279_v37  ;;  %v9367_v37 = vadd.f32 %v9338_v20, %v9190_v11  ;;  %v4213_v41 = vmax.f32 %v3509_v34, 0.0  ;;  %v4212_v58 = vmax.f32 %v3504_v27, 0.0  ;;  %v9369_v59 = vpop.f32.mrb[41].mxu1 }
 0x20f   : > { %v5310_v30 = vunpack.c.l.b16 %v5277_v3  ;;  %v5440_v32 = vrot.slane %v5439_v52, 2  ;;  %v5654_v35 = vmax.f32 %v5653_v63, %v4047_v13  ;;  %v4048_v33 = vmax.f32 %v2848_v12, 0.0  ;;  %7786 = vmatprep.mubr.msk.bf16.mxu0 %vm1681_vm0, %v8382_v61 }
 0x210   : > { %10726 = vst [vmem:[#allocation9_spill] sm:$0xff] %v9367_v37  ;;  %v5687_v3 = vrot.slane %v9246_v29, 4  ;;  %v4050_v13 = vmax.f32 %v2856_v0, 0.0  ;;  %v4214_v11 = vmax.f32 %v3512_v43, 0.0  ;;  %v9386_v0 = vadd.f32 %v9338_v20, %v9193_v17 }
 0x211   : > { %v9360_v45 = vsel %vm4542_vm2, %v5310_v30, %v9118_v49  ;;  %v5441_v63 = vmax.f32 %v5439_v52, %v5440_v32  ;;  %v5655_v50 = vmax.f32 %v5654_v35, %v4048_v33  ;;  %v7680_v31 = vpop.f32.mrb[136].mxu0  ;;  %v9374_v52 = vpop.f32.mrb[42].mxu1  ;;  %v6341_v32 = vmax.f32 %v6340_v24, %v4212_v58 }
 0x212   : > { %10725 = vst [vmem:[#allocation8_spill] sm:$0xff] %v9360_v45  ;;  %v2860_v55 = vpop.f32.mrb[137].mxu0  ;;  %v2869_v12 = vadd.f32 %v9338_v20, %v7680_v31  ;;  %v9377_v34 = vpop.f32.mrb[43].mxu1  ;;  %10727 = vst [vmem:[#allocation10_spill] sm:$0xff] %v9386_v0  ;;  %v9390_v24 = vadd.f32 %v9338_v20, %v9196_v26  ;;  %v5688_v17 = vmax.f32 %v9246_v29, %v5687_v3 }
 0x213   : > { %v5442_v61 = vrot.slane %v5441_v63, 1  ;;  %v5656_v49 = vmax.f32 %v5655_v50, %v4049_v48  ;;  %v2861_v1 = vadd.f32 %v9338_v20, %v2860_v55  ;;  %v7681_v14 = vpop.f32.mrb[138].mxu0  ;;  %v9380_v50 = vpop.f32.mrb[44].mxu1  ;;  %v6342_v43 = vmax.f32 %v6341_v32, %v4213_v41 }
 0x214   : > { %v2863_v30 = vpop.f32.mrb[139].mxu0  ;;  %v2872_v55 = vadd.f32 %v9338_v20, %v7681_v14  ;;  %10728 = vst [vmem:[#allocation11_spill] sm:$0xff] %v9390_v24  ;;  %v3517_v26 = vadd.f32 %v9338_v20, %v9290_v54  ;;  %v3525_v3 = vadd.f32 %v9338_v20, %v9286_v46  ;;  %v3520_v54 = vadd.f32 %v9338_v20, %v9299_v7 }
 0x215   : > { %v5443_v35 = vmax.f32 %v5441_v63, %v5442_v61  ;;  %v5657_v33 = vrot.slane %v5656_v49, 4  ;;  %v4051_v27 = vmax.f32 %v2861_v1, 0.0  ;;  %v2864_v48 = vadd.f32 %v9338_v20, %v2863_v30  ;;  %v9392_v63 = vpop.f32.mrb[45].mxu1 }
 0x216   : > { %7787 = vmatmul.mubr.msk.bf16.gmra.mrb[244].mxu0 %vm1681_vm0, %v8384_v57  ;;  %v9395_v14 = vpop.f32.mrb[46].mxu1  ;;  %v9399_v30 = vmax.f32 %v6342_v43, %v4214_v11  ;;  %v8388_v57 = vld [vmem:[%s8646_s17 + $0x3e8] sm:$0xff]   ;;  %v5689_v37 = vrot.slane %v5688_v17, 2  ;;  %v5906_v46 = vrot.slane %v9281_v40, 4  ;;  %v4215_v0 = vmax.f32 %v3517_v26, 0.0 }
 0x217   : > { %v5496_v31 = vpack.c.bf16 %v5443_v35, %v5443_v35  ;;  %v5658_v58 = vmax.f32 %v5656_v49, %v5657_v33  ;;  %v5872_v61 = vmax.f32 %v4050_v13, %v4051_v27  ;;  %v4052_v1 = vmax.f32 %v2864_v48, 0.0  ;;  %7790 = vmatprep.mubr.msk.bf16.mxu0 %vm1681_vm0, %v8386_v5  ;;  %v9403_v41 = vpop.f32.mrb[47].mxu1 }
 0x218   : > { %v4053_v13 = vmax.f32 %v2869_v12, 0.0  ;;  %v9405_v5 = vpop.f32.mrb[48].mxu1  ;;  %v4054_v27 = vmax.f32 %v2872_v55, 0.0  ;;  %v3528_v7 = vadd.f32 %v9338_v20, %v9294_v19  ;;  %v4217_v19 = vmax.f32 %v3525_v3, 0.0 }
 0x219   : > { %v5529_v32 = vunpack.c.l.b16 %v5496_v31  ;;  %v5659_v49 = vrot.slane %v5658_v58, 2  ;;  %v5873_v35 = vmax.f32 %v5872_v61, %v4052_v1  ;;  %v7684_v33 = vpop.f32.mrb[140].mxu0  ;;  %v9413_v11 = vpop.f32.mrb[49].mxu1  ;;  %v8389_v1 = vld [vmem:[%s8646_s17 + $0x3f0] sm:$0xff]  }
 0x21a   : > { %v2876_v48 = vpop.f32.mrb[141].mxu0  ;;  %v9421_v60 = vpop.f32.mrb[50].mxu1  ;;  %v4218_v3 = vmax.f32 %v3528_v7, 0.0 }
 0x21b   : > { %v9417_v12 = vsel %vm4542_vm2, %v5529_v32, %v9135_v8  ;;  %v5660_v43 = vmax.f32 %v5658_v58, %v5659_v49  ;;  %v5874_v31 = vmax.f32 %v5873_v35, %v4053_v13  ;;  %v2877_v55 = vadd.f32 %v9338_v20, %v2876_v48  ;;  %v7685_v61 = vpop.f32.mrb[142].mxu0  ;;  %v9426_v45 = vpop.f32.mrb[51].mxu1  ;;  %v8404_v13 = vld [vmem:[%s10708_s3 + $0x58] sm:$0xff]  }
 0x21c   : > { %10729 = vst [vmem:[#allocation12_spill] sm:$0xff] %v9417_v12  ;;  %v2879_v29 = vpop.f32.mrb[143].mxu0  ;;  %v2885_v58 = vadd.f32 %v9338_v20, %v7684_v33  ;;  %v9433_v35 = vpop.f32.mrb[52].mxu1  ;;  %v2888_v26 = vadd.f32 %v9338_v20, %v7685_v61  ;;  %v4216_v12 = vmax.f32 %v3520_v54, 0.0  ;;  %7949 = vmatpush3.bf16.msra.mxu1 %v8404_v13 }
 0x21d   : > { %v5661_v8 = vrot.slane %v5660_v43, 1  ;;  %v5875_v32 = vmax.f32 %v5874_v31, %v4054_v27  ;;  %v2880_v49 = vadd.f32 %v9338_v20, %v2879_v29  ;;  %v4055_v48 = vmax.f32 %v2877_v55, 0.0  ;;  %v9437_v15 = vpop.f32.mrb[53].mxu1 }
 0x21e   : > { %7791 = vmatmul.mubr.msk.bf16.gmra.mrb[248].mxu0 %vm1681_vm0, %v8388_v57  ;;  %10730 = vst [vmem:[#allocation13_spill] sm:$0xff] %v9437_v15  ;;  %v3533_v29 = vadd.f32 %v9338_v20, %v9309_v44  ;;  %v9442_v38 = vpop.f32.mrb[54].mxu1  ;;  %v9444_v55 = vmax.f32 %v5688_v17, %v5689_v37  ;;  %v9447_v57 = vmax.f32 %v9281_v40, %v5906_v46  ;;  %v8390_v17 = vld [vmem:[%s8646_s17 + $0x3f8] sm:$0xff]  }
 0x21f   : > { %v5662_v27 = vmax.f32 %v5660_v43, %v5661_v8  ;;  %v5876_v31 = vrot.slane %v5875_v32, 4  ;;  %v4056_v33 = vmax.f32 %v2880_v49, 0.0  ;;  %7794 = vmatprep.mubr.msk.bf16.mxu0 %vm1681_vm0, %v8389_v1  ;;  %10731 = vst [vmem:[#allocation14_spill] sm:$0xff] %v9442_v38  ;;  %v4375_v54 = vmax.f32 %v4215_v0, %v4216_v12  ;;  %v9449_v61 = vpop.f32.mrb[55].mxu1 }
 0x220   : > { %v10732_v43 = vmov 0.0   ;;  %v4057_v49 = vmax.f32 %v2885_v58, 0.0  ;;  %v9452_v18 = vpop.f32.mrb[56].mxu1  ;;  %v4058_v38 = vmax.f32 %v2888_v26, 0.0  ;;  %v3541_v40 = vadd.f32 %v9338_v20, %v9302_v22 }
 0x221   : > { %7950 = vmatprep.subr.bf16.mxu1 %v10732_v43  ;;  %v5715_v8 = vpack.c.bf16 %v5662_v27, %v5662_v27  ;;  %v5877_v1 = vmax.f32 %v5875_v32, %v5876_v31  ;;  %v6091_v44 = vmax.f32 %v4055_v48, %v4056_v33  ;;  %v7688_v13 = vpop.f32.mrb[144].mxu0  ;;  %10733 = vst [vmem:[#allocation15_spill] sm:$0xff] %v9452_v18  ;;  %v4219_v0 = vmax.f32 %v3533_v29, 0.0  ;;  %v9457_v12 = vpop.f32.mrb[57].mxu1  ;;  %v8392_v48 = vld [vmem:[%s8646_s17 + $0x400] sm:$0xff]  }
 0x222   : > { %v2892_v37 = vpop.f32.mrb[145].mxu0  ;;  %v4376_v15 = vmax.f32 %v4375_v54, %v4217_v19  ;;  %v9461_v31 = vpop.f32.mrb[58].mxu1  ;;  %v2901_v26 = vadd.f32 %v9338_v20, %v7688_v13  ;;  %v6125_v54 = vrot.slane %v9331_v6, 4  ;;  %7958 = vmatprep.mubr.msk.bf16.mxu1 %vm8550_vm5, %v10732_v43 }
 0x223   : > { %v5748_v46 = vunpack.c.l.b16 %v5715_v8  ;;  %v5878_v7 = vrot.slane %v5877_v1, 2  ;;  %v6092_v27 = vmax.f32 %v6091_v44, %v4057_v49  ;;  %v2893_v32 = vadd.f32 %v9338_v20, %v2892_v37  ;;  %v7689_v58 = vpop.f32.mrb[146].mxu0  ;;  %10734 = vst [vmem:[#allocation16_spill] sm:$0xff] %v9461_v31  ;;  %v9466_v29 = vpop.f32.mrb[59].mxu1 }
 0x224   : > { %v2895_v33 = vpop.f32.mrb[147].mxu0  ;;  %v4377_v22 = vmax.f32 %v4376_v15, %v4218_v3  ;;  %10735 = vst [vmem:[#allocation17_spill] sm:$0xff] %v9466_v29  ;;  %v2904_v18 = vadd.f32 %v9338_v20, %v7689_v58  ;;  %v3544_v15 = vadd.f32 %v9338_v20, %v9316_v36 }
 0x225   : > { %v9470_v8 = vsel %vm4542_vm2, %v5748_v46, %v9149_v23  ;;  %v5879_v49 = vmax.f32 %v5877_v1, %v5878_v7  ;;  %v4059_v44 = vmax.f32 %v2893_v32, 0.0  ;;  %v6093_v37 = vmax.f32 %v6092_v27, %v4058_v38 }
 0x226   : > { %10736 = vst [vmem:[#allocation18_spill] sm:$0xff] %v9470_v8  ;;  %v2896_v31 = vadd.f32 %v9338_v20, %v2895_v33  ;;  %7795 = vmatmul.mubr.msk.bf16.gmra.mrb[252].mxu0 %vm1681_vm0, %v8390_v17  ;;  %v9475_v13 = vmax.f32 %v4377_v22, %v4219_v0  ;;  %v4221_v23 = vmax.f32 %v3541_v40, 0.0  ;;  %v3536_v38 = vadd.f32 %v9338_v20, %v9318_v42 }
 0x227   : > { %v5880_v3 = vrot.slane %v5879_v49, 1  ;;  %v6094_v19 = vmax.f32 %v6093_v37, %v4059_v44  ;;  %7798 = vmatprep.mubr.msk.bf16.mxu0 %vm1681_vm0, %v8392_v48  ;;  %v4061_v1 = vmax.f32 %v2901_v26, 0.0  ;;  %v3557_v7 = vadd.f32 %v9338_v20, %v9321_v53  ;;  %v8394_v37 = vld [vmem:[%s8646_s17 + $0x410] sm:$0xff]  }
 0x228   : > { %v4060_v46 = vmax.f32 %v2896_v31, 0.0  ;;  %v3549_v17 = vadd.f32 %v9338_v20, %v9324_v51  ;;  %v9487_v32 = vmax.f32 %v9331_v6, %v6125_v54  ;;  %v4220_v58 = vmax.f32 %v3536_v38, 0.0  ;;  %v8393_v31 = vld [vmem:[%s8646_s17 + $0x408] sm:$0xff]  }
 0x229   : > { %v5881_v0 = vmax.f32 %v5879_v49, %v5880_v3  ;;  %v6095_v36 = vrot.slane %v6094_v19, 4  ;;  %v7692_v27 = vpop.f32.mrb[148].mxu0  ;;  %v4062_v40 = vmax.f32 %v2904_v18, 0.0  ;;  %v4222_v33 = vmax.f32 %v3544_v15, 0.0 }
 0x22a   : > { %v6310_v48 = vmax.f32 %v4060_v46, %v4061_v1  ;;  %v2917_v42 = vadd.f32 %v9338_v20, %v7692_v27  ;;  %v2908_v26 = vpop.f32.mrb[149].mxu0  ;;  %v4479_v49 = vmax.f32 %v4220_v58, %v4221_v23  ;;  %v4225_v54 = vmax.f32 %v3557_v7, 0.0 }
 0x22b   : > { %v5934_v22 = vpack.c.bf16 %v5881_v0, %v5881_v0  ;;  %v6096_v53 = vmax.f32 %v6094_v19, %v6095_v36  ;;  %v2909_v44 = vadd.f32 %v9338_v20, %v2908_v26  ;;  %v7693_v51 = vpop.f32.mrb[150].mxu0  ;;  %v4223_v38 = vmax.f32 %v3549_v17, 0.0 }
 0x22c   : > { %v6311_v3 = vmax.f32 %v6310_v48, %v4062_v40  ;;  %v2920_v8 = vadd.f32 %v9338_v20, %v7693_v51  ;;  %v2911_v6 = vpop.f32.mrb[151].mxu0  ;;  %v4065_v29 = vmax.f32 %v2917_v42, 0.0  ;;  %v4480_v19 = vmax.f32 %v4479_v49, %v4222_v33 }
 0x22d   : > { %v5967_v18 = vunpack.c.l.b16 %v5934_v22  ;;  %v6097_v1 = vrot.slane %v6096_v53, 2  ;;  %v4063_v46 = vmax.f32 %v2909_v44, 0.0  ;;  %v2912_v27 = vadd.f32 %v9338_v20, %v2911_v6 }
 0x22e   : > { %v4066_v15 = vmax.f32 %v2920_v8, 0.0  ;;  %7799 = vmatmul.mubr.msk.bf16.gmra.mrb[0].mxu0 %vm1681_vm0, %v8393_v31  ;;  %v3560_v0 = vadd.f32 %v9338_v20, %v9328_v2  ;;  %v6344_v40 = vrot.slane %v9399_v30, 4  ;;  %v4481_v8 = vmax.f32 %v4480_v19, %v4223_v38  ;;  %v8396_v38 = vld [vmem:[%s8646_s17 + $0x420] sm:$0xff]   ;;  %v8402_v2 = vld [vmem:[%s8646_s17 + $0x448] sm:$0xff]  }
 0x22f   : > { %v6098_v23 = vmax.f32 %v6096_v53, %v6097_v1  ;;  %v6312_v36 = vmax.f32 %v6311_v3, %v4063_v46  ;;  %v4064_v58 = vmax.f32 %v2912_v27, 0.0  ;;  %7802 = vmatprep.mubr.msk.bf16.mxu0 %vm1681_vm0, %v8394_v37  ;;  %v9501_v7 = vsel %vm4542_vm2, %v5967_v18, %v9166_v4  ;;  %v8395_v53 = vld [vmem:[%s8646_s17 + $0x418] sm:$0xff]  }
 0x230   : > { %v4345_v17 = vmax.f32 %v4065_v29, %v4066_v15  ;;  %v4226_v48 = vmax.f32 %v3560_v0, 0.0  ;;  %v3552_v33 = vadd.f32 %v9338_v20, %v9333_v10  ;;  %v9510_v4 = vadd.f32 %v9338_v20, %v9199_v28 }
 0x231   : > { %v6099_v42 = vrot.slane %v6098_v23, 1  ;;  %v6313_v26 = vmax.f32 %v6312_v36, %v4064_v58  ;;  %v7696_v31 = vpop.f32.mrb[152].mxu0  ;;  %v6127_v29 = vrot.slane %v9487_v32, 2  ;;  %v3565_v51 = vadd.f32 %v9338_v20, %v9346_v25 }
 0x232   : > { %v2924_v22 = vpop.f32.mrb[153].mxu0  ;;  %10737 = vst [vmem:[#allocation19_spill] sm:$0xff] %v9510_v4  ;;  %v4817_v44 = vmax.f32 %v4225_v54, %v4226_v48  ;;  %v4224_v18 = vmax.f32 %v3552_v33, 0.0  ;;  %v2933_v10 = vadd.f32 %v9338_v20, %v7696_v31  ;;  %v5691_v46 = vrot.slane %v9444_v55, 1 }
 0x233   : > { %v6100_v37 = vmax.f32 %v6098_v23, %v6099_v42  ;;  %v6314_v49 = vrot.slane %v6313_v26, 4  ;;  %v2925_v3 = vadd.f32 %v9338_v20, %v2924_v22  ;;  %v7697_v6 = vpop.f32.mrb[154].mxu0  ;;  %v10738_v28 = vrot.slane %v9447_v57, 2 }
 0x234   : > { %v2927_v1 = vpop.f32.mrb[155].mxu0  ;;  %v6345_v54 = vmax.f32 %v9399_v30, %v6344_v40  ;;  %v6128_v23 = vmax.f32 %v9487_v32, %v6127_v29  ;;  %v9528_v36 = vmax.f32 %v4481_v8, %v4224_v18  ;;  %v3573_v58 = vadd.f32 %v9338_v20, %v9341_v16 }
 0x235   : > { %v9522_v27 = vmax.f32 %v9447_v57, %v10738_v28  ;;  %v6153_v25 = vpack.c.bf16 %v6100_v37, %v6100_v37  ;;  %v6315_v15 = vmax.f32 %v6313_v26, %v6314_v49  ;;  %v4067_v19 = vmax.f32 %v2925_v3, 0.0  ;;  %v9546_v28 = vpop.f32.mrb[60].mxu1 }
 0x236   : > { %v2928_v0 = vadd.f32 %v9338_v20, %v2927_v1  ;;  %7803 = vmatmul.mubr.msk.bf16.gmra.mrb[4].mxu0 %vm1681_vm0, %v8395_v53  ;;  %v4227_v48 = vmax.f32 %v3565_v51, 0.0  ;;  %v2936_v40 = vadd.f32 %v9338_v20, %v7697_v6  ;;  %v6346_v26 = vrot.slane %v6345_v54, 2  ;;  %v8397_v51 = vld [vmem:[%s8646_s17 + $0x428] sm:$0xff]  }
 0x237   : > { %v6186_v57 = vunpack.c.l.b16 %v6153_v25  ;;  %v6316_v42 = vrot.slane %v6315_v15, 2  ;;  %v4346_v31 = vmax.f32 %v4345_v17, %v4067_v19  ;;  %7806 = vmatprep.mubr.msk.bf16.mxu0 %vm1681_vm0, %v8396_v38  ;;  %v3568_v32 = vadd.f32 %v9338_v20, %v9356_v62 }
 0x238   : > { %v4068_v30 = vmax.f32 %v2928_v0, 0.0  ;;  %v4818_v33 = vmax.f32 %v4817_v44, %v4227_v48  ;;  %v4069_v22 = vmax.f32 %v2933_v10, 0.0  ;;  %v5910_v37 = vrot.slane %v9522_v27, 1  ;;  %v8405_v10 = vld [vmem:[%s10708_s3 + $0x60] sm:$0xff]  }
 0x239   : > { %v9538_v8 = vsel %vm4542_vm2, %v6186_v57, %v9180_v47  ;;  %v6317_v16 = vmax.f32 %v6315_v15, %v6316_v42  ;;  %v7700_v29 = vpop.f32.mrb[156].mxu0  ;;  %v4229_v49 = vmax.f32 %v3573_v58, 0.0  ;;  %v3576_v44 = vadd.f32 %v9338_v20, %v9349_v56  ;;  %v8398_v47 = vld [vmem:[%s8646_s17 + $0x430] sm:$0xff]   ;;  %v9552_v58 = vpop.f32.mrb[61].mxu1  ;;  %7951 = vmatpush3.bf16.msra.mxu1 %v8405_v10 }
 0x23a   : > { %v4347_v53 = vmax.f32 %v4346_v31, %v4068_v30  ;;  %v2940_v17 = vpop.f32.mrb[157].mxu0  ;;  %v4228_v3 = vmax.f32 %v3568_v32, 0.0  ;;  %v6129_v1 = vrot.slane %v6128_v23, 1  ;;  %v4070_v25 = vmax.f32 %v2936_v40, 0.0  ;;  %v9555_v30 = vpop.f32.mrb[62].mxu1  ;;  %7952 = vmatprep.subr.bf16.mxu1 %v10732_v43 }
 0x23b   : > { %v6318_v6 = vrot.slane %v6317_v16, 1  ;;  %v2941_v38 = vadd.f32 %v9338_v20, %v2940_v17  ;;  %v7701_v18 = vpop.f32.mrb[158].mxu0  ;;  %v2949_v15 = vadd.f32 %v9338_v20, %v7700_v29  ;;  %v6347_v0 = vmax.f32 %v6345_v54, %v6346_v26  ;;  %v9563_v26 = vpop.f32.mrb[63].mxu1 }
 0x23c   : > { %v4348_v62 = vmax.f32 %v4347_v53, %v4069_v22  ;;  %v2943_v19 = vpop.f32.mrb[159].mxu0  ;;  %v4819_v56 = vmax.f32 %v4818_v33, %v4228_v3  ;;  %v2952_v32 = vadd.f32 %v9338_v20, %v7701_v18  ;;  %v4230_v40 = vmax.f32 %v3576_v44, 0.0  ;;  %v9567_v17 = vpop.f32.mrb[64].mxu1 }
 0x23d   : > { %v6319_v48 = vmax.f32 %v6317_v16, %v6318_v6  ;;  %v4071_v42 = vmax.f32 %v2941_v38, 0.0  ;;  %v2944_v31 = vadd.f32 %v9338_v20, %v2943_v19  ;;  %v3581_v54 = vadd.f32 %v9338_v20, %v9369_v59  ;;  %v9573_v3 = vpop.f32.mrb[65].mxu1 }
 0x23e   : > { %v4349_v57 = vrot.slane %v4348_v62, 4  ;;  %7807 = vmatmul.mubr.msk.bf16.gmra.mrb[8].mxu0 %vm1681_vm0, %v8397_v51  ;;  %v9559_v22 = vmax.f32 %v4819_v56, %v4229_v49  ;;  %v5692_v51 = vmax.f32 %v9444_v55, %v5691_v46  ;;  %v5911_v49 = vmax.f32 %v9522_v27, %v5910_v37  ;;  %v8399_v56 = vld [vmem:[%s8646_s17 + $0x438] sm:$0xff]  }
 0x23f   : > { %v6372_v33 = vpack.c.bf16 %v6319_v48, %v6319_v48  ;;  %v4449_v53 = vmax.f32 %v4070_v25, %v4071_v42  ;;  %v4072_v29 = vmax.f32 %v2944_v31, 0.0  ;;  %7810 = vmatprep.mubr.msk.bf16.mxu0 %vm1681_vm0, %v8398_v47  ;;  %v6130_v59 = vmax.f32 %v6128_v23, %v6129_v1  ;;  %v9575_v47 = vpop.f32.mrb[66].mxu1  ;;  %v8401_v42 = vld [vmem:[%s8646_s17 + $0x440] sm:$0xff]   ;;  %s6533_s17 = sshll.u32 %s218_s6, 4  ;;  %s10665_s17 = int_to_ptr.vmem [resolvable:$true] %s6533_s17 }
 0x240   : > { %v4350_v16 = vmax.f32 %v4348_v62, %v4349_v57  ;;  %v4231_v44 = vmax.f32 %v3581_v54, 0.0  ;;  %v4073_v62 = vmax.f32 %v2949_v15, 0.0  ;;  %v4074_v25 = vmax.f32 %v2952_v32, 0.0  ;;  %v9580_v27 = vpop.f32.mrb[67].mxu1  ;;  %s8485_s11 = scalar_lea.vmem %s10665_s17, 128  ;;  %p8492_p0 = scmp.lt.s32.totalorder %s10665_s17, %s8490_s12 }
 0x241   : > { %v6405_v6 = vunpack.c.l.b16 %v6372_v33  ;;  %v4450_v18 = vmax.f32 %v4449_v53, %v4072_v29  ;;  %v7704_v10 = vpop.f32.mrb[160].mxu0  ;;  %v6348_v48 = vrot.slane %v6347_v0, 1  ;;  %v3584_v46 = vadd.f32 %v9338_v20, %v9377_v34  ;;  %v9588_v31 = vpop.f32.mrb[68].mxu1  ;;  %p8486_p11 = scmp.ne.s32.totalorder %s10665_s17, %s8485_s11  ;;  %p8493_p1 = scmp.lt.s32.totalorder %s8491_s13, %s8485_s11 }
 0x242   : > { %v4351_v38 = vrot.slane %v4350_v16, 2  ;;  %v2956_v19 = vpop.f32.mrb[161].mxu0  ;;  %v5036_v55 = vmax.f32 %v4230_v40, %v4231_v44  ;;  %v5718_v54 = vpack.c.bf16 %v5692_v51, %v5692_v51  ;;  %v5937_v33 = vpack.c.bf16 %v5911_v49, %v5911_v49  ;;  %v9593_v53 = vpop.f32.mrb[69].mxu1 }
 0x243   : > { %v9584_v23 = vsel %vm4542_vm2, %v6405_v6, %v9203_v39  ;;  %v4451_v1 = vmax.f32 %v4450_v18, %v4073_v62  ;;  %v2957_v15 = vadd.f32 %v9338_v20, %v2956_v19  ;;  %v7705_v57 = vpop.f32.mrb[162].mxu0  ;;  %v3589_v34 = vadd.f32 %v9338_v20, %v9362_v21  ;;  %v9597_v6 = vpop.f32.mrb[70].mxu1  ;;  %p8487_p12 = pnand %p8486_p11, %p8620_p5  ;;  %p8494_p2 = por %p8493_p1, %p8492_p0 }
 0x244   : > { %10739 = vst [vmem:[#allocation20_spill] sm:$0xff] %v9584_v23  ;;  %v4352_v37 = vmax.f32 %v4350_v16, %v4351_v38  ;;  %v2959_v32 = vpop.f32.mrb[163].mxu0  ;;  %v2965_v16 = vadd.f32 %v9338_v20, %v7704_v10  ;;  %v2968_v38 = vadd.f32 %v9338_v20, %v7705_v57  ;;  %v6156_v62 = vpack.c.bf16 %v6130_v59, %v6130_v59  ;;  %v9603_v21 = vpop.f32.mrb[71].mxu1 }
 0x245   : > { %v4452_v29 = vmax.f32 %v4451_v1, %v4074_v25  ;;  %v2960_v44 = vadd.f32 %v9338_v20, %v2959_v32  ;;  %v6349_v51 = vmax.f32 %v6347_v0, %v6348_v48  ;;  %v3592_v49 = vadd.f32 %v9338_v20, %v9374_v52  ;;  %v9606_v1 = vpop.f32.mrb[72].mxu1  ;;  %p8488_p13 = pneg %p8487_p12 }
 0x246   : > { %v4353_v39 = vrot.slane %v4352_v37, 1  ;;  %7811 = vmatmul.mubr.msk.bf16.gmra.mrb[12].mxu0 %vm1681_vm0, %v8399_v56  ;;  %v4075_v19 = vmax.f32 %v2957_v15, 0.0  ;;  %v4232_v10 = vmax.f32 %v3584_v46, 0.0  ;;  %v9608_v32 = vunpack.c.l.b16 %v5718_v54  ;;  %v9613_v56 = vpop.f32.mrb[73].mxu1 }
 0x247   : > { %v4076_v25 = vmax.f32 %v2960_v44, 0.0  ;;  %7814 = vmatprep.mubr.msk.bf16.mxu0 %vm1681_vm0, %v8401_v42  ;;  %v9610_v57 = vunpack.c.l.b16 %v5937_v33  ;;  %v4379_v0 = vrot.slane %v9475_v13, 4  ;;  %v4233_v59 = vmax.f32 %v3589_v34, 0.0  ;;  %v9615_v44 = vpop.f32.mrb[74].mxu1  ;;  %p8495_p3 = pnand %p8494_p2, %p8488_p13 }
 0x248   : > { %v4354_v18 = vmax.f32 %v4352_v37, %v4353_v39  ;;  %10740 = vst [vmem:[#allocation21_spill] sm:$0xff] %v9608_v32  ;;  %v4077_v48 = vmax.f32 %v2965_v16, 0.0  ;;  %v5037_v39 = vmax.f32 %v5036_v55, %v4232_v10  ;;  %v4078_v42 = vmax.f32 %v2968_v38, 0.0  ;;  %v9620_v24 = vpop.f32.mrb[75].mxu1 }
 0x249   : > { %10741 = vst [vmem:[#allocation22_spill] sm:$0xff] %v9610_v57  ;;  %v4787_v37 = vmax.f32 %v4075_v19, %v4076_v25  ;;  %v7708_v15 = vpop.f32.mrb[164].mxu0  ;;  %v9618_v40 = vunpack.c.l.b16 %v6156_v62  ;;  %v6375_v54 = vpack.c.bf16 %v6349_v51, %v6349_v51  ;;  %v4234_v33 = vmax.f32 %v3592_v49, 0.0  ;;  %v9629_v51 = vpop.f32.mrb[76].mxu1 }
 0x24a   : > { %v4398_v52 = vpack.c.bf16 %v4354_v18, %v4354_v18  ;;  %v2972_v46 = vpop.f32.mrb[165].mxu0  ;;  %v3597_v16 = vadd.f32 %v9338_v20, %v9392_v63  ;;  %v4453_v55 = vrot.slane %v4452_v29, 4  ;;  %v2981_v19 = vadd.f32 %v9338_v20, %v7708_v15  ;;  %v9637_v63 = vpop.f32.mrb[77].mxu1 }
 0x24b   : > { %10742 = vst [vmem:[#allocation23_spill] sm:$0xff] %v9618_v40  ;;  %v4788_v34 = vmax.f32 %v4787_v37, %v4077_v48  ;;  %v2973_v4 = vadd.f32 %v9338_v20, %v2972_v46  ;;  %v7709_v18 = vpop.f32.mrb[166].mxu0  ;;  %v9627_v25 = vmax.f32 %v9475_v13, %v4379_v0  ;;  %v5038_v62 = vmax.f32 %v5037_v39, %v4233_v59  ;;  %v9646_v59 = vpop.f32.mrb[78].mxu1 }
 0x24c   : > { %v4655_v23 = vunpack.c.l.b16 %v4398_v52  ;;  %v2975_v38 = vpop.f32.mrb[167].mxu0  ;;  %v3605_v48 = vadd.f32 %v9338_v20, %v9380_v50  ;;  %v2984_v37 = vadd.f32 %v9338_v20, %v7709_v18  ;;  %v9642_v13 = vunpack.c.l.b16 %v6375_v54  ;;  %v9651_v39 = vpop.f32.mrb[79].mxu1 }
 0x24d   : > { %v4079_v10 = vmax.f32 %v2973_v4, 0.0  ;;  %v4789_v52 = vmax.f32 %v4788_v34, %v4078_v42  ;;  %v2976_v15 = vadd.f32 %v9338_v20, %v2975_v38  ;;  %v9644_v0 = vmax.f32 %v5038_v62, %v4234_v33  ;;  %v9655_v54 = vpop.f32.mrb[80].mxu1 }
 0x24e   : > { %v9633_v49 = vsel %vm4544_vm3, %v4655_v23, %v9221_v9  ;;  %7815 = vmatmul.mubr.msk.bf16.gmra.mrb[16].mxu0 %vm1681_vm0, %v8402_v2  ;;  %10744 = vst [vmem:[#allocation25_spill] sm:$0xff] %v9642_v13  ;;  %v4483_v4 = vrot.slane %v9528_v36, 4  ;;  %v4235_v23 = vmax.f32 %v3597_v16, 0.0  ;;  %v3600_v50 = vadd.f32 %v9338_v20, %v9403_v41  ;;  %v9658_v16 = vpop.f32.mrb[81].mxu1 }
 0x24f   : > { %10743 = vst [vmem:[#allocation24_spill] sm:$0xff] %v9633_v49  ;;  %v4790_v9 = vmax.f32 %v4789_v52, %v4079_v10  ;;  %v4454_v42 = vmax.f32 %v4452_v29, %v4453_v55  ;;  %v4081_v46 = vmax.f32 %v2981_v19, 0.0  ;;  %v4080_v34 = vmax.f32 %v2976_v15, 0.0  ;;  %v9663_v19 = vpop.f32.mrb[82].mxu1 }
 0x250   : > { %v3608_v2 = vadd.f32 %v9338_v20, %v9395_v14  ;;  %v4381_v38 = vrot.slane %v9627_v25, 2  ;;  %v4237_v62 = vmax.f32 %v3605_v48, 0.0  ;;  %v4236_v10 = vmax.f32 %v3600_v50, 0.0  ;;  %10745 = vst [vmem:[#allocation26_spill] sm:$0xff] %v9663_v19  ;;  %v9669_v50 = vpop.f32.mrb[83].mxu1 }
 0x251   : > { %v4791_v33 = vrot.slane %v4790_v9, 4  ;;  %v7712_v18 = vpop.f32.mrb[168].mxu0  ;;  %v4082_v52 = vmax.f32 %v2984_v37, 0.0  ;;  %v5006_v41 = vmax.f32 %v4080_v34, %v4081_v46  ;;  %v3613_v55 = vadd.f32 %v9338_v20, %v9413_v11  ;;  %10746 = vst [vmem:[#allocation27_spill] sm:$0xff] %v9669_v50  ;;  %v9672_v49 = vpop.f32.mrb[84].mxu1 }
 0x252   : > { %v2997_v13 = vadd.f32 %v9338_v20, %v7712_v18  ;;  %v2988_v29 = vpop.f32.mrb[169].mxu0  ;;  %v9667_v57 = vmax.f32 %v9528_v36, %v4483_v4  ;;  %v5255_v48 = vmax.f32 %v4235_v23, %v4236_v10  ;;  %v4455_v37 = vrot.slane %v4454_v42, 2  ;;  %10747 = vst [vmem:[#allocation28_spill] sm:$0xff] %v9672_v49  ;;  %v9677_v36 = vpop.f32.mrb[85].mxu1 }
 0x253   : > { %v4792_v14 = vmax.f32 %v4790_v9, %v4791_v33  ;;  %v2989_v15 = vadd.f32 %v9338_v20, %v2988_v29  ;;  %v7713_v40 = vpop.f32.mrb[170].mxu0  ;;  %v5007_v46 = vmax.f32 %v5006_v41, %v4082_v52  ;;  %v4238_v32 = vmax.f32 %v3608_v2, 0.0  ;;  %10748 = vst [vmem:[#allocation29_spill] sm:$0xff] %v9677_v36  ;;  %v9679_v52 = vpop.f32.mrb[86].mxu1 }
 0x254   : > { %v3000_v34 = vadd.f32 %v9338_v20, %v7713_v40  ;;  %v2991_v18 = vpop.f32.mrb[171].mxu0  ;;  %v3621_v33 = vadd.f32 %v9338_v20, %v9405_v5  ;;  %v4085_v4 = vmax.f32 %v2997_v13, 0.0  ;;  %v5256_v10 = vmax.f32 %v5255_v48, %v4237_v62  ;;  %10749 = vst [vmem:[#allocation30_spill] sm:$0xff] %v9679_v52  ;;  %v9682_v50 = vpop.f32.mrb[87].mxu1 }
 0x255   : > { %v4793_v11 = vrot.slane %v4792_v14, 2  ;;  %v4083_v19 = vmax.f32 %v2989_v15, 0.0  ;;  %v2992_v9 = vadd.f32 %v9338_v20, %v2991_v18  ;;  %v4239_v29 = vmax.f32 %v3613_v55, 0.0  ;;  %10750 = vst [vmem:[#allocation31_spill] sm:$0xff] %v9682_v50 }
 0x256   : > { %v4086_v23 = vmax.f32 %v3000_v34, 0.0  ;;  %v4821_v49 = vrot.slane %v9559_v22, 4  ;;  %v5257_v18 = vmax.f32 %v5256_v10, %v4238_v32  ;;  %v3624_v5 = vadd.f32 %v9338_v20, %v9421_v60  ;;  %v9688_v34 = vpop.f32.mrb[88].mxu1 }
 0x257   : > { %v4794_v40 = vmax.f32 %v4792_v14, %v4793_v11  ;;  %v5008_v41 = vmax.f32 %v5007_v46, %v4083_v19  ;;  %v4084_v2 = vmax.f32 %v2992_v9, 0.0  ;;  %v3616_v13 = vadd.f32 %v9338_v20, %v9426_v45  ;;  %10751 = vst [vmem:[#allocation32_spill] sm:$0xff] %v9688_v34  ;;  %v9690_v46 = vpop.f32.mrb[89].mxu1 }
 0x258   : > { %v5225_v15 = vmax.f32 %v4085_v4, %v4086_v23  ;;  %v4456_v62 = vmax.f32 %v4454_v42, %v4455_v37  ;;  %v4241_v19 = vmax.f32 %v3621_v33, 0.0  ;;  %10752 = vst [vmem:[#allocation33_spill] sm:$0xff] %v9690_v46  ;;  %v9693_v4 = vmax.f32 %v5257_v18, %v4239_v29  ;;  %v9697_v23 = vpop.f32.mrb[90].mxu1 }
 0x259   : > { %v4795_v55 = vrot.slane %v4794_v40, 1  ;;  %v5009_v48 = vmax.f32 %v5008_v41, %v4084_v2  ;;  %v7716_v14 = vpop.f32.mrb[172].mxu0  ;;  %v4240_v32 = vmax.f32 %v3616_v13, 0.0  ;;  %v3637_v60 = vadd.f32 %v9338_v20, %v9433_v35  ;;  %10753 = vst [vmem:[#allocation34_spill] sm:$0xff] %v9697_v23  ;;  %v9703_v41 = vpop.f32.mrb[91].mxu1  ;;  %v10755_v35 = vld [vmem:[#allocation13_spill] sm:$0xff] }
 0x25a   : > { %v3013_v11 = vadd.f32 %v9338_v20, %v7716_v14  ;;  %v3004_v9 = vpop.f32.mrb[173].mxu0  ;;  %v9701_v33 = vmax.f32 %v9627_v25, %v4381_v38  ;;  %10754 = vst [vmem:[#allocation35_spill] sm:$0xff] %v9703_v41  ;;  %v4485_v29 = vrot.slane %v9667_v57, 2  ;;  %v9707_v18 = vmax.f32 %v9559_v22, %v4821_v49 }
 0x25b   : > { %v4796_v45 = vmax.f32 %v4794_v40, %v4795_v55  ;;  %v5010_v10 = vrot.slane %v5009_v48, 4  ;;  %v3005_v42 = vadd.f32 %v9338_v20, %v3004_v9  ;;  %v7717_v37 = vpop.f32.mrb[174].mxu0  ;;  %v4242_v13 = vmax.f32 %v3624_v5, 0.0  ;;  %v9711_v40 = vpop.f32.mrb[92].mxu1  ;;  %v8406_v55 = vld [vmem:[%s10708_s3 + $0x68] sm:$0xff]  }
 0x25c   : > { %v3007_v2 = vpop.f32.mrb[175].mxu0  ;;  %v3629_v14 = vadd.f32 %v9338_v20, %v10755_v35  ;;  %10756 = vst [vmem:[#allocation13_spill] sm:$0xff] %v9711_v40  ;;  %v9717_v23 = vpop.f32.mrb[93].mxu1  ;;  %v4457_v34 = vrot.slane %v4456_v62, 1  ;;  %v4089_v22 = vmax.f32 %v3013_v11, 0.0  ;;  %v5474_v49 = vmax.f32 %v4240_v32, %v4241_v19  ;;  %7953 = vmatpush3.bf16.msra.mxu1 %v8406_v55  ;;  %v10759_v32 = vld [vmem:[#allocation6_spill] sm:$0xff] }
 0x25d   : > { %v4840_v25 = vpack.c.bf16 %v4796_v45, %v4796_v45  ;;  %v5011_v38 = vmax.f32 %v5009_v48, %v5010_v10  ;;  %v4087_v9 = vmax.f32 %v3005_v42, 0.0  ;;  %v3008_v41 = vadd.f32 %v9338_v20, %v3007_v2  ;;  %v9719_v46 = vpop.f32.mrb[94].mxu1  ;;  %7954 = vmatprep.subr.bf16.mxu1 %v10732_v43  ;;  %v10757_v42 = vld [vmem:[#allocation14_spill] sm:$0xff] }
 0x25e   : > { %v4245_v5 = vmax.f32 %v3637_v60, 0.0  ;;  %v9721_v36 = vpop.f32.mrb[95].mxu1  ;;  %v3016_v48 = vadd.f32 %v9338_v20, %v7717_v37  ;;  %v4243_v45 = vmax.f32 %v3629_v14, 0.0  ;;  %v5475_v10 = vmax.f32 %v5474_v49, %v4242_v13 }
 0x25f   : > { %v4873_v35 = vunpack.c.l.b16 %v4840_v25  ;;  %v5012_v40 = vrot.slane %v5011_v38, 2  ;;  %v5226_v52 = vmax.f32 %v5225_v15, %v4087_v9  ;;  %v4088_v50 = vmax.f32 %v3008_v41, 0.0  ;;  %v9727_v19 = vpop.f32.mrb[96].mxu1 }
 0x260   : > { %v3640_v11 = vadd.f32 %v9338_v20, %v10757_v42  ;;  %10758 = vst [vmem:[#allocation14_spill] sm:$0xff] %v9727_v19  ;;  %v3632_v55 = vadd.f32 %v9338_v20, %v9449_v61  ;;  %v9735_v25 = vpop.f32.mrb[97].mxu1  ;;  %v4458_v37 = vmax.f32 %v4456_v62, %v4457_v34  ;;  %v9738_v13 = vmax.f32 %v9667_v57, %v4485_v29 }
 0x261   : > { %v9731_v60 = vsel %vm4544_vm3, %v4873_v35, %v10759_v32  ;;  %v5013_v2 = vmax.f32 %v5011_v38, %v5012_v40  ;;  %v5227_v15 = vmax.f32 %v5226_v52, %v4088_v50  ;;  %v7720_v41 = vpop.f32.mrb[176].mxu0  ;;  %10761 = vst [vmem:[#allocation36_spill] sm:$0xff] %v9735_v25  ;;  %v5476_v9 = vmax.f32 %v5475_v10, %v4243_v45  ;;  %v9740_v42 = vpop.f32.mrb[98].mxu1  ;;  %v10777_v25 = vld [vmem:[#allocation16_spill] sm:$0xff] }
 0x262   : > { %10760 = vst [vmem:[#allocation6_spill] sm:$0xff] %v9731_v60  ;;  %v3020_v14 = vpop.f32.mrb[177].mxu0  ;;  %v4246_v49 = vmax.f32 %v3640_v11, 0.0  ;;  %10762 = vst [vmem:[#allocation37_spill] sm:$0xff] %v9740_v42  ;;  %v4244_v52 = vmax.f32 %v3632_v55, 0.0  ;;  %v9743_v38 = vpop.f32.mrb[99].mxu1  ;;  %v3029_v32 = vadd.f32 %v9338_v20, %v7720_v41 }
 0x263   : > { %v5014_v19 = vrot.slane %v5013_v2, 1  ;;  %v5228_v35 = vmax.f32 %v5227_v15, %v4089_v22  ;;  %v3021_v40 = vadd.f32 %v9338_v20, %v3020_v14  ;;  %v7721_v50 = vpop.f32.mrb[178].mxu0  ;;  %10763 = vst [vmem:[#allocation38_spill] sm:$0xff] %v9743_v38  ;;  %v4090_v61 = vmax.f32 %v3016_v48, 0.0  ;;  %v9747_v29 = vpop.f32.mrb[100].mxu1  ;;  %v10774_v42 = vld [vmem:[#allocation15_spill] sm:$0xff] }
 0x264   : > { %v3023_v34 = vpop.f32.mrb[179].mxu0  ;;  %v4823_v62 = vrot.slane %v9707_v18, 2  ;;  %v5693_v57 = vmax.f32 %v4245_v5, %v4246_v49  ;;  %10764 = vst [vmem:[#allocation39_spill] sm:$0xff] %v9747_v29  ;;  %v9750_v15 = vpop.f32.mrb[101].mxu1  ;;  %v4502_v14 = vpack.c.bf16 %v4458_v37, %v4458_v37  ;;  %v3032_v55 = vadd.f32 %v9338_v20, %v7721_v50 }
 0x265   : > { %v5015_v45 = vmax.f32 %v5013_v2, %v5014_v19  ;;  %v5229_v10 = vrot.slane %v5228_v35, 4  ;;  %v4091_v11 = vmax.f32 %v3021_v40, 0.0  ;;  %v3024_v22 = vadd.f32 %v9338_v20, %v3023_v34  ;;  %10765 = vst [vmem:[#allocation40_spill] sm:$0xff] %v9750_v15  ;;  %v9756_v41 = vpop.f32.mrb[102].mxu1  ;;  %v9766_v20 = vld [vmem:[%s10707_s2] ss:$0 sm:$0xff] }
 0x266   : > { %v5040_v48 = vrot.slane %v9644_v0, 4  ;;  %v9754_v60 = vmax.f32 %v5476_v9, %v4244_v52  ;;  %10766 = vst [vmem:[#allocation41_spill] sm:$0xff] %v9756_v41  ;;  %v9758_v19 = vpop.f32.mrb[103].mxu1  ;;  %v4383_v2 = vrot.slane %v9701_v33, 1  ;;  %v4487_v40 = vrot.slane %v9738_v13, 1  ;;  %v10771_v15 = vld [vmem:[#allocation7_spill] sm:$0xff] }
 0x267   : > { %v5059_v38 = vpack.c.bf16 %v5015_v45, %v5015_v45  ;;  %v5230_v5 = vmax.f32 %v5228_v35, %v5229_v10  ;;  %v5444_v49 = vmax.f32 %v4090_v61, %v4091_v11  ;;  %v4092_v29 = vmax.f32 %v3024_v22, 0.0  ;;  %10767 = vst [vmem:[#allocation42_spill] sm:$0xff] %v9758_v19  ;;  %v9770_v50 = vpop.f32.mrb[104].mxu1 }
 0x268   : > { %v4824_v37 = vmax.f32 %v9707_v18, %v4823_v62  ;;  %v3645_v9 = vadd.f32 %v9766_v20, %v9457_v12  ;;  %10768 = vst [vmem:[#allocation43_spill] sm:$0xff] %v9770_v50  ;;  %v4093_v61 = vmax.f32 %v3029_v32, 0.0  ;;  %v9772_v10 = vpop.f32.mrb[105].mxu1  ;;  %v4535_v11 = vunpack.c.l.b16 %v4502_v14 }
 0x269   : > { %v5092_v35 = vunpack.c.l.b16 %v5059_v38  ;;  %v5231_v52 = vrot.slane %v5230_v5, 2  ;;  %v5445_v34 = vmax.f32 %v5444_v49, %v4092_v29  ;;  %v7724_v45 = vpop.f32.mrb[180].mxu0  ;;  %10769 = vst [vmem:[#allocation44_spill] sm:$0xff] %v9772_v10  ;;  %v4094_v22 = vmax.f32 %v3032_v55, 0.0  ;;  %v9775_v41 = vpop.f32.mrb[106].mxu1 }
 0x26a   : > { %v3036_v18 = vpop.f32.mrb[181].mxu0  ;;  %v5041_v62 = vmax.f32 %v9644_v0, %v5040_v48  ;;  %v4247_v19 = vmax.f32 %v3645_v9, 0.0  ;;  %10770 = vst [vmem:[#allocation45_spill] sm:$0xff] %v9775_v41  ;;  %v9782_v49 = vpop.f32.mrb[107].mxu1  ;;  %v4384_v14 = vmax.f32 %v9701_v33, %v4383_v2  ;;  %v4825_v55 = vrot.slane %v4824_v37, 1 }
 0x26b   : > { %v9779_v12 = vsel %vm4544_vm3, %v5092_v35, %v10771_v15  ;;  %v5232_v50 = vmax.f32 %v5230_v5, %v5231_v52  ;;  %v5446_v38 = vmax.f32 %v5445_v34, %v4093_v61  ;;  %v3037_v32 = vadd.f32 %v9766_v20, %v3036_v18  ;;  %v7725_v29 = vpop.f32.mrb[182].mxu0  ;;  %10773 = vst [vmem:[#allocation46_spill] sm:$0xff] %v9782_v49  ;;  %v10775_v34 = vld [vmem:[#allocation17_spill] sm:$0xff] }
 0x26c   : > { %10772 = vst [vmem:[#allocation7_spill] sm:$0xff] %v9779_v12  ;;  %v3039_v10 = vpop.f32.mrb[183].mxu0  ;;  %v3653_v0 = vadd.f32 %v9766_v20, %v10774_v42  ;;  %v5694_v48 = vmax.f32 %v5693_v57, %v4247_v19  ;;  %v3045_v15 = vadd.f32 %v9766_v20, %v7724_v45  ;;  %v3048_v35 = vadd.f32 %v9766_v20, %v7725_v29  ;;  %v10776_v42 = vld [vmem:[#allocation5_spill] sm:$0xff] }
 0x26d   : > { %v5233_v9 = vrot.slane %v5232_v50, 1  ;;  %v9787_v41 = vmax.f32 %v5446_v38, %v4094_v22  ;;  %v3040_v5 = vadd.f32 %v9766_v20, %v3039_v10  ;;  %v4488_v52 = vmax.f32 %v9738_v13, %v4487_v40  ;;  %v9799_v10 = vpop.f32.mrb[108].mxu1 }
 0x26e   : > { %v5042_v61 = vrot.slane %v5041_v62, 2  ;;  %v3648_v33 = vadd.f32 %v9766_v20, %v10775_v34  ;;  %v4095_v18 = vmax.f32 %v3037_v32, 0.0  ;;  %v9797_v57 = vsel %vm4544_vm3, %v4535_v11, %v10776_v42 }
 0x26f   : > { %v5234_v2 = vmax.f32 %v5232_v50, %v5233_v9  ;;  %v4096_v12 = vmax.f32 %v3040_v5, 0.0  ;;  %v4401_v19 = vpack.c.bf16 %v4384_v14, %v4384_v14  ;;  %v4826_v22 = vmax.f32 %v4824_v37, %v4825_v55  ;;  %v9803_v50 = vpop.f32.mrb[109].mxu1 }
 0x270   : > { %v4249_v45 = vmax.f32 %v3653_v0, 0.0  ;;  %v4248_v38 = vmax.f32 %v3648_v33, 0.0  ;;  %v4097_v49 = vmax.f32 %v3045_v15, 0.0  ;;  %v3656_v34 = vadd.f32 %v9766_v20, %v10777_v25 }
 0x271   : > { %v5278_v29 = vpack.c.bf16 %v5234_v2, %v5234_v2  ;;  %v5663_v13 = vmax.f32 %v4095_v18, %v4096_v12  ;;  %v7728_v40 = vpop.f32.mrb[184].mxu0  ;;  %v4098_v32 = vmax.f32 %v3048_v35, 0.0  ;;  %v4505_v5 = vpack.c.bf16 %v4488_v52, %v4488_v52  ;;  %v9813_v35 = vpop.f32.mrb[110].mxu1 }
 0x272   : > { %v3052_v9 = vpop.f32.mrb[185].mxu0  ;;  %v5043_v11 = vmax.f32 %v5041_v62, %v5042_v61  ;;  %v5695_v42 = vmax.f32 %v5694_v48, %v4248_v38  ;;  %v3661_v15 = vadd.f32 %v9766_v20, %v9552_v58  ;;  %v3061_v12 = vadd.f32 %v9766_v20, %v7728_v40  ;;  %v10779_v62 = vld [vmem:[#allocation8_spill] sm:$0xff]  ;;  %v9819_v38 = vpop.f32.mrb[111].mxu1 }
 0x273   : > { %v5311_v14 = vunpack.c.l.b16 %v5278_v29  ;;  %v5664_v37 = vmax.f32 %v5663_v13, %v4097_v49  ;;  %v3053_v55 = vadd.f32 %v9766_v20, %v3052_v9  ;;  %v7729_v0 = vpop.f32.mrb[186].mxu0  ;;  %v9809_v2 = vunpack.c.l.b16 %v4401_v19 }
 0x274   : > { %v3055_v33 = vpop.f32.mrb[187].mxu0  ;;  %v4843_v25 = vpack.c.bf16 %v4826_v22, %v4826_v22  ;;  %v9811_v18 = vmax.f32 %v5695_v42, %v4249_v45  ;;  %v4250_v61 = vmax.f32 %v3656_v34, 0.0  ;;  %v3064_v58 = vadd.f32 %v9766_v20, %v7729_v0 }
 0x275   : > { %10778 = vst [vmem:[#allocation15_spill] sm:$0xff] %v9809_v2  ;;  %v9817_v48 = vsel %vm4544_vm3, %v5311_v14, %v10779_v62  ;;  %v4099_v49 = vmax.f32 %v3053_v55, 0.0  ;;  %v5665_v52 = vmax.f32 %v5664_v37, %v4098_v32  ;;  %v3056_v29 = vadd.f32 %v9766_v20, %v3055_v33  ;;  %v9831_v37 = vpop.f32.mrb[112].mxu1 }
 0x276   : > { %10780 = vst [vmem:[#allocation17_spill] sm:$0xff] %v9817_v48  ;;  %v9823_v19 = vunpack.c.l.b16 %v4505_v5  ;;  %v5044_v22 = vrot.slane %v5043_v11, 1  ;;  %v5448_v45 = vrot.slane %v9787_v41, 4  ;;  %v5259_v40 = vrot.slane %v9693_v4, 4 }
 0x277   : > { %v5666_v13 = vmax.f32 %v5665_v52, %v4099_v49  ;;  %v4251_v9 = vmax.f32 %v3661_v15, 0.0  ;;  %v4101_v42 = vmax.f32 %v3061_v12, 0.0  ;;  %v4100_v14 = vmax.f32 %v3056_v29, 0.0  ;;  %v9837_v49 = vpop.f32.mrb[113].mxu1 }
 0x278   : > { %10781 = vst [vmem:[#allocation5_spill] sm:$0xff] %v9823_v19  ;;  %v3669_v34 = vadd.f32 %v9766_v20, %v9546_v28  ;;  %v3664_v32 = vadd.f32 %v9766_v20, %v9563_v26  ;;  %v9833_v0 = vunpack.c.l.b16 %v4843_v25  ;;  %v3672_v62 = vadd.f32 %v9766_v20, %v9555_v30  ;;  %v9840_v19 = vpop.f32.mrb[114].mxu1 }
 0x279   : > { %v5667_v55 = vrot.slane %v5666_v13, 4  ;;  %v7732_v5 = vpop.f32.mrb[188].mxu0  ;;  %v5912_v33 = vmax.f32 %v4250_v61, %v4251_v9  ;;  %v4102_v15 = vmax.f32 %v3064_v58, 0.0  ;;  %v5882_v12 = vmax.f32 %v4100_v14, %v4101_v42  ;;  %10783 = vst [vmem:[#allocation8_spill] sm:$0xff] %v9840_v19  ;;  %v9846_v9 = vpop.f32.mrb[115].mxu1 }
 0x27a   : > { %10782 = vst [vmem:[#allocation16_spill] sm:$0xff] %v9833_v0  ;;  %v3077_v52 = vadd.f32 %v9766_v20, %v7732_v5  ;;  %v3068_v28 = vpop.f32.mrb[189].mxu0  ;;  %v4252_v29 = vmax.f32 %v3664_v32, 0.0  ;;  %v9843_v25 = vmax.f32 %v5043_v11, %v5044_v22  ;;  %v5260_v61 = vmax.f32 %v9693_v4, %v5259_v40  ;;  %10785 = vst [vmem:[#allocation48_spill] sm:$0xff] %v9846_v9 }
 0x27b   : > { %v5668_v26 = vmax.f32 %v5666_v13, %v5667_v55  ;;  %v3069_v2 = vadd.f32 %v9766_v20, %v3068_v28  ;;  %v7733_v48 = vpop.f32.mrb[190].mxu0  ;;  %v5449_v30 = vmax.f32 %v9787_v41, %v5448_v45  ;;  %v5883_v58 = vmax.f32 %v5882_v12, %v4102_v15 }
 0x27c   : > { %10784 = vst [vmem:[#allocation47_spill] sm:$0xff] %v9843_v25  ;;  %v3080_v42 = vadd.f32 %v9766_v20, %v7733_v48  ;;  %v3071_v14 = vpop.f32.mrb[191].mxu0  ;;  %v4253_v5 = vmax.f32 %v3669_v34, 0.0  ;;  %v4254_v55 = vmax.f32 %v3672_v62, 0.0  ;;  %v4105_v28 = vmax.f32 %v3077_v52, 0.0 }
 0x27d   : > { %v5669_v32 = vrot.slane %v5668_v26, 2  ;;  %v4103_v0 = vmax.f32 %v3069_v2, 0.0  ;;  %v3072_v13 = vadd.f32 %v9766_v20, %v3071_v14  ;;  %v5913_v11 = vmax.f32 %v5912_v33, %v4252_v29  ;;  %v9855_v2 = vpop.f32.mrb[116].mxu1 }
 0x27e   : > { %v4106_v19 = vmax.f32 %v3080_v42, 0.0  ;;  %v3677_v4 = vadd.f32 %v9766_v20, %v9573_v3  ;;  %v5261_v41 = vrot.slane %v5260_v61, 2  ;;  %v5450_v45 = vrot.slane %v5449_v30, 2 }
 0x27f   : > { %v5670_v22 = vmax.f32 %v5668_v26, %v5669_v32  ;;  %v5884_v40 = vmax.f32 %v5883_v58, %v4103_v0  ;;  %v4104_v9 = vmax.f32 %v3072_v13, 0.0  ;;  %v5914_v48 = vmax.f32 %v5913_v11, %v4253_v5  ;;  %v9861_v0 = vpop.f32.mrb[117].mxu1 }
 0x280   : > { %v6101_v15 = vmax.f32 %v4105_v28, %v4106_v19  ;;  %v3685_v34 = vadd.f32 %v9766_v20, %v9567_v17  ;;  %v3680_v3 = vadd.f32 %v9766_v20, %v9580_v27  ;;  %v5697_v19 = vrot.slane %v9811_v18, 4  ;;  %v9866_v42 = vpop.f32.mrb[118].mxu1  ;;  %v8407_v27 = vld [vmem:[%s10708_s3 + $0x70] sm:$0xff]  }
 0x281   : > { %v5671_v12 = vrot.slane %v5670_v22, 1  ;;  %v5885_v62 = vmax.f32 %v5884_v40, %v4104_v9  ;;  %v7736_v52 = vpop.f32.mrb[192].mxu0  ;;  %v5915_v26 = vmax.f32 %v5914_v48, %v4254_v55  ;;  %v4255_v58 = vmax.f32 %v3677_v4, 0.0  ;;  %v9872_v28 = vpop.f32.mrb[119].mxu1  ;;  %7955 = vmatpush3.bf16.msra.mxu1 %v8407_v27 }
 0x282   : > { %v3084_v29 = vpop.f32.mrb[193].mxu0  ;;  %v3688_v17 = vadd.f32 %v9766_v20, %v9575_v47  ;;  %v4256_v13 = vmax.f32 %v3680_v3, 0.0  ;;  %10786 = vst [vmem:[#allocation49_spill] sm:$0xff] %v9872_v28  ;;  %v9874_v11 = vmax.f32 %v5449_v30, %v5450_v45  ;;  %v3093_v55 = vadd.f32 %v9766_v20, %v7736_v52  ;;  %7956 = vmatprep.subr.bf16.mxu1 %v10732_v43 }
 0x283   : > { %v5672_v9 = vmax.f32 %v5670_v22, %v5671_v12  ;;  %v5886_v14 = vrot.slane %v5885_v62, 4  ;;  %v3085_v5 = vadd.f32 %v9766_v20, %v3084_v29  ;;  %v7737_v32 = vpop.f32.mrb[194].mxu0  ;;  %v9877_v47 = vmax.f32 %v5260_v61, %v5261_v41 }
 0x284   : > { %v3087_v4 = vpop.f32.mrb[195].mxu0  ;;  %v4257_v40 = vmax.f32 %v3685_v34, 0.0  ;;  %v3096_v3 = vadd.f32 %v9766_v20, %v7737_v32  ;;  %v5698_v33 = vmax.f32 %v9811_v18, %v5697_v19  ;;  %v4258_v25 = vmax.f32 %v3688_v17, 0.0 }
 0x285   : > { %10787 = vst [vmem:[#allocation50_spill] sm:$0xff] %v9877_v47  ;;  %v5716_v22 = vpack.c.bf16 %v5672_v9, %v5672_v9  ;;  %v5887_v48 = vmax.f32 %v5885_v62, %v5886_v14  ;;  %v4107_v12 = vmax.f32 %v3085_v5, 0.0  ;;  %v3088_v29 = vadd.f32 %v9766_v20, %v3087_v4  ;;  %v9887_v14 = vpop.f32.mrb[120].mxu1  ;;  %v10788_v5 = vld [vmem:[#allocation18_spill] sm:$0xff] }
 0x286   : > { %v6131_v28 = vmax.f32 %v4255_v58, %v4256_v13  ;;  %v5916_v41 = vrot.slane %v5915_v26, 4  ;;  %v3701_v62 = vadd.f32 %v9766_v20, %v9588_v31  ;;  %v3693_v9 = vadd.f32 %v9766_v20, %v9593_v53 }
 0x287   : > { %v5749_v30 = vunpack.c.l.b16 %v5716_v22  ;;  %v5888_v45 = vrot.slane %v5887_v48, 2  ;;  %v6102_v52 = vmax.f32 %v6101_v15, %v4107_v12  ;;  %v4108_v61 = vmax.f32 %v3088_v29, 0.0  ;;  %v9893_v15 = vpop.f32.mrb[121].mxu1 }
 0x288   : > { %v6132_v34 = vmax.f32 %v6131_v28, %v4257_v40  ;;  %v4109_v58 = vmax.f32 %v3093_v55, 0.0  ;;  %v5699_v27 = vrot.slane %v5698_v33, 2  ;;  %v4259_v28 = vmax.f32 %v3693_v9, 0.0  ;;  %v9897_v53 = vpop.f32.mrb[122].mxu1 }
 0x289   : > { %v9891_v18 = vsel %vm4544_vm3, %v5749_v30, %v10788_v5  ;;  %v5889_v19 = vmax.f32 %v5887_v48, %v5888_v45  ;;  %v6103_v17 = vmax.f32 %v6102_v52, %v4108_v61  ;;  %v7740_v32 = vpop.f32.mrb[196].mxu0  ;;  %v3696_v31 = vadd.f32 %v9766_v20, %v9603_v21  ;;  %10790 = vst [vmem:[#allocation51_spill] sm:$0xff] %v9897_v53  ;;  %v9900_v55 = vpop.f32.mrb[123].mxu1 }
 0x28a   : > { %10789 = vst [vmem:[#allocation18_spill] sm:$0xff] %v9891_v18  ;;  %v3100_v13 = vpop.f32.mrb[197].mxu0  ;;  %v6133_v4 = vmax.f32 %v6132_v34, %v4258_v25  ;;  %v4110_v22 = vmax.f32 %v3096_v3, 0.0  ;;  %10791 = vst [vmem:[#allocation52_spill] sm:$0xff] %v9900_v55  ;;  %v3109_v30 = vadd.f32 %v9766_v20, %v7740_v32  ;;  %v5917_v52 = vmax.f32 %v5915_v26, %v5916_v41 }
 0x28b   : > { %v5890_v40 = vrot.slane %v5889_v19, 1  ;;  %v6104_v12 = vmax.f32 %v6103_v17, %v4109_v58  ;;  %v3101_v29 = vadd.f32 %v9766_v20, %v3100_v13  ;;  %v7741_v48 = vpop.f32.mrb[198].mxu0  ;;  %v4261_v61 = vmax.f32 %v3701_v62, 0.0 }
 0x28c   : > { %v3103_v45 = vpop.f32.mrb[199].mxu0  ;;  %v6134_v9 = vmax.f32 %v6133_v4, %v4259_v28  ;;  %v3112_v47 = vadd.f32 %v9766_v20, %v7741_v48  ;;  %v3704_v58 = vadd.f32 %v9766_v20, %v9597_v6  ;;  %v4260_v17 = vmax.f32 %v3696_v31, 0.0 }
 0x28d   : > { %v5891_v25 = vmax.f32 %v5889_v19, %v5890_v40  ;;  %v6105_v34 = vrot.slane %v6104_v12, 4  ;;  %v4111_v5 = vmax.f32 %v3101_v29, 0.0  ;;  %v3104_v21 = vadd.f32 %v9766_v20, %v3103_v45 }
 0x28e   : > { %v6135_v3 = vrot.slane %v6134_v9, 4  ;;  %v4113_v53 = vmax.f32 %v3109_v30, 0.0  ;;  %v6350_v41 = vmax.f32 %v4260_v17, %v4261_v61  ;;  %v3717_v62 = vadd.f32 %v9766_v20, %v9606_v1 }
 0x28f   : > { %v5935_v13 = vpack.c.bf16 %v5891_v25, %v5891_v25  ;;  %v6106_v18 = vmax.f32 %v6104_v12, %v6105_v34  ;;  %v6320_v55 = vmax.f32 %v4110_v22, %v4111_v5  ;;  %v4112_v32 = vmax.f32 %v3104_v21, 0.0 }
 0x290   : > { %v6136_v26 = vmax.f32 %v6134_v9, %v6135_v3  ;;  %v3709_v29 = vadd.f32 %v9766_v20, %v9613_v56  ;;  %v5452_v6 = vrot.slane %v9874_v11, 1  ;;  %v4114_v31 = vmax.f32 %v3112_v47, 0.0 }
 0x291   : > { %v5968_v19 = vunpack.c.l.b16 %v5935_v13  ;;  %v6107_v28 = vrot.slane %v6106_v18, 2  ;;  %v6321_v4 = vmax.f32 %v6320_v55, %v4112_v32  ;;  %v7744_v40 = vpop.f32.mrb[200].mxu0  ;;  %v5700_v12 = vmax.f32 %v5698_v33, %v5699_v27 }
 0x292   : > { %v3116_v48 = vpop.f32.mrb[201].mxu0  ;;  %v4262_v22 = vmax.f32 %v3704_v58, 0.0  ;;  %v3125_v55 = vadd.f32 %v9766_v20, %v7744_v40  ;;  %v5918_v34 = vrot.slane %v5917_v52, 2  ;;  %v6137_v56 = vrot.slane %v6136_v26, 2 }
 0x293   : > { %v9914_v30 = vsel %vm4544_vm3, %v5968_v19, %v9501_v7  ;;  %v6108_v45 = vmax.f32 %v6106_v18, %v6107_v28  ;;  %v6322_v61 = vmax.f32 %v6321_v4, %v4113_v53  ;;  %v3117_v1 = vadd.f32 %v9766_v20, %v3116_v48  ;;  %v7745_v9 = vpop.f32.mrb[202].mxu0 }
 0x294   : > { %v3119_v25 = vpop.f32.mrb[203].mxu0  ;;  %v4263_v5 = vmax.f32 %v3709_v29, 0.0  ;;  %v4265_v27 = vmax.f32 %v3717_v62, 0.0  ;;  %v3128_v7 = vadd.f32 %v9766_v20, %v7745_v9  ;;  %v6351_v58 = vmax.f32 %v6350_v41, %v4262_v22 }
 0x295   : > { %v6109_v21 = vrot.slane %v6108_v45, 1  ;;  %v6323_v47 = vmax.f32 %v6322_v61, %v4114_v31  ;;  %v3120_v33 = vadd.f32 %v9766_v20, %v3119_v25  ;;  %v4115_v3 = vmax.f32 %v3117_v1, 0.0 }
 0x296   : > { %v3720_v18 = vadd.f32 %v9766_v20, %v9615_v44  ;;  %v3712_v32 = vadd.f32 %v9766_v20, %v9620_v24  ;;  %v4117_v19 = vmax.f32 %v3125_v55, 0.0  ;;  %v5701_v28 = vrot.slane %v5700_v12, 1 }
 0x297   : > { %v6110_v53 = vmax.f32 %v6108_v45, %v6109_v21  ;;  %v6324_v17 = vrot.slane %v6323_v47, 4  ;;  %v4116_v13 = vmax.f32 %v3120_v33, 0.0  ;;  %v6352_v4 = vmax.f32 %v6351_v58, %v4263_v5 }
 0x298   : > { %v4266_v40 = vmax.f32 %v3720_v18, 0.0  ;;  %v4264_v61 = vmax.f32 %v3712_v32, 0.0  ;;  %v9925_v41 = vmax.f32 %v9874_v11, %v5452_v6  ;;  %v5919_v44 = vmax.f32 %v5917_v52, %v5918_v34 }
 0x299   : > { %v6154_v29 = vpack.c.bf16 %v6110_v53, %v6110_v53  ;;  %v6325_v31 = vmax.f32 %v6323_v47, %v6324_v17  ;;  %v4355_v62 = vmax.f32 %v4115_v3, %v4116_v13  ;;  %v7748_v48 = vpop.f32.mrb[204].mxu0  ;;  %v6138_v45 = vmax.f32 %v6136_v26, %v6137_v56 }
 0x29a   : > { %v3132_v22 = vpop.f32.mrb[205].mxu0  ;;  %v4385_v1 = vmax.f32 %v4265_v27, %v4266_v40  ;;  %v4118_v25 = vmax.f32 %v3128_v7, 0.0  ;;  %v3141_v33 = vadd.f32 %v9766_v20, %v7748_v48  ;;  %v9929_v3 = vmax.f32 %v5700_v12, %v5701_v28 }
 0x29b   : > { %v6187_v9 = vunpack.c.l.b16 %v6154_v29  ;;  %v4356_v21 = vmax.f32 %v4355_v62, %v4117_v19  ;;  %v3133_v24 = vadd.f32 %v9766_v20, %v3132_v22  ;;  %v7749_v55 = vpop.f32.mrb[206].mxu0  ;;  %v6326_v5 = vrot.slane %v6325_v31, 2 }
 0x29c   : > { %v3135_v47 = vpop.f32.mrb[207].mxu0  ;;  %v6353_v58 = vmax.f32 %v6352_v4, %v4264_v61  ;;  %v3144_v6 = vadd.f32 %v9766_v20, %v7749_v55  ;;  %v5497_v34 = vpack.c.bf16 %v9925_v41, %v9925_v41  ;;  %v5920_v27 = vrot.slane %v5919_v44, 1 }
 0x29d   : > { %v9933_v11 = vsel %vm4544_vm3, %v6187_v9, %v9538_v8  ;;  %v4119_v52 = vmax.f32 %v3133_v24, 0.0  ;;  %v4357_v26 = vmax.f32 %v4356_v21, %v4118_v25  ;;  %v3136_v56 = vadd.f32 %v9766_v20, %v3135_v47 }
 0x29e   : > { %v3725_v7 = vadd.f32 %v9766_v20, %v9637_v63  ;;  %v6139_v18 = vrot.slane %v6138_v45, 1  ;;  %v6354_v53 = vrot.slane %v6353_v58, 4  ;;  %v3728_v8 = vadd.f32 %v9766_v20, %v9651_v39 }
 0x29f   : > { %v4358_v12 = vmax.f32 %v4357_v26, %v4119_v52  ;;  %v4121_v17 = vmax.f32 %v3141_v33, 0.0  ;;  %v4120_v13 = vmax.f32 %v3136_v56, 0.0  ;;  %v3733_v32 = vadd.f32 %v9766_v20, %v9629_v51  ;;  %v8408_v51 = vld [vmem:[%s10708_s3 + $0x78] sm:$0xff]  }
 0x2a0   : > { %v4267_v19 = vmax.f32 %v3725_v7, 0.0  ;;  %v6327_v28 = vmax.f32 %v6325_v31, %v6326_v5  ;;  %v4122_v4 = vmax.f32 %v3144_v6, 0.0  ;;  %v5719_v29 = vpack.c.bf16 %v9929_v3, %v9929_v3  ;;  %7957 = vmatpush3.bf16.msra.mxu1 %v8408_v51 }
 0x2a1   : > { %v7752_v40 = vpop.f32.mrb[208].mxu0  ;;  %v3736_v63 = vadd.f32 %v9766_v20, %v9646_v59  ;;  %v4459_v62 = vmax.f32 %v4120_v13, %v4121_v17  ;;  %v4268_v41 = vmax.f32 %v3728_v8, 0.0  ;;  %v5921_v9 = vmax.f32 %v5919_v44, %v5920_v27  ;;  %7962 = vmatprep.subr.bf16.mxu1 %v10732_v43 }
 0x2a2   : > { %v3157_v48 = vadd.f32 %v9766_v20, %v7752_v40  ;;  %v3148_v61 = vpop.f32.mrb[209].mxu0  ;;  %v4386_v39 = vmax.f32 %v4385_v1, %v4267_v19  ;;  %v9954_v25 = vmax.f32 %v6138_v45, %v6139_v18  ;;  %v6355_v21 = vmax.f32 %v6353_v58, %v6354_v53  ;;  %v10792_v40 = vld [vmem:[#allocation27_spill] sm:$0xff] }
 0x2a3   : > { %v3149_v31 = vadd.f32 %v9766_v20, %v3148_v61  ;;  %v7753_v22 = vpop.f32.mrb[210].mxu0  ;;  %v4359_v24 = vrot.slane %v4358_v12, 4  ;;  %v4460_v55 = vmax.f32 %v4459_v62, %v4122_v4  ;;  %v4269_v33 = vmax.f32 %v3733_v32, 0.0 }
 0x2a4   : > { %v3160_v59 = vadd.f32 %v9766_v20, %v7753_v22  ;;  %v3151_v5 = vpop.f32.mrb[211].mxu0  ;;  %v6328_v1 = vrot.slane %v6327_v28, 1  ;;  %v4270_v52 = vmax.f32 %v3736_v63, 0.0  ;;  %v4125_v26 = vmax.f32 %v3157_v48, 0.0 }
 0x2a5   : > { %v4123_v47 = vmax.f32 %v3149_v31, 0.0  ;;  %v3152_v3 = vadd.f32 %v9766_v20, %v3151_v5  ;;  %v4387_v44 = vmax.f32 %v4386_v39, %v4268_v41  ;;  %v3741_v45 = vadd.f32 %v9766_v20, %v9658_v16  ;;  %v10793_v39 = vld [vmem:[#allocation26_spill] sm:$0xff] }
 0x2a6   : > { %v4126_v6 = vmax.f32 %v3160_v59, 0.0  ;;  %v6356_v27 = vrot.slane %v6355_v21, 2  ;;  %v3749_v7 = vadd.f32 %v9766_v20, %v9655_v54  ;;  %v4360_v18 = vmax.f32 %v4358_v12, %v4359_v24 }
 0x2a7   : > { %v4461_v58 = vmax.f32 %v4460_v55, %v4123_v47  ;;  %v4124_v56 = vmax.f32 %v3152_v3, 0.0  ;;  %v9963_v8 = vmax.f32 %v4387_v44, %v4269_v33  ;;  %v4271_v17 = vmax.f32 %v3741_v45, 0.0 }
 0x2a8   : > { %v4797_v53 = vmax.f32 %v4125_v26, %v4126_v6  ;;  %v9965_v13 = vunpack.c.l.b16 %v5497_v34  ;;  %v3744_v16 = vadd.f32 %v9766_v20, %v10792_v40  ;;  %v6329_v63 = vmax.f32 %v6327_v28, %v6328_v1 }
 0x2a9   : > { %v4462_v19 = vmax.f32 %v4461_v58, %v4124_v56  ;;  %v7756_v4 = vpop.f32.mrb[212].mxu0  ;;  %v5938_v62 = vpack.c.bf16 %v5921_v9, %v5921_v9  ;;  %v4489_v61 = vmax.f32 %v4270_v52, %v4271_v17  ;;  %v3752_v54 = vadd.f32 %v9766_v20, %v10793_v39  ;;  %v10794_v56 = vld [vmem:[#allocation29_spill] sm:$0xff] }
 0x2aa   : > { %v3164_v48 = vpop.f32.mrb[213].mxu0  ;;  %v6357_v34 = vmax.f32 %v6355_v21, %v6356_v27  ;;  %v4272_v31 = vmax.f32 %v3744_v16, 0.0  ;;  %v4361_v22 = vrot.slane %v4360_v18, 2  ;;  %v9973_v24 = vunpack.c.l.b16 %v5719_v29 }
 0x2ab   : > { %v4463_v12 = vrot.slane %v4462_v19, 4  ;;  %v3165_v41 = vadd.f32 %v9766_v20, %v3164_v48  ;;  %v7757_v51 = vpop.f32.mrb[214].mxu0  ;;  %v6157_v59 = vpack.c.bf16 %v9954_v25, %v9954_v25  ;;  %v4273_v28 = vmax.f32 %v3749_v7, 0.0  ;;  %v10796_v48 = vld [vmem:[#allocation31_spill] sm:$0xff] }
 0x2ac   : > { %v3167_v55 = vpop.f32.mrb[215].mxu0  ;;  %v3173_v5 = vadd.f32 %v9766_v20, %v7756_v4  ;;  %v6373_v47 = vpack.c.bf16 %v6329_v63, %v6329_v63  ;;  %v9979_v3 = vunpack.c.l.b16 %v5938_v62  ;;  %v4274_v52 = vmax.f32 %v3752_v54, 0.0  ;;  %v10795_v62 = vld [vmem:[#allocation28_spill] sm:$0xff] }
 0x2ad   : > { %v4464_v9 = vmax.f32 %v4462_v19, %v4463_v12  ;;  %v4127_v33 = vmax.f32 %v3165_v41, 0.0  ;;  %v3168_v1 = vadd.f32 %v9766_v20, %v3167_v55  ;;  %v4490_v21 = vmax.f32 %v4489_v61, %v4272_v31 }
 0x2ae   : > { %v6358_v44 = vrot.slane %v6357_v34, 1  ;;  %v4362_v45 = vmax.f32 %v4360_v18, %v4361_v22  ;;  %v3176_v58 = vadd.f32 %v9766_v20, %v7757_v51  ;;  %v3757_v27 = vadd.f32 %v9766_v20, %v10794_v56 }
 0x2af   : > { %v4465_v26 = vrot.slane %v4464_v9, 2  ;;  %v4798_v6 = vmax.f32 %v4797_v53, %v4127_v33  ;;  %v4128_v29 = vmax.f32 %v3168_v1, 0.0  ;;  %v4491_v25 = vmax.f32 %v4490_v21, %v4273_v28  ;;  %v10797_v21 = vld [vmem:[#allocation30_spill] sm:$0xff] }
 0x2b0   : > { %v4129_v17 = vmax.f32 %v3173_v5, 0.0  ;;  %v9984_v4 = vunpack.c.l.b16 %v6157_v59  ;;  %v4389_v63 = vrot.slane %v9963_v8, 4  ;;  %v3765_v18 = vadd.f32 %v9766_v20, %v10795_v62  ;;  %v10813_v62 = vld [vmem:[#allocation45_spill] sm:$0xff] }
 0x2b1   : > { %v4466_v7 = vmax.f32 %v4464_v9, %v4465_v26  ;;  %v4799_v19 = vmax.f32 %v4798_v6, %v4128_v29  ;;  %v7760_v40 = vpop.f32.mrb[216].mxu0  ;;  %v4492_v53 = vmax.f32 %v4491_v25, %v4274_v52  ;;  %v3760_v61 = vadd.f32 %v9766_v20, %v10796_v48 }
 0x2b2   : > { %v3180_v16 = vpop.f32.mrb[217].mxu0  ;;  %v9991_v39 = vunpack.c.l.b16 %v6373_v47  ;;  %v4363_v31 = vrot.slane %v4362_v45, 1  ;;  %v4130_v22 = vmax.f32 %v3176_v58, 0.0  ;;  %v9994_v55 = vmax.f32 %v6357_v34, %v6358_v44 }
 0x2b3   : > { %v4467_v54 = vrot.slane %v4466_v7, 1  ;;  %v4800_v12 = vmax.f32 %v4799_v19, %v4129_v17  ;;  %v3181_v41 = vadd.f32 %v9766_v20, %v3180_v16  ;;  %v7761_v51 = vpop.f32.mrb[218].mxu0  ;;  %v4275_v28 = vmax.f32 %v3757_v27, 0.0 }
 0x2b4   : > { %v3183_v59 = vpop.f32.mrb[219].mxu0  ;;  %v3189_v5 = vadd.f32 %v9766_v20, %v7760_v40  ;;  %v4390_v47 = vmax.f32 %v9963_v8, %v4389_v63  ;;  %v4277_v52 = vmax.f32 %v3765_v18, 0.0  ;;  %v3768_v26 = vadd.f32 %v9766_v20, %v10797_v21  ;;  %v10798_v8 = vld [vmem:[#allocation33_spill] sm:$0xff] }
 0x2b5   : > { %v4468_v9 = vmax.f32 %v4466_v7, %v4467_v54  ;;  %v4131_v33 = vmax.f32 %v3181_v41, 0.0  ;;  %v3184_v1 = vadd.f32 %v9766_v20, %v3183_v59  ;;  %v4276_v6 = vmax.f32 %v3760_v61, 0.0 }
 0x2b6   : > { %v3192_v34 = vadd.f32 %v9766_v20, %v7761_v51  ;;  %v10002_v58 = vmax.f32 %v4362_v45, %v4363_v31  ;;  %v4801_v56 = vrot.slane %v4800_v12, 4  ;;  %v4493_v27 = vrot.slane %v4492_v53, 4 }
 0x2b7   : > { %v4503_v29 = vpack.c.bf16 %v4468_v9, %v4468_v9  ;;  %v5016_v25 = vmax.f32 %v4130_v22, %v4131_v33  ;;  %v4132_v44 = vmax.f32 %v3184_v1, 0.0  ;;  %v4827_v7 = vmax.f32 %v4275_v28, %v4276_v6 }
 0x2b8   : > { %v4133_v19 = vmax.f32 %v3189_v5, 0.0  ;;  %v3773_v63 = vadd.f32 %v9766_v20, %v10798_v8  ;;  %v4391_v18 = vrot.slane %v4390_v47, 2  ;;  %v4278_v61 = vmax.f32 %v3768_v26, 0.0  ;;  %v10799_v5 = vld [vmem:[#allocation32_spill] sm:$0xff] }
 0x2b9   : > { %v4536_v17 = vunpack.c.l.b16 %v4503_v29  ;;  %v5017_v40 = vmax.f32 %v5016_v25, %v4132_v44  ;;  %v7764_v16 = vpop.f32.mrb[220].mxu0  ;;  %v4828_v54 = vmax.f32 %v4827_v7, %v4277_v52  ;;  %v4134_v41 = vmax.f32 %v3192_v34, 0.0  ;;  %v10800_v34 = vld [vmem:[#allocation34_spill] sm:$0xff] }
 0x2ba   : > { %v3196_v48 = vpop.f32.mrb[221].mxu0  ;;  %v4802_v59 = vmax.f32 %v4800_v12, %v4801_v56  ;;  %v4494_v28 = vmax.f32 %v4492_v53, %v4493_v27  ;;  %v3781_v33 = vadd.f32 %v9766_v20, %v10799_v5  ;;  %v4279_v1 = vmax.f32 %v3773_v63, 0.0  ;;  %v10801_v27 = vld [vmem:[#allocation35_spill] sm:$0xff] }
 0x2bb   : > { %v10010_v45 = vsel %vm4546_vm4, %v4536_v17, %v9797_v57  ;;  %v5018_v51 = vmax.f32 %v5017_v40, %v4133_v19  ;;  %v3197_v31 = vadd.f32 %v9766_v20, %v3196_v48  ;;  %v7765_v22 = vpop.f32.mrb[222].mxu0  ;;  %v4399_v21 = vpack.c.bf16 %v10002_v58, %v10002_v58 }
 0x2bc   : > { %v3199_v9 = vpop.f32.mrb[223].mxu0  ;;  %v3205_v26 = vadd.f32 %v9766_v20, %v7764_v16  ;;  %v4392_v6 = vmax.f32 %v4390_v47, %v4391_v18  ;;  %v3208_v29 = vadd.f32 %v9766_v20, %v7765_v22  ;;  %v4829_v25 = vmax.f32 %v4828_v54, %v4278_v61  ;;  %v10802_v18 = vld [vmem:[#allocation13_spill] sm:$0xff] }
 0x2bd   : > { %v5019_v52 = vmax.f32 %v5018_v51, %v4134_v41  ;;  %v3200_v57 = vadd.f32 %v9766_v20, %v3199_v9  ;;  %v3784_v53 = vadd.f32 %v9766_v20, %v10800_v34  ;;  %v4135_v44 = vmax.f32 %v3197_v31, 0.0 }
 0x2be   : > { %v3776_v7 = vadd.f32 %v9766_v20, %v10801_v27  ;;  %v4803_v17 = vrot.slane %v4802_v59, 2  ;;  %v4495_v58 = vrot.slane %v4494_v28, 2  ;;  %v4281_v19 = vmax.f32 %v3781_v33, 0.0 }
 0x2bf   : > { %v5020_v12 = vrot.slane %v5019_v52, 4  ;;  %v4136_v56 = vmax.f32 %v3200_v57, 0.0  ;;  %v4830_v40 = vmax.f32 %v4829_v25, %v4279_v1  ;;  %v4137_v16 = vmax.f32 %v3205_v26, 0.0 }
 0x2c0   : > { %v4280_v47 = vmax.f32 %v3776_v7, 0.0  ;;  %v3797_v48 = vadd.f32 %v9766_v20, %v10802_v18  ;;  %v4282_v31 = vmax.f32 %v3784_v53, 0.0  ;;  %v4393_v22 = vrot.slane %v4392_v6, 1 }
 0x2c1   : > { %v5235_v8 = vmax.f32 %v4135_v44, %v4136_v56  ;;  %v7768_v63 = vpop.f32.mrb[224].mxu0  ;;  %v5021_v61 = vmax.f32 %v5019_v52, %v5020_v12  ;;  %v4831_v41 = vrot.slane %v4830_v40, 4  ;;  %v4138_v9 = vmax.f32 %v3208_v29, 0.0 }
 0x2c2   : > { %v3221_v54 = vadd.f32 %v9766_v20, %v7768_v63  ;;  %v3212_v51 = vpop.f32.mrb[225].mxu0  ;;  %v4804_v1 = vmax.f32 %v4802_v59, %v4803_v17  ;;  %v4496_v26 = vmax.f32 %v4494_v28, %v4495_v58  ;;  %v5046_v34 = vmax.f32 %v4280_v47, %v4281_v19 }
 0x2c3   : > { %v5236_v5 = vmax.f32 %v5235_v8, %v4137_v16  ;;  %v3213_v57 = vadd.f32 %v9766_v20, %v3212_v51  ;;  %v7769_v33 = vpop.f32.mrb[226].mxu0  ;;  %v4832_v25 = vmax.f32 %v4830_v40, %v4831_v41  ;;  %v4285_v12 = vmax.f32 %v3797_v48, 0.0 }
 0x2c4   : > { %v3215_v44 = vpop.f32.mrb[227].mxu0  ;;  %v5022_v7 = vrot.slane %v5021_v61, 2  ;;  %v4141_v63 = vmax.f32 %v3221_v54, 0.0  ;;  %v3789_v53 = vadd.f32 %v9766_v20, %v9717_v23  ;;  %v5047_v29 = vmax.f32 %v5046_v34, %v4282_v31 }
 0x2c5   : > { %v4139_v56 = vmax.f32 %v3213_v57, 0.0  ;;  %v5237_v27 = vmax.f32 %v5236_v5, %v4138_v9  ;;  %v3216_v52 = vadd.f32 %v9766_v20, %v3215_v44  ;;  %v3224_v8 = vadd.f32 %v9766_v20, %v7769_v33 }
 0x2c6   : > { %v3800_v59 = vadd.f32 %v9766_v20, %v9719_v46  ;;  %v10034_v28 = vunpack.c.l.b16 %v4399_v21  ;;  %v4833_v17 = vrot.slane %v4832_v25, 2  ;;  %v4283_v58 = vmax.f32 %v3789_v53, 0.0 }
 0x2c7   : > { %v5238_v16 = vmax.f32 %v5237_v27, %v4139_v56  ;;  %v4140_v18 = vmax.f32 %v3216_v52, 0.0  ;;  %v3792_v19 = vadd.f32 %v9766_v20, %v9721_v36  ;;  %v4497_v40 = vrot.slane %v4496_v26, 1  ;;  %v10803_v27 = vld [vmem:[#allocation36_spill] sm:$0xff] }
 0x2c8   : > { %v4286_v54 = vmax.f32 %v3800_v59, 0.0  ;;  %v4805_v41 = vrot.slane %v4804_v1, 1  ;;  %v10038_v51 = vmax.f32 %v4392_v6, %v4393_v22  ;;  %v5048_v31 = vmax.f32 %v5047_v29, %v4283_v58  ;;  %v10806_v58 = vld [vmem:[#allocation38_spill] sm:$0xff] }
 0x2c9   : > { %v5239_v47 = vrot.slane %v5238_v16, 4  ;;  %v5454_v48 = vmax.f32 %v4140_v18, %v4141_v63  ;;  %v7772_v23 = vpop.f32.mrb[228].mxu0  ;;  %v4284_v9 = vmax.f32 %v3792_v19, 0.0  ;;  %v5023_v57 = vmax.f32 %v5021_v61, %v5022_v7  ;;  %v10804_v18 = vld [vmem:[#allocation14_spill] sm:$0xff] }
 0x2ca   : > { %v3228_v5 = vpop.f32.mrb[229].mxu0  ;;  %v4142_v21 = vmax.f32 %v3224_v8, 0.0  ;;  %v5265_v33 = vmax.f32 %v4285_v12, %v4286_v54  ;;  %v4834_v44 = vmax.f32 %v4832_v25, %v4833_v17  ;;  %v3805_v36 = vadd.f32 %v9766_v20, %v10803_v27  ;;  %v10805_v25 = vld [vmem:[#allocation37_spill] sm:$0xff]  ;;  %v10807_v27 = vld [vmem:[#allocation40_spill] sm:$0xff] }
 0x2cb   : > { %v5240_v46 = vmax.f32 %v5238_v16, %v5239_v47  ;;  %v7773_v34 = vpop.f32.mrb[230].mxu0  ;;  %v5049_v56 = vmax.f32 %v5048_v31, %v4284_v9  ;;  %v3229_v52 = vadd.f32 %v9766_v20, %v3228_v5  ;;  %v4498_v53 = vmax.f32 %v4496_v26, %v4497_v40 }
 0x2cc   : > { %v3231_v63 = vpop.f32.mrb[231].mxu0  ;;  %v3813_v6 = vadd.f32 %v9766_v20, %v10804_v18  ;;  %v3237_v22 = vadd.f32 %v9766_v20, %v7772_v23  ;;  %v5455_v29 = vmax.f32 %v5454_v48, %v4142_v21  ;;  %v4806_v61 = vmax.f32 %v4804_v1, %v4805_v41 }
 0x2cd   : > { %v5241_v7 = vrot.slane %v5240_v46, 2  ;;  %v4287_v16 = vmax.f32 %v3805_v36, 0.0  ;;  %v4143_v12 = vmax.f32 %v3229_v52, 0.0  ;;  %v5050_v8 = vrot.slane %v5049_v56, 4 }
 0x2ce   : > { %v3816_v59 = vadd.f32 %v9766_v20, %v10805_v25  ;;  %v3240_v17 = vadd.f32 %v9766_v20, %v7773_v34  ;;  %v3808_v19 = vadd.f32 %v9766_v20, %v10806_v58  ;;  %v5024_v26 = vrot.slane %v5023_v57, 1  ;;  %v10808_v58 = vld [vmem:[#allocation39_spill] sm:$0xff] }
 0x2cf   : > { %v4835_v40 = vrot.slane %v4834_v44, 1  ;;  %v5266_v47 = vmax.f32 %v5265_v33, %v4287_v16  ;;  %v5456_v54 = vmax.f32 %v5455_v29, %v4143_v12  ;;  %v4289_v31 = vmax.f32 %v3813_v6, 0.0 }
 0x2d0   : > { %v4145_v23 = vmax.f32 %v3237_v22, 0.0  ;;  %v4146_v48 = vmax.f32 %v3240_v17, 0.0  ;;  %v4288_v1 = vmax.f32 %v3808_v19, 0.0  ;;  %v5242_v9 = vmax.f32 %v5240_v46, %v5241_v7  ;;  %v10810_v17 = vld [vmem:[#allocation42_spill] sm:$0xff] }
 0x2d1   : > { %v7776_v41 = vpop.f32.mrb[232].mxu0  ;;  %v4290_v5 = vmax.f32 %v3816_v59, 0.0  ;;  %v3232_v21 = vadd.f32 %v9766_v20, %v3231_v63  ;;  %v3821_v36 = vadd.f32 %v9766_v20, %v10807_v27  ;;  %v5051_v52 = vmax.f32 %v5049_v56, %v5050_v8  ;;  %v10061_v59 = vld [vmem:[%s10707_s2] ss:$0 sm:$0xff]  ;;  %v10809_v56 = vld [vmem:[#allocation41_spill] sm:$0xff] }
 0x2d2   : > { %v3244_v34 = vpop.f32.mrb[233].mxu0  ;;  %v5673_v18 = vmax.f32 %v4145_v23, %v4146_v48  ;;  %v5267_v25 = vmax.f32 %v5266_v47, %v4288_v1  ;;  %v3829_v33 = vadd.f32 %v9766_v20, %v10808_v58  ;;  %v4402_v6 = vpack.c.bf16 %v10038_v51, %v10038_v51 }
 0x2d3   : > { %v7777_v29 = vpop.f32.mrb[234].mxu0  ;;  %v4506_v22 = vpack.c.bf16 %v4498_v53, %v4498_v53  ;;  %v4144_v16 = vmax.f32 %v3232_v21, 0.0  ;;  %v4291_v46 = vmax.f32 %v3821_v36, 0.0  ;;  %v4841_v12 = vpack.c.bf16 %v4806_v61, %v4806_v61  ;;  %v10811_v36 = vld [vmem:[#allocation44_spill] sm:$0xff] }
 0x2d4   : > { %v3247_v7 = vpop.f32.mrb[235].mxu0  ;;  %v5268_v63 = vmax.f32 %v5267_v25, %v4289_v31  ;;  %v3832_v8 = vadd.f32 %v10061_v59, %v10809_v56  ;;  %v3824_v20 = vadd.f32 %v10061_v59, %v10810_v17  ;;  %v5025_v19 = vmax.f32 %v5023_v57, %v5024_v26 }
 0x2d5   : > { %v4836_v47 = vmax.f32 %v4834_v44, %v4835_v40  ;;  %v5457_v51 = vmax.f32 %v5456_v54, %v4144_v16  ;;  %v5484_v53 = vmax.f32 %v4290_v5, %v4291_v46  ;;  %v5243_v23 = vrot.slane %v5242_v9, 1  ;;  %v10812_v5 = vld [vmem:[#allocation43_spill] sm:$0xff] }
 0x2d6   : > { %v5052_v48 = vrot.slane %v5051_v52, 2  ;;  %v4293_v1 = vmax.f32 %v3829_v33, 0.0  ;;  %v4292_v61 = vmax.f32 %v3824_v20, 0.0  ;;  %v10067_v31 = vunpack.c.l.b16 %v4402_v6 }
 0x2d7   : > { %v10069_v21 = vunpack.c.l.b16 %v4506_v22  ;;  %v5458_v27 = vrot.slane %v5457_v51, 4  ;;  %v3837_v25 = vadd.f32 %v10061_v59, %v10811_v36  ;;  %v10073_v58 = vunpack.c.l.b16 %v4841_v12 }
 0x2d8   : > { %v4294_v56 = vmax.f32 %v3832_v8, 0.0  ;;  %v5485_v17 = vmax.f32 %v5484_v53, %v4292_v61  ;;  %v3245_v57 = vadd.f32 %v10061_v59, %v3244_v34  ;;  %v5060_v26 = vpack.c.bf16 %v5025_v19, %v5025_v19  ;;  %v10814_v53 = vld [vmem:[#allocation46_spill] sm:$0xff] }
 0x2d9   : > { %v7780_v44 = vpop.f32.mrb[236].mxu0  ;;  %v4844_v40 = vpack.c.bf16 %v4836_v47, %v4836_v47  ;;  %v5459_v54 = vmax.f32 %v5457_v51, %v5458_v27  ;;  %v3845_v33 = vadd.f32 %v10061_v59, %v10812_v5  ;;  %v5244_v22 = vmax.f32 %v5242_v9, %v5243_v23 }
 0x2da   : > { %v3260_v6 = vpop.f32.mrb[237].mxu0  ;;  %v5053_v16 = vmax.f32 %v5051_v52, %v5052_v48  ;;  %v5486_v46 = vmax.f32 %v5485_v17, %v4293_v1  ;;  %v4147_v20 = vmax.f32 %v3245_v57, 0.0  ;;  %v4295_v12 = vmax.f32 %v3837_v25, 0.0 }
 0x2db   : > { %v7781_v32 = vpop.f32.mrb[238].mxu0  ;;  %v5460_v36 = vrot.slane %v5459_v54, 2  ;;  %v3848_v8 = vadd.f32 %v10061_v59, %v10813_v62  ;;  %v3840_v34 = vadd.f32 %v10061_v59, %v10814_v53  ;;  %v5269_v47 = vrot.slane %v5268_v63, 4 }
 0x2dc   : > { %v3263_v19 = vpop.f32.mrb[239].mxu0  ;;  %v10082_v51 = vmax.f32 %v5486_v46, %v4294_v56  ;;  %v3253_v61 = vadd.f32 %v10061_v59, %v7776_v41  ;;  %v5674_v27 = vmax.f32 %v5673_v18, %v4147_v20  ;;  %v10085_v9 = vunpack.c.l.b16 %v5060_v26 }
 0x2dd   : > { %v4297_v52 = vmax.f32 %v3845_v33, 0.0  ;;  %v4296_v23 = vmax.f32 %v3840_v34, 0.0  ;;  %v3248_v48 = vadd.f32 %v10061_v59, %v3247_v7  ;;  %v10088_v1 = vunpack.c.l.b16 %v4844_v40 }
 0x2de   : > { %v5279_v25 = vpack.c.bf16 %v5244_v22, %v5244_v22  ;;  %v3256_v62 = vadd.f32 %v10061_v59, %v7777_v29  ;;  %v3853_v17 = vadd.f32 %v10061_v59, %v9803_v50  ;;  %v5461_v57 = vmax.f32 %v5459_v54, %v5460_v36 }
 0x2df   : > { %v4298_v56 = vmax.f32 %v3848_v8, 0.0  ;;  %v5703_v5 = vmax.f32 %v4295_v12, %v4296_v23  ;;  %v4148_v46 = vmax.f32 %v3248_v48, 0.0  ;;  %v5054_v41 = vrot.slane %v5053_v16, 1 }
 0x2e0   : > { %v5270_v18 = vmax.f32 %v5268_v63, %v5269_v47  ;;  %v4149_v26 = vmax.f32 %v3253_v61, 0.0  ;;  %v3861_v33 = vadd.f32 %v10061_v59, %v9799_v10  ;;  %v4299_v53 = vmax.f32 %v3853_v17, 0.0 }
 0x2e1   : > { %v7784_v20 = vpop.f32.mrb[240].mxu0  ;;  %v5704_v7 = vmax.f32 %v5703_v5, %v4297_v52  ;;  %v5675_v40 = vmax.f32 %v5674_v27, %v4148_v46  ;;  %v3261_v22 = vadd.f32 %v10061_v59, %v3260_v6  ;;  %v10096_v34 = vunpack.c.l.b16 %v5279_v25 }
 0x2e2   : > { %v3276_v29 = vpop.f32.mrb[241].mxu0  ;;  %v4150_v50 = vmax.f32 %v3256_v62, 0.0  ;;  %v3269_v54 = vadd.f32 %v10061_v59, %v7780_v44  ;;  %v3264_v36 = vadd.f32 %v10061_v59, %v3263_v19  ;;  %v5462_v63 = vrot.slane %v5461_v57, 1 }
 0x2e3   : > { %v7785_v12 = vpop.f32.mrb[242].mxu0  ;;  %v5676_v8 = vmax.f32 %v5675_v40, %v4149_v26  ;;  %v5705_v47 = vmax.f32 %v5704_v7, %v4298_v56  ;;  %v4151_v61 = vmax.f32 %v3261_v22, 0.0  ;;  %v10100_v23 = vmax.f32 %v5053_v16, %v5054_v41 }
 0x2e4   : > { %v3279_v10 = vpop.f32.mrb[243].mxu0  ;;  %v5271_v27 = vrot.slane %v5270_v18, 2  ;;  %v4301_v52 = vmax.f32 %v3861_v33, 0.0  ;;  %v4152_v48 = vmax.f32 %v3264_v36, 0.0  ;;  %v3272_v62 = vadd.f32 %v10061_v59, %v7781_v32 }
 0x2e5   : > { %v5677_v6 = vrot.slane %v5676_v8, 4  ;;  %v5706_v17 = vmax.f32 %v5705_v47, %v4299_v53  ;;  %v5892_v25 = vmax.f32 %v4150_v50, %v4151_v61  ;;  %v4153_v5 = vmax.f32 %v3269_v54, 0.0 }
 0x2e6   : > { %v3864_v44 = vadd.f32 %v10061_v59, %v9813_v35  ;;  %v3856_v19 = vadd.f32 %v10061_v59, %v9819_v38  ;;  %v3877_v56 = vadd.f32 %v10061_v59, %v9831_v37  ;;  %v5463_v16 = vmax.f32 %v5461_v57, %v5462_v63  ;;  %v10815_v57 = vld [vmem:[#allocation8_spill] sm:$0xff] }
 0x2e7   : > { %v5678_v46 = vmax.f32 %v5676_v8, %v5677_v6  ;;  %v5707_v41 = vrot.slane %v5706_v17, 4  ;;  %v5893_v26 = vmax.f32 %v5892_v25, %v4152_v48  ;;  %v5063_v33 = vpack.c.bf16 %v10100_v23, %v10100_v23 }
 0x2e8   : > { %v10111_v7 = vmax.f32 %v5270_v18, %v5271_v27  ;;  %v4302_v32 = vmax.f32 %v3864_v44, 0.0  ;;  %v4300_v40 = vmax.f32 %v3856_v19, 0.0  ;;  %v4154_v50 = vmax.f32 %v3272_v62, 0.0 }
 0x2e9   : > { %v7788_v53 = vpop.f32.mrb[244].mxu0  ;;  %v5679_v22 = vrot.slane %v5678_v46, 2  ;;  %v5708_v35 = vmax.f32 %v5706_v17, %v5707_v41  ;;  %v5894_v54 = vmax.f32 %v5893_v26, %v4153_v5  ;;  %v4305_v47 = vmax.f32 %v3877_v56, 0.0  ;;  %v10816_v26 = vld [vmem:[#allocation48_spill] sm:$0xff] }
 0x2ea   : > { %v3292_v38 = vpop.f32.mrb[245].mxu0  ;;  %v5922_v36 = vmax.f32 %v4300_v40, %v4301_v52  ;;  %v3869_v37 = vadd.f32 %v10061_v59, %v9837_v49  ;;  %v3880_v63 = vadd.f32 %v10061_v59, %v10815_v57  ;;  %v5498_v61 = vpack.c.bf16 %v5463_v16, %v5463_v16 }
 0x2eb   : > { %v7789_v8 = vpop.f32.mrb[246].mxu0  ;;  %v5680_v18 = vmax.f32 %v5678_v46, %v5679_v22  ;;  %v5709_v27 = vrot.slane %v5708_v35, 2  ;;  %v5895_v48 = vmax.f32 %v5894_v54, %v4154_v50  ;;  %v3277_v17 = vadd.f32 %v10061_v59, %v3276_v29 }
 0x2ec   : > { %v3295_v6 = vpop.f32.mrb[247].mxu0  ;;  %v4303_v25 = vmax.f32 %v3869_v37, 0.0  ;;  %v5923_v44 = vmax.f32 %v5922_v36, %v4302_v32  ;;  %v4306_v62 = vmax.f32 %v3880_v63, 0.0  ;;  %v3285_v56 = vadd.f32 %v10061_v59, %v7784_v20 }
 0x2ed   : > { %v5681_v5 = vrot.slane %v5680_v18, 1  ;;  %v5710_v52 = vmax.f32 %v5708_v35, %v5709_v27  ;;  %v5896_v19 = vrot.slane %v5895_v48, 4  ;;  %v3872_v40 = vadd.f32 %v10061_v59, %v10816_v26 }
 0x2ee   : > { %v5924_v49 = vmax.f32 %v5923_v44, %v4303_v25  ;;  %v6141_v41 = vmax.f32 %v4305_v47, %v4306_v62  ;;  %v3280_v16 = vadd.f32 %v10061_v59, %v3279_v10  ;;  %v3288_v32 = vadd.f32 %v10061_v59, %v7785_v12 }
 0x2ef   : > { %v5682_v46 = vmax.f32 %v5680_v18, %v5681_v5  ;;  %v5711_v22 = vrot.slane %v5710_v52, 1  ;;  %v5897_v50 = vmax.f32 %v5895_v48, %v5896_v19  ;;  %v4155_v54 = vmax.f32 %v3277_v17, 0.0 }
 0x2f0   : > { %v4304_v29 = vmax.f32 %v3872_v40, 0.0  ;;  %v4156_v36 = vmax.f32 %v3280_v16, 0.0  ;;  %v3885_v35 = vadd.f32 %v10061_v59, %v9861_v0  ;;  %v10125_v20 = vunpack.c.l.b16 %v5498_v61 }
 0x2f1   : > { %v7792_v37 = vpop.f32.mrb[248].mxu0  ;;  %v5712_v47 = vmax.f32 %v5710_v52, %v5711_v22  ;;  %v5898_v57 = vrot.slane %v5897_v50, 2  ;;  %v3893_v63 = vadd.f32 %v10061_v59, %v9855_v2  ;;  %v4157_v18 = vmax.f32 %v3285_v56, 0.0 }
 0x2f2   : > { %v3308_v10 = vpop.f32.mrb[249].mxu0  ;;  %v5925_v27 = vmax.f32 %v5924_v49, %v4304_v29  ;;  %v6111_v48 = vmax.f32 %v4155_v54, %v4156_v36  ;;  %v4307_v25 = vmax.f32 %v3885_v35, 0.0  ;;  %v5717_v44 = vpack.c.bf16 %v5682_v46, %v5682_v46  ;;  %v10817_v46 = vld [vmem:[#allocation49_spill] sm:$0xff] }
 0x2f3   : > { %v7793_v12 = vpop.f32.mrb[250].mxu0  ;;  %v5899_v17 = vmax.f32 %v5897_v50, %v5898_v57  ;;  %v3301_v62 = vadd.f32 %v10061_v59, %v7788_v53  ;;  %v3293_v0 = vadd.f32 %v10061_v59, %v3292_v38  ;;  %v4158_v61 = vmax.f32 %v3288_v32, 0.0 }
 0x2f4   : > { %v3311_v5 = vpop.f32.mrb[251].mxu0  ;;  %v5926_v19 = vrot.slane %v5925_v27, 4  ;;  %v6112_v52 = vmax.f32 %v6111_v48, %v4157_v18  ;;  %v6142_v26 = vmax.f32 %v6141_v41, %v4307_v25  ;;  %v5720_v40 = vpack.c.bf16 %v5712_v47, %v5712_v47 }
 0x2f5   : > { %v4309_v16 = vmax.f32 %v3893_v63, 0.0  ;;  %v4159_v2 = vmax.f32 %v3293_v0, 0.0  ;;  %v3896_v56 = vadd.f32 %v10061_v59, %v9866_v42  ;;  %v5900_v49 = vrot.slane %v5899_v17, 1 }
 0x2f6   : > { %v5927_v22 = vmax.f32 %v5925_v27, %v5926_v19  ;;  %v6113_v54 = vmax.f32 %v6112_v52, %v4158_v61  ;;  %v3888_v50 = vadd.f32 %v10061_v59, %v10817_v46  ;;  %v10135_v53 = vunpack.c.l.b16 %v5717_v44 }
 0x2f7   : > { %v4161_v38 = vmax.f32 %v3301_v62, 0.0  ;;  %v3304_v32 = vadd.f32 %v10061_v59, %v7789_v8  ;;  %v3296_v29 = vadd.f32 %v10061_v59, %v3295_v6  ;;  %v3317_v47 = vadd.f32 %v10061_v59, %v7792_v37 }
 0x2f8   : > { %v5928_v41 = vrot.slane %v5927_v22, 2  ;;  %v6114_v36 = vmax.f32 %v6113_v54, %v4159_v2  ;;  %v4308_v35 = vmax.f32 %v3888_v50, 0.0  ;;  %v10140_v42 = vunpack.c.l.b16 %v5720_v40 }
 0x2f9   : > { %v7796_v57 = vpop.f32.mrb[252].mxu0  ;;  %v4310_v63 = vmax.f32 %v3896_v56, 0.0  ;;  %v4160_v18 = vmax.f32 %v3296_v29, 0.0  ;;  %v3901_v27 = vadd.f32 %v10061_v59, %v9893_v15  ;;  %v5901_v25 = vmax.f32 %v5899_v17, %v5900_v49 }
 0x2fa   : > { %v3324_v48 = vpop.f32.mrb[253].mxu0  ;;  %v5929_v44 = vmax.f32 %v5927_v22, %v5928_v41  ;;  %v6115_v62 = vrot.slane %v6114_v36, 4  ;;  %v6143_v8 = vmax.f32 %v6142_v26, %v4308_v35  ;;  %v4162_v6 = vmax.f32 %v3304_v32, 0.0  ;;  %v10818_v32 = vld [vmem:[#allocation51_spill] sm:$0xff]  ;;  %v10819_v41 = vld [vmem:[#allocation52_spill] sm:$0xff] }
 0x2fb   : > { %v7797_v0 = vpop.f32.mrb[254].mxu0  ;;  %v6330_v61 = vmax.f32 %v4160_v18, %v4161_v38  ;;  %v4311_v19 = vmax.f32 %v3901_v27, 0.0  ;;  %v3309_v52 = vadd.f32 %v10061_v59, %v3308_v10  ;;  %v3909_v56 = vadd.f32 %v10061_v59, %v9887_v14 }
 0x2fc   : > { %v3327_v37 = vpop.f32.mrb[255].mxu0  ;;  %v6116_v2 = vmax.f32 %v6114_v36, %v6115_v62  ;;  %v6144_v40 = vmax.f32 %v6143_v8, %v4309_v16  ;;  %v4165_v54 = vmax.f32 %v3317_v47, 0.0  ;;  %v3320_v17 = vadd.f32 %v10061_v59, %v7793_v12 }
 0x2fd   : > { %v6360_v46 = vmax.f32 %v4310_v63, %v4311_v19  ;;  %v4163_v15 = vmax.f32 %v3309_v52, 0.0  ;;  %v6331_v50 = vmax.f32 %v6330_v61, %v4162_v6  ;;  %v5930_v49 = vrot.slane %v5929_v44, 1 }
 0x2fe   : > { %v6117_v26 = vrot.slane %v6116_v2, 2  ;;  %v6145_v22 = vrot.slane %v6144_v40, 4  ;;  %v3912_v38 = vadd.f32 %v10061_v59, %v10818_v32  ;;  %v4166_v10 = vmax.f32 %v3320_v17, 0.0 }
 0x2ff   : > { %v6332_v29 = vmax.f32 %v6331_v50, %v4163_v15  ;;  %v3904_v16 = vadd.f32 %v10061_v59, %v10819_v41  ;;  %v3312_v36 = vadd.f32 %v10061_v59, %v3311_v5  ;;  %v5936_v14 = vpack.c.bf16 %v5901_v25, %v5901_v25 }
 0x300   : > { %v6118_v35 = vmax.f32 %v6116_v2, %v6117_v26  ;;  %v6146_v47 = vmax.f32 %v6144_v40, %v6145_v22  ;;  %v4313_v63 = vmax.f32 %v3909_v56, 0.0  ;;  %v4365_v27 = vmax.f32 %v4165_v54, %v4166_v10 }
 0x301   : > { %v7800_v18 = vpop.f32.mrb[0].mxu0  ;;  %v4312_v12 = vmax.f32 %v3904_v16, 0.0  ;;  %v4164_v62 = vmax.f32 %v3312_v36, 0.0  ;;  %v3325_v8 = vadd.f32 %v10061_v59, %v3324_v48  ;;  %v5931_v61 = vmax.f32 %v5929_v44, %v5930_v49 }
 0x302   : > { %v3340_v6 = vpop.f32.mrb[1].mxu0  ;;  %v6119_v19 = vrot.slane %v6118_v35, 1  ;;  %v6147_v52 = vrot.slane %v6146_v47, 2  ;;  %v3333_v15 = vadd.f32 %v10061_v59, %v7796_v57  ;;  %v4314_v17 = vmax.f32 %v3912_v38, 0.0 }
 0x303   : > { %v7801_v50 = vpop.f32.mrb[2].mxu0  ;;  %v6361_v32 = vmax.f32 %v6360_v46, %v4312_v12  ;;  %v6333_v5 = vmax.f32 %v6332_v29, %v4164_v62  ;;  %v4167_v25 = vmax.f32 %v3325_v8, 0.0  ;;  %v3336_v54 = vadd.f32 %v10061_v59, %v7797_v0 }
 0x304   : > { %v3343_v2 = vpop.f32.mrb[3].mxu0  ;;  %v6120_v40 = vmax.f32 %v6118_v35, %v6119_v19  ;;  %v6148_v56 = vmax.f32 %v6146_v47, %v6147_v52  ;;  %v3328_v26 = vadd.f32 %v10061_v59, %v3327_v37  ;;  %v10157_v22 = vunpack.c.l.b16 %v5936_v14 }
 0x305   : > { %v6362_v48 = vmax.f32 %v6361_v32, %v4313_v63  ;;  %v6334_v44 = vrot.slane %v6333_v5, 4  ;;  %v4366_v49 = vmax.f32 %v4365_v27, %v4167_v25  ;;  %v5939_v10 = vpack.c.bf16 %v5931_v61, %v5931_v61 }
 0x306   : > { %v6149_v41 = vrot.slane %v6148_v56, 1  ;;  %v4169_v57 = vmax.f32 %v3333_v15, 0.0  ;;  %v4168_v16 = vmax.f32 %v3328_v26, 0.0  ;;  %v3349_v29 = vadd.f32 %v10061_v59, %v7800_v18 }
 0x307   : > { %v6363_v38 = vmax.f32 %v6362_v48, %v4314_v17  ;;  %v6335_v46 = vmax.f32 %v6333_v5, %v6334_v44  ;;  %v3341_v36 = vadd.f32 %v10061_v59, %v3340_v6  ;;  %v6155_v35 = vpack.c.bf16 %v6120_v40, %v6120_v40 }
 0x308   : > { %v4170_v47 = vmax.f32 %v3336_v54, 0.0  ;;  %v4367_v0 = vmax.f32 %v4366_v49, %v4168_v16  ;;  %v3344_v37 = vadd.f32 %v10061_v59, %v3343_v2  ;;  %v3352_v27 = vadd.f32 %v10061_v59, %v7801_v50 }
 0x309   : > { %v7804_v14 = vpop.f32.mrb[4].mxu0  ;;  %v6364_v12 = vrot.slane %v6363_v38, 4  ;;  %v6336_v63 = vrot.slane %v6335_v46, 2  ;;  %v4171_v62 = vmax.f32 %v3341_v36, 0.0  ;;  %v10163_v61 = vmax.f32 %v6148_v56, %v6149_v41 }
 0x30a   : > { %v3356_v8 = vpop.f32.mrb[5].mxu0  ;;  %v4368_v19 = vmax.f32 %v4367_v0, %v4169_v57  ;;  %v4172_v52 = vmax.f32 %v3344_v37, 0.0  ;;  %v3365_v18 = vadd.f32 %v10061_v59, %v7804_v14  ;;  %v10167_v2 = vunpack.c.l.b16 %v5939_v10 }
 0x30b   : > { %v7805_v15 = vpop.f32.mrb[6].mxu0  ;;  %v6365_v6 = vmax.f32 %v6363_v38, %v6364_v12  ;;  %v6337_v17 = vmax.f32 %v6335_v46, %v6336_v63  ;;  %v4469_v32 = vmax.f32 %v4170_v47, %v4171_v62  ;;  %v3357_v5 = vadd.f32 %v10061_v59, %v3356_v8 }
 0x30c   : > { %v3359_v25 = vpop.f32.mrb[7].mxu0  ;;  %v4369_v40 = vrot.slane %v4368_v19, 4  ;;  %v4173_v54 = vmax.f32 %v3349_v29, 0.0  ;;  %v3368_v50 = vadd.f32 %v10061_v59, %v7805_v15  ;;  %v10170_v26 = vunpack.c.l.b16 %v6155_v35 }
 0x30d   : > { %v6366_v56 = vrot.slane %v6365_v6, 2  ;;  %v6338_v48 = vrot.slane %v6337_v17, 1  ;;  %v4470_v44 = vmax.f32 %v4469_v32, %v4172_v52  ;;  %v4175_v41 = vmax.f32 %v3357_v5, 0.0  ;;  %v10820_v52 = vld [vmem:[#allocation24_spill] sm:$0xff] }
 0x30e   : > { %v4370_v49 = vmax.f32 %v4368_v19, %v4369_v40  ;;  %v3360_v57 = vadd.f32 %v10061_v59, %v3359_v25  ;;  %v6158_v16 = vpack.c.bf16 %v10163_v61, %v10163_v61  ;;  %v4174_v38 = vmax.f32 %v3352_v27, 0.0 }
 0x30f   : > { %v4471_v46 = vmax.f32 %v4470_v44, %v4173_v54  ;;  %v4177_v10 = vmax.f32 %v3365_v18, 0.0  ;;  %v10177_v29 = vmax.f32 %v6365_v6, %v6366_v56  ;;  %v4178_v35 = vmax.f32 %v3368_v50, 0.0  ;;  %v10821_v56 = vld [vmem:[#allocation6_spill] sm:$0xff]  ;;  %v10822_v44 = vld [vmem:[#allocation7_spill] sm:$0xff] }
 0x310   : > { %v4371_v36 = vrot.slane %v4370_v49, 2  ;;  %v4176_v47 = vmax.f32 %v3360_v57, 0.0  ;;  %v10179_v37 = vmax.f32 %v6337_v17, %v6338_v48  ;;  %v4663_v18 = vsel %vm4546_vm4, %v10034_v28, %v10820_v52 }
 0x311   : > { %v7808_v0 = vpop.f32.mrb[8].mxu0  ;;  %v4472_v14 = vmax.f32 %v4471_v46, %v4174_v38  ;;  %v10191_v48 = vsel %vm4546_vm4, %v10073_v58, %v10821_v56  ;;  %v10196_v28 = vsel %vm4546_vm4, %v10085_v9, %v10822_v44  ;;  %v10823_v38 = vld [vmem:[#allocation17_spill] sm:$0xff] }
 0x312   : > { %v3381_v12 = vadd.f32 %v10061_v59, %v7808_v0  ;;  %v3372_v63 = vpop.f32.mrb[9].mxu0  ;;  %v4372_v62 = vmax.f32 %v4370_v49, %v4371_v36  ;;  %v4807_v27 = vmax.f32 %v4175_v41, %v4176_v47  ;;  %v10201_v46 = vsel %vm4546_vm4, %v10096_v34, %v10823_v38  ;;  %v10824_v47 = vld [vmem:[#allocation12_spill] sm:$0xff]  ;;  %v10825_v0 = vld [vmem:[#allocation18_spill] sm:$0xff] }
 0x313   : > { %v3373_v8 = vadd.f32 %v10061_v59, %v3372_v63  ;;  %v7809_v19 = vpop.f32.mrb[10].mxu0  ;;  %v4473_v15 = vrot.slane %v4472_v14, 4  ;;  %v5537_v58 = vsel %vm4544_vm3, %v9965_v13, %v10824_v47 }
 0x314   : > { %v4181_v6 = vmax.f32 %v3381_v12, 0.0  ;;  %v3375_v32 = vpop.f32.mrb[11].mxu0  ;;  %v4373_v17 = vrot.slane %v4372_v62, 1  ;;  %v4808_v5 = vmax.f32 %v4807_v27, %v4177_v10  ;;  %v3384_v40 = vadd.f32 %v10061_v59, %v7809_v19 }
 0x315   : > { %v4179_v25 = vmax.f32 %v3373_v8, 0.0  ;;  %v4474_v54 = vmax.f32 %v4472_v14, %v4473_v15  ;;  %v3376_v50 = vadd.f32 %v10061_v59, %v3375_v32  ;;  %v5757_v14 = vsel %vm4546_vm4, %v10135_v53, %v10825_v0 }
 0x316   : > { %v4374_v49 = vmax.f32 %v4372_v62, %v4373_v17  ;;  %v4809_v41 = vmax.f32 %v4808_v5, %v4178_v35  ;;  %v4182_v57 = vmax.f32 %v3384_v40, 0.0  ;;  %v10211_v35 = vsel %vm4546_vm4, %v10125_v20, %v5537_v58  ;;  %v10826_v62 = vld [vmem:[#allocation21_spill] sm:$0xff] }
 0x317   : > { %v4475_v10 = vrot.slane %v4474_v54, 2  ;;  %v4180_v36 = vmax.f32 %v3376_v50, 0.0  ;;  %v5758_v34 = vsel %vm4548_vm6, %v10826_v62, %v5757_v14  ;;  %v6191_v0 = vunpack.c.l.b16 %v6158_v16 }
 0x318   : > { %v4400_v9 = vpack.c.bf16 %v4374_v49, %v4374_v49  ;;  %v4810_v12 = vmax.f32 %v4809_v41, %v4179_v25  ;;  %v5759_v13 = vsel %vm4550_vm7, %v9973_v24, %v5758_v34  ;;  %v6368_v49 = vrot.slane %v10177_v29, 1 }
 0x319   : > { %v7812_v63 = vpop.f32.mrb[12].mxu0  ;;  %v4476_v27 = vmax.f32 %v4474_v54, %v4475_v10  ;;  %v5026_v8 = vmax.f32 %v4180_v36, %v4181_v6  ;;  %v10221_v20 = vsel %vm4552_vm8, %v10140_v42, %v5759_v13  ;;  %v10827_v10 = vld [vmem:[#allocation15_spill] sm:$0xff]  ;;  %v5976_v34 = vsel %vm4546_vm4, %v10157_v22, %v9914_v30 }
 0x31a   : > { %v3397_v19 = vadd.f32 %v10061_v59, %v7812_v63  ;;  %v3388_v52 = vpop.f32.mrb[13].mxu0  ;;  %v4657_v15 = vunpack.c.l.b16 %v4400_v9  ;;  %v4811_v53 = vrot.slane %v4810_v12, 4 }
 0x31b   : > { %v3389_v32 = vadd.f32 %v10061_v59, %v3388_v52  ;;  %v7813_v17 = vpop.f32.mrb[14].mxu0  ;;  %v4477_v5 = vrot.slane %v4476_v27, 1  ;;  %v5027_v40 = vmax.f32 %v5026_v8, %v4182_v57 }
 0x31c   : > { %v4185_v25 = vmax.f32 %v3397_v19, 0.0  ;;  %v3400_v6 = vadd.f32 %v10061_v59, %v7813_v17  ;;  %v3391_v54 = vpop.f32.mrb[15].mxu0  ;;  %v4812_v50 = vmax.f32 %v4810_v12, %v4811_v53  ;;  %v4664_v24 = vsel %vm4548_vm6, %v4657_v15, %v4663_v18 }
 0x31d   : > { %v4183_v56 = vmax.f32 %v3389_v32, 0.0  ;;  %v3392_v44 = vadd.f32 %v10061_v59, %v3391_v54  ;;  %v4478_v41 = vmax.f32 %v4476_v27, %v4477_v5  ;;  %v4665_v42 = vsel %vm4550_vm7, %v10827_v10, %v4664_v24 }
 0x31e   : > { %v4186_v38 = vmax.f32 %v3400_v6, 0.0  ;;  %v4813_v36 = vrot.slane %v4812_v50, 2  ;;  %v10231_v57 = vsel %vm4552_vm8, %v10067_v31, %v4665_v42  ;;  %v6374_v18 = vpack.c.bf16 %v10179_v37, %v10179_v37  ;;  %v10828_v37 = vld [vmem:[#allocation22_spill] sm:$0xff] }
 0x31f   : > { %v5028_v47 = vmax.f32 %v5027_v40, %v4183_v56  ;;  %v4184_v58 = vmax.f32 %v3392_v44, 0.0  ;;  %v4504_v14 = vpack.c.bf16 %v4478_v41, %v4478_v41  ;;  %v6195_v31 = vsel %vm4546_vm4, %v10170_v26, %v9933_v11  ;;  %v10830_v56 = vld [vmem:[#allocation23_spill] sm:$0xff] }
 0x320   : > { %v5245_v9 = vmax.f32 %v4185_v25, %v4186_v38  ;;  %v4814_v12 = vmax.f32 %v4812_v50, %v4813_v36  ;;  %v6369_v27 = vmax.f32 %v10177_v29, %v6368_v49  ;;  %v5977_v19 = vsel %vm4548_vm6, %v10828_v37, %v5976_v34  ;;  %v10829_v50 = vld [vmem:[#allocation5_spill] sm:$0xff]  ;;  %v10831_v38 = vld [vmem:[#allocation10_spill] sm:$0xff] }
 0x321   : > { %v5029_v63 = vmax.f32 %v5028_v47, %v4184_v58  ;;  %v7816_v62 = vpop.f32.mrb[16].mxu0  ;;  %v4537_v61 = vunpack.c.l.b16 %v4504_v14  ;;  %v5978_v30 = vsel %vm4550_vm7, %v9979_v3, %v5977_v19  ;;  %v6407_v22 = vunpack.c.l.b16 %v6374_v18 }
 0x322   : > { %v3413_v16 = vadd.f32 %v10061_v59, %v7816_v62  ;;  %v3404_v8 = vpop.f32.mrb[17].mxu0  ;;  %v4815_v52 = vrot.slane %v4814_v12, 1  ;;  %v10256_v32 = vsel %vm4552_vm8, %v10167_v2, %v5978_v30  ;;  %v6196_v44 = vsel %vm4548_vm6, %v10830_v56, %v6195_v31 }
 0x323   : > { %v5030_v13 = vrot.slane %v5029_v63, 4  ;;  %v3405_v15 = vadd.f32 %v10061_v59, %v3404_v8  ;;  %v7817_v53 = vpop.f32.mrb[18].mxu0  ;;  %v4549_v29 = vsel %vm4548_vm6, %v4537_v61, %v10010_v45  ;;  %v10832_v2 = vmax.f32 %v10831_v38, 0.0  ;;  %v10845_v38 = vld [vmem:[#allocation47_spill] sm:$0xff] }
 0x324   : > { %v3416_v11 = vadd.f32 %v10061_v59, %v7817_v53  ;;  %v3407_v26 = vpop.f32.mrb[19].mxu0  ;;  %v4816_v17 = vmax.f32 %v4814_v12, %v4815_v52  ;;  %v4189_v6 = vmax.f32 %v3413_v16, 0.0  ;;  %v4551_v3 = vsel %vm4550_vm7, %v10829_v50, %v4549_v29  ;;  %v10837_v52 = vld [vmem:[#allocation9_spill] sm:$0xff] }
 0x325   : > { %v5031_v5 = vmax.f32 %v5029_v63, %v5030_v13  ;;  %v4187_v25 = vmax.f32 %v3405_v15, 0.0  ;;  %v3408_v40 = vadd.f32 %v10061_v59, %v3407_v26  ;;  %v4553_v42 = vsel %vm4552_vm8, %v10069_v21, %v4551_v3  ;;  %v8409_v59 = vld [vmem:[%s10708_s3] sm:$0xff]   ;;  %v10835_v21 = vld [vmem:[#allocation20_spill] sm:$0xff]  ;;  %v10840_v26 = vld [vmem:[#allocation25_spill] sm:$0xff] }
 0x326   : > { %v4190_v54 = vmax.f32 %v3416_v11, 0.0  ;;  %v4842_v24 = vpack.c.bf16 %v4816_v17, %v4816_v17  ;;  %v6197_v36 = vsel %vm4550_vm7, %v9984_v4, %v6196_v44  ;;  %v6377_v47 = vpack.c.bf16 %v6369_v27, %v6369_v27  ;;  %v10833_v63 = vld [vmem:[#allocation19_spill] sm:$0xff]  ;;  %v10844_v44 = vld [vmem:[#allocation50_spill] sm:$0xff] }
 0x327   : > { %v5032_v49 = vrot.slane %v5031_v5, 2  ;;  %v5246_v45 = vmax.f32 %v5245_v9, %v4187_v25  ;;  %v4188_v41 = vmax.f32 %v3408_v40, 0.0  ;;  %v4554_v12 = vpack.c.b16 %v4553_v42, %v4553_v42  ;;  %v10842_v40 = vld [vmem:[#allocation11_spill] sm:$0xff] }
 0x328   : > { %v5464_v10 = vmax.f32 %v4190_v54, %v10832_v2  ;;  %v4875_v58 = vunpack.c.l.b16 %v4842_v24  ;;  %v5488_v9 = vrot.slane %v10082_v51, 4  ;;  %v10834_v62 = vmax.f32 %v10833_v63, 0.0 }
 0x329   : > { %v5033_v18 = vmax.f32 %v5031_v5, %v5032_v49  ;;  %v5247_v14 = vmax.f32 %v5246_v45, %v4188_v41  ;;  %v10276_v31 = vsel %vm4552_vm8, %v6191_v0, %v6197_v36  ;;  %v6413_v61 = vsel %vm4544_vm3, %v9991_v39, %v10835_v21  ;;  %7959 = vmatmul.mubr.bf16.vlgmr.msra.gmra.mrb[124].mxu1 %v4554_v12  ;;  %v8410_v0 = vld [vmem:[%s10708_s3 + $0x8] sm:$0xff]  }
 0x32a   : > { %v5465_v34 = vmax.f32 %v5464_v10, %v10834_v62  ;;  %v4882_v4 = vsel %vm4548_vm6, %v4875_v58, %v10191_v48  ;;  %v6410_v27 = vunpack.c.l.b16 %v6377_v47  ;;  %v10836_v37 = vpack.c.bf16 %v9994_v55, %v9994_v55  ;;  %7963 = vmatpush3.bf16.msra.mxu1 %v8409_v59  ;;  %7978 = vmatprep.mubr.msk.bf16.mxu1 %vm8550_vm5, %v10732_v43  ;;  %v10839_v39 = vld [vmem:[#allocation16_spill] sm:$0xff] }
 0x32b   : > { %v5034_v16 = vrot.slane %v5033_v18, 1  ;;  %v5248_v8 = vmax.f32 %v5247_v14, %v4189_v6  ;;  %v10838_v13 = vmax.f32 %v10837_v52, 0.0  ;;  %v4883_v53 = vsel %vm4550_vm7, %v10839_v39, %v4882_v4  ;;  %7964 = vmatprep.subr.bf16.mxu1 %v10732_v43  ;;  %v8412_v14 = vld [vmem:[%s10708_s3 + $0x18] sm:$0xff]  }
 0x32c   : > { %v6409_v19 = vunpack.c.l.b16 %v10836_v37  ;;  %v6414_v48 = vsel %vm4546_vm4, %v6407_v22, %v6413_v61  ;;  %v10299_v55 = vsel %vm4552_vm8, %v10088_v1, %v4883_v53  ;;  %v10841_v17 = vrot.slane %v9754_v60, 4 }
 0x32d   : > { %v5466_v15 = vmax.f32 %v5465_v34, %v10838_v13  ;;  %v5035_v30 = vmax.f32 %v5033_v18, %v5034_v16  ;;  %v5249_v11 = vrot.slane %v5248_v8, 4  ;;  %v6415_v29 = vsel %vm4548_vm6, %v10840_v26, %v6414_v48 }
 0x32e   : > { %v5479_v5 = vmax.f32 %v9754_v60, %v10841_v17  ;;  %v5489_v25 = vmax.f32 %v10082_v51, %v5488_v9  ;;  %v10843_v6 = vmax.f32 %v10842_v40, 0.0  ;;  %v6416_v54 = vsel %vm4550_vm7, %v6409_v19, %v6415_v29  ;;  %7965 = vmatpush3.bf16.msra.mxu1 %v8410_v0  ;;  %v8411_v60 = vld [vmem:[%s10708_s3 + $0x10] sm:$0xff]   ;;  %v8414_v0 = vld [vmem:[%s10708_s3 + $0x28] sm:$0xff]  }
 0x32f   : > { %v5273_v50 = vrot.slane %v10111_v7, 1  ;;  %v5061_v3 = vpack.c.bf16 %v5035_v30, %v5035_v30  ;;  %v5250_v56 = vmax.f32 %v5248_v8, %v5249_v11  ;;  %v10312_v1 = vsel %vm4552_vm8, %v6410_v27, %v6416_v54  ;;  %7966 = vmatprep.subr.bf16.mxu1 %v10732_v43  ;;  %v8413_v8 = vld [vmem:[%s10708_s3 + $0x20] sm:$0xff]   ;;  %v8415_v29 = vld [vmem:[%s10708_s3 + $0x30] sm:$0xff]  }
 0x330   : > { %v5467_v22 = vmax.f32 %v5466_v15, %v10843_v6  ;;  %v5263_v24 = vrot.slane %v10844_v44, 1  ;;  %v5096_v51 = vunpack.c.l.b16 %v5063_v33  ;;  %v10846_v2 = vpack.c.bf16 %v10845_v38, %v10845_v38  ;;  %v8426_v38 = vld [vmem:[%s10708_s3 + $0xc8] sm:$0xff]  }
 0x331   : > { %v5094_v45 = vunpack.c.l.b16 %v5061_v3  ;;  %v5251_v41 = vrot.slane %v5250_v56, 2  ;;  %v5490_v42 = vrot.slane %v5489_v25, 2  ;;  %v5480_v36 = vrot.slane %v5479_v5, 2 }
 0x332   : > { %v5468_v49 = vrot.slane %v5467_v22, 4  ;;  %v5095_v10 = vunpack.c.l.b16 %v10846_v2  ;;  %v5274_v47 = vmax.f32 %v10111_v7, %v5273_v50  ;;  %v5264_v23 = vmax.f32 %v10844_v44, %v5263_v24  ;;  %7967 = vmatpush3.bf16.msra.mxu1 %v8411_v60  ;;  %v8418_v44 = vld [vmem:[%s10708_s3 + $0x88] sm:$0xff]   ;;  %v8421_v24 = vld [vmem:[%s10708_s3 + $0xa0] sm:$0xff]   ;;  %v8423_v60 = vld [vmem:[%s10708_s3 + $0xb0] sm:$0xff]  }
 0x333   : > { %v5252_v58 = vmax.f32 %v5250_v56, %v5251_v41  ;;  %v5101_v18 = vsel %vm4548_vm6, %v5094_v45, %v10196_v28  ;;  %7968 = vmatprep.subr.bf16.mxu1 %v10732_v43  ;;  %v5491_v7 = vmax.f32 %v5489_v25, %v5490_v42  ;;  %v5481_v34 = vmax.f32 %v5479_v5, %v5480_v36  ;;  %v8425_v45 = vld [vmem:[%s10708_s3 + $0xc0] sm:$0xff]   ;;  %v8427_v2 = vld [vmem:[%s10708_s3 + $0xd0] sm:$0xff]   ;;  %v8430_v42 = vld [vmem:[%s10708_s3 + $0xe8] sm:$0xff]  }
 0x334   : > { %v5469_v59 = vmax.f32 %v5467_v22, %v5468_v49  ;;  %v5102_v12 = vsel %vm4550_vm7, %v5095_v10, %v5101_v18  ;;  %v5282_v28 = vpack.c.bf16 %v5274_v47, %v5274_v47  ;;  %v5281_v61 = vpack.c.bf16 %v5264_v23, %v5264_v23  ;;  %v8417_v22 = vld [vmem:[%s10708_s3 + $0x80] sm:$0xff]   ;;  %v8422_v49 = vld [vmem:[%s10708_s3 + $0xa8] sm:$0xff]   ;;  %v8432_v36 = vld [vmem:[%s10708_s3 + $0xf8] sm:$0xff]  }
 0x335   : > { %v5253_v9 = vrot.slane %v5252_v58, 1  ;;  %v10335_v63 = vsel %vm4552_vm8, %v5096_v51, %v5102_v12  ;;  %v5492_v27 = vrot.slane %v5491_v7, 1  ;;  %v5482_v37 = vrot.slane %v5481_v34, 1  ;;  %v8424_v51 = vld [vmem:[%s10708_s3 + $0xb8] sm:$0xff]   ;;  %v8429_v10 = vld [vmem:[%s10708_s3 + $0xe0] sm:$0xff]   ;;  %v8434_v18 = vld [vmem:[%s10708_s3 + $0x108] sm:$0xff]  }
 0x336   : > { %v5470_v33 = vrot.slane %v5469_v59, 2  ;;  %7969 = vmatpush3.bf16.msra.mxu1 %v8412_v14  ;;  %v5315_v19 = vunpack.c.l.b16 %v5282_v28  ;;  %v5314_v13 = vunpack.c.l.b16 %v5281_v61  ;;  %v4667_v50 = vpack.c.b16 %v10231_v57, %v10231_v57  ;;  %v8420_v57 = vld [vmem:[%s10708_s3 + $0x98] sm:$0xff]   ;;  %v8433_v47 = vld [vmem:[%s10708_s3 + $0x100] sm:$0xff]   ;;  %v8435_v23 = vld [vmem:[%s10708_s3 + $0x110] sm:$0xff]  }
 0x337   : > { %v5254_v21 = vmax.f32 %v5252_v58, %v5253_v9  ;;  %7970 = vmatprep.subr.bf16.mxu1 %v10732_v43  ;;  %v5493_v53 = vmax.f32 %v5491_v7, %v5492_v27  ;;  %v5483_v30 = vmax.f32 %v5481_v34, %v5482_v37  ;;  %v4885_v41 = vpack.c.b16 %v10299_v55, %v10299_v55  ;;  %v8428_v55 = vld [vmem:[%s10708_s3 + $0xd8] sm:$0xff]   ;;  %v8437_v14 = vld [vmem:[%s10708_s3 + $0x120] sm:$0xff]   ;;  %v8438_v12 = vld [vmem:[%s10708_s3 + $0x128] sm:$0xff]  }
 0x338   : > { %v5471_v62 = vmax.f32 %v5469_v59, %v5470_v33  ;;  %v8431_v59 = vld [vmem:[%s10708_s3 + $0xf0] sm:$0xff]   ;;  %v5104_v58 = vpack.c.b16 %v10335_v63, %v10335_v63  ;;  %v8436_v33 = vld [vmem:[%s10708_s3 + $0x118] sm:$0xff]   ;;  %v8441_v7 = vld [vmem:[%s10708_s3 + $0x140] sm:$0xff]  }
 0x339   : > { %v5280_v4 = vpack.c.bf16 %v5254_v21, %v5254_v21  ;;  %v5501_v17 = vpack.c.bf16 %v5493_v53, %v5493_v53  ;;  %v5500_v5 = vpack.c.bf16 %v5483_v30, %v5483_v30  ;;  %v8439_v9 = vld [vmem:[%s10708_s3 + $0x130] sm:$0xff]   ;;  %v8440_v63 = vld [vmem:[%s10708_s3 + $0x138] sm:$0xff]   ;;  %v8442_v34 = vld [vmem:[%s10708_s3 + $0x148] sm:$0xff]   ;;  %v5761_v30 = vpack.c.b16 %v10221_v20, %v10221_v20 }
 0x33a   : > { %v5472_v16 = vrot.slane %v5471_v62, 1  ;;  %7971 = vmatpush3.bf16.msra.mxu1 %v8413_v8  ;;  %v8443_v28 = vld [vmem:[%s10708_s3 + $0x150] sm:$0xff]   ;;  %v8444_v21 = vld [vmem:[%s10708_s3 + $0x158] sm:$0xff]   ;;  %v8445_v61 = vld [vmem:[%s10708_s3 + $0x160] sm:$0xff]  }
 0x33b   : > { %v5313_v52 = vunpack.c.l.b16 %v5280_v4  ;;  %7972 = vmatprep.subr.bf16.mxu1 %v10732_v43  ;;  %v5534_v40 = vunpack.c.l.b16 %v5501_v17  ;;  %v5533_v6 = vunpack.c.l.b16 %v5500_v5  ;;  %v8447_v8 = vld [vmem:[%s10708_s3 + $0x170] sm:$0xff]   ;;  %v8448_v4 = vld [vmem:[%s10708_s3 + $0x178] sm:$0xff]   ;;  %v8449_v27 = vld [vmem:[%s10708_s3 + $0x180] sm:$0xff]  }
 0x33c   : > { %v5473_v15 = vmax.f32 %v5471_v62, %v5472_v16  ;;  %v8446_v16 = vld [vmem:[%s10708_s3 + $0x168] sm:$0xff]   ;;  %v8456_v53 = vld [vmem:[%s10708_s3 + $0x1b8] sm:$0xff]  }
 0x33d   : > { %v5320_v39 = vsel %vm4548_vm6, %v5313_v52, %v10201_v46  ;;  %v8416_v46 = vld [vmem:[%s10708_s3 + $0x38] sm:$0xff]   ;;  %v8451_v52 = vld [vmem:[%s10708_s3 + $0x190] sm:$0xff]   ;;  %v8462_v17 = vld [vmem:[%s10708_s3 + $0x1e8] sm:$0xff]  }
 0x33e   : > { %v5321_v48 = vsel %vm4550_vm7, %v5314_v13, %v5320_v39  ;;  %v5499_v26 = vpack.c.bf16 %v5473_v15, %v5473_v15  ;;  %7973 = vmatpush3.bf16.msra.mxu1 %v8414_v0  ;;  %v8452_v13 = vld [vmem:[%s10708_s3 + $0x198] sm:$0xff]   ;;  %v8453_v15 = vld [vmem:[%s10708_s3 + $0x1a0] sm:$0xff]   ;;  %v8454_v0 = vld [vmem:[%s10708_s3 + $0x1a8] sm:$0xff]  }
 0x33f   : > { %v10349_v11 = vsel %vm4552_vm8, %v5315_v19, %v5321_v48  ;;  %7974 = vmatprep.subr.bf16.mxu1 %v10732_v43  ;;  %v8450_v19 = vld [vmem:[%s10708_s3 + $0x188] sm:$0xff]   ;;  %v8455_v39 = vld [vmem:[%s10708_s3 + $0x1b0] sm:$0xff]   ;;  %v8457_v48 = vld [vmem:[%s10708_s3 + $0x1c0] sm:$0xff]  }
 0x340   : > { %v5532_v25 = vunpack.c.l.b16 %v5499_v26  ;;  %v5323_v62 = vpack.c.b16 %v10349_v11, %v10349_v11  ;;  %v8458_v11 = vld [vmem:[%s10708_s3 + $0x1c8] sm:$0xff]   ;;  %v8459_v26 = vld [vmem:[%s10708_s3 + $0x1d0] sm:$0xff]   ;;  %v8460_v20 = vld [vmem:[%s10708_s3 + $0x1d8] sm:$0xff]  }
 0x342   : > { %7975 = vmatpush3.bf16.msra.mxu1 %v8415_v29  ;;  %v5539_v54 = vsel %vm4548_vm6, %v5532_v25, %v10211_v35  ;;  %v8419_v35 = vld [vmem:[%s10708_s3 + $0x90] sm:$0xff]   ;;  %v8461_v29 = vld [vmem:[%s10708_s3 + $0x1e0] sm:$0xff]  }
 0x343   : > { %7976 = vmatprep.subr.bf16.mxu1 %v10732_v43  ;;  %v5540_v3 = vsel %vm4550_vm7, %v5533_v6, %v5539_v54  ;;  %v8465_v54 = vld [vmem:[%s10708_s3 + $0x200] sm:$0xff]  }
 0x344   : > { %v10369_v56 = vsel %vm4552_vm8, %v5534_v40, %v5540_v3  ;;  %v8463_v40 = vld [vmem:[%s10708_s3 + $0x1f0] sm:$0xff]   ;;  %v8466_v3 = vld [vmem:[%s10708_s3 + $0x208] sm:$0xff]  }
 0x345   : > { %v5542_v37 = vpack.c.b16 %v10369_v56, %v10369_v56  ;;  %v8467_v56 = vld [vmem:[%s10708_s3 + $0x210] sm:$0xff]  }
 0x346   : > { %7977 = vmatpush3.bf16.msra.mxu1 %v8416_v46 }
 0x347   : > { %7982 = vmatprep.subr.bf16.mxu1 %v10732_v43 }
 0x349   : > { %7979 = vmatmul.mubr.bf16.vlgmr.msra.gmra.mrb[128].mxu1 %v4667_v50  ;;  %v5980_v50 = vpack.c.b16 %v10256_v32, %v10256_v32  ;;  %v8468_v32 = vld [vmem:[%s10708_s3 + $0x218] sm:$0xff]  }
 0x34a   : > { %7983 = vmatpush3.bf16.msra.mxu1 %v8417_v22  ;;  %7998 = vmatprep.mubr.msk.bf16.mxu1 %vm8550_vm5, %v10732_v43  ;;  %v8464_v22 = vld [vmem:[%s10708_s3 + $0x1f8] sm:$0xff]  }
 0x34b   : > { %7984 = vmatprep.subr.bf16.mxu1 %v10732_v43 }
 0x34e   : > { %7985 = vmatpush3.bf16.msra.mxu1 %v8418_v44  ;;  %v8469_v44 = vld [vmem:[%s10708_s3 + $0x220] sm:$0xff]  }
 0x34f   : > { %7986 = vmatprep.subr.bf16.mxu1 %v10732_v43 }
 0x352   : > { %7987 = vmatpush3.bf16.msra.mxu1 %v8419_v35  ;;  %v8470_v35 = vld [vmem:[%s10708_s3 + $0x228] sm:$0xff]  }
 0x353   : > { %7988 = vmatprep.subr.bf16.mxu1 %v10732_v43 }
 0x356   : > { %7989 = vmatpush3.bf16.msra.mxu1 %v8420_v57 }
 0x357   : > { %7990 = vmatprep.subr.bf16.mxu1 %v10732_v43 }
 0x35a   : > { %7991 = vmatpush3.bf16.msra.mxu1 %v8421_v24 }
 0x35b   : > { %7992 = vmatprep.subr.bf16.mxu1 %v10732_v43 }
 0x35e   : > { %7993 = vmatpush3.bf16.msra.mxu1 %v8422_v49 }
 0x35f   : > { %7994 = vmatprep.subr.bf16.mxu1 %v10732_v43 }
 0x362   : > { %7995 = vmatpush3.bf16.msra.mxu1 %v8423_v60 }
 0x363   : > { %7996 = vmatprep.subr.bf16.mxu1 %v10732_v43 }
 0x366   : > { %7997 = vmatpush3.bf16.msra.mxu1 %v8424_v51  ;;  %v8471_v51 = vld [vmem:[%s10708_s3 + $0x230] sm:$0xff]  }
 0x367   : > { %8002 = vmatprep.subr.bf16.mxu1 %v10732_v43 }
 0x369   : > { %7999 = vmatmul.mubr.bf16.vlgmr.msra.gmra.mrb[132].mxu1 %v4885_v41  ;;  %v8472_v41 = vld [vmem:[%s10708_s3 + $0x238] sm:$0xff]  }
 0x36a   : > { %8003 = vmatpush3.bf16.msra.mxu1 %v8425_v45  ;;  %8018 = vmatprep.mubr.msk.bf16.mxu1 %vm8550_vm5, %v10732_v43 }
 0x36b   : > { %8004 = vmatprep.subr.bf16.mxu1 %v10732_v43 }
 0x36e   : > { %8005 = vmatpush3.bf16.msra.mxu1 %v8426_v38  ;;  %v8473_v38 = vld [vmem:[%s10708_s3 + $0x240] sm:$0xff]  }
 0x36f   : > { %8006 = vmatprep.subr.bf16.mxu1 %v10732_v43 }
 0x372   : > { %8007 = vmatpush3.bf16.msra.mxu1 %v8427_v2  ;;  %v6199_v2 = vpack.c.b16 %v10276_v31, %v10276_v31  ;;  %v8476_v31 = vld [vmem:[%s10708_s3 + $0x258] sm:$0xff]  }
 0x373   : > { %8008 = vmatprep.subr.bf16.mxu1 %v10732_v43 }
 0x376   : > { %8009 = vmatpush3.bf16.msra.mxu1 %v8428_v55  ;;  %v8474_v55 = vld [vmem:[%s10708_s3 + $0x248] sm:$0xff]  }
 0x377   : > { %8010 = vmatprep.subr.bf16.mxu1 %v10732_v43 }
 0x37a   : > { %8011 = vmatpush3.bf16.msra.mxu1 %v8429_v10  ;;  %v8475_v10 = vld [vmem:[%s10708_s3 + $0x250] sm:$0xff]  }
 0x37b   : > { %8012 = vmatprep.subr.bf16.mxu1 %v10732_v43 }
 0x37e   : > { %8013 = vmatpush3.bf16.msra.mxu1 %v8430_v42  ;;  %v8477_v42 = vld [vmem:[%s10708_s3 + $0x260] sm:$0xff]  }
 0x37f   : > { %8014 = vmatprep.subr.bf16.mxu1 %v10732_v43 }
 0x382   : > { %8015 = vmatpush3.bf16.msra.mxu1 %v8431_v59  ;;  %v8478_v59 = vld [vmem:[%s10708_s3 + $0x268] sm:$0xff]  }
 0x383   : > { %8016 = vmatprep.subr.bf16.mxu1 %v10732_v43 }
 0x386   : > { %8017 = vmatpush3.bf16.msra.mxu1 %v8432_v36 }
 0x387   : > { %8022 = vmatprep.subr.bf16.mxu1 %v10732_v43 }
 0x389   : > { %8019 = vmatmul.mubr.bf16.vlgmr.msra.gmra.mrb[136].mxu1 %v5104_v58 }
 0x38a   : > { %8023 = vmatpush3.bf16.msra.mxu1 %v8433_v47  ;;  %8038 = vmatprep.mubr.msk.bf16.mxu1 %vm8550_vm5, %v10732_v43 }
 0x38b   : > { %8024 = vmatprep.subr.bf16.mxu1 %v10732_v43 }
 0x38e   : > { %8025 = vmatpush3.bf16.msra.mxu1 %v8434_v18 }
 0x38f   : > { %8026 = vmatprep.subr.bf16.mxu1 %v10732_v43 }
 0x392   : > { %8027 = vmatpush3.bf16.msra.mxu1 %v8435_v23  ;;  %v8479_v23 = vld [vmem:[%s10708_s3 + $0x270] sm:$0xff]  }
 0x393   : > { %8028 = vmatprep.subr.bf16.mxu1 %v10732_v43 }
 0x396   : > { %8029 = vmatpush3.bf16.msra.mxu1 %v8436_v33 }
 0x397   : > { %8030 = vmatprep.subr.bf16.mxu1 %v10732_v43 }
 0x39a   : > { %8031 = vmatpush3.bf16.msra.mxu1 %v8437_v14  ;;  %v8480_v14 = vld [vmem:[%s10708_s3 + $0x278] sm:$0xff]  }
 0x39b   : > { %8032 = vmatprep.subr.bf16.mxu1 %v10732_v43 }
 0x39e   : > { %8033 = vmatpush3.bf16.msra.mxu1 %v8438_v12  ;;  %v6418_v12 = vpack.c.b16 %v10312_v1, %v10312_v1 }
 0x39f   : > { %8034 = vmatprep.subr.bf16.mxu1 %v10732_v43 }
 0x3a2   : > { %8035 = vmatpush3.bf16.msra.mxu1 %v8439_v9 }
 0x3a3   : > { %8036 = vmatprep.subr.bf16.mxu1 %v10732_v43 }
 0x3a6   : > { %8037 = vmatpush3.bf16.msra.mxu1 %v8440_v63 }
 0x3a7   : > { %8042 = vmatprep.subr.bf16.mxu1 %v10732_v43 }
 0x3a9   : > { %8039 = vmatmul.mubr.bf16.vlgmr.msra.gmra.mrb[140].mxu1 %v5323_v62 }
 0x3aa   : > { %8043 = vmatpush3.bf16.msra.mxu1 %v8441_v7  ;;  %8058 = vmatprep.mubr.msk.bf16.mxu1 %vm8550_vm5, %v10732_v43 }
 0x3ab   : > { %8044 = vmatprep.subr.bf16.mxu1 %v10732_v43 }
 0x3ae   : > { %8045 = vmatpush3.bf16.msra.mxu1 %v8442_v34 }
 0x3af   : > { %8046 = vmatprep.subr.bf16.mxu1 %v10732_v43 }
 0x3b2   : > { %8047 = vmatpush3.bf16.msra.mxu1 %v8443_v28 }
 0x3b3   : > { %8048 = vmatprep.subr.bf16.mxu1 %v10732_v43 }
 0x3b6   : > { %8049 = vmatpush3.bf16.msra.mxu1 %v8444_v21 }
 0x3b7   : > { %8050 = vmatprep.subr.bf16.mxu1 %v10732_v43 }
 0x3ba   : > { %8051 = vmatpush3.bf16.msra.mxu1 %v8445_v61 }
 0x3bb   : > { %8052 = vmatprep.subr.bf16.mxu1 %v10732_v43 }
 0x3be   : > { %8053 = vmatpush3.bf16.msra.mxu1 %v8446_v16 }
 0x3bf   : > { %8054 = vmatprep.subr.bf16.mxu1 %v10732_v43 }
 0x3c2   : > { %8055 = vmatpush3.bf16.msra.mxu1 %v8447_v8 }
 0x3c3   : > { %8056 = vmatprep.subr.bf16.mxu1 %v10732_v43 }
 0x3c6   : > { %8057 = vmatpush3.bf16.msra.mxu1 %v8448_v4 }
 0x3c7   : > { %8062 = vmatprep.subr.bf16.mxu1 %v10732_v43 }
 0x3c9   : > { %8059 = vmatmul.mubr.bf16.vlgmr.msra.gmra.mrb[144].mxu1 %v5542_v37 }
 0x3ca   : > { %8063 = vmatpush3.bf16.msra.mxu1 %v8449_v27  ;;  %8078 = vmatprep.mubr.msk.bf16.mxu1 %vm8550_vm5, %v10732_v43 }
 0x3cb   : > { %8064 = vmatprep.subr.bf16.mxu1 %v10732_v43 }
 0x3ce   : > { %8065 = vmatpush3.bf16.msra.mxu1 %v8450_v19 }
 0x3cf   : > { %8066 = vmatprep.subr.bf16.mxu1 %v10732_v43 }
 0x3d2   : > { %8067 = vmatpush3.bf16.msra.mxu1 %v8451_v52 }
 0x3d3   : > { %8068 = vmatprep.subr.bf16.mxu1 %v10732_v43 }
 0x3d6   : > { %8069 = vmatpush3.bf16.msra.mxu1 %v8452_v13 }
 0x3d7   : > { %8070 = vmatprep.subr.bf16.mxu1 %v10732_v43 }
 0x3da   : > { %8071 = vmatpush3.bf16.msra.mxu1 %v8453_v15 }
 0x3db   : > { %8072 = vmatprep.subr.bf16.mxu1 %v10732_v43 }
 0x3de   : > { %8073 = vmatpush3.bf16.msra.mxu1 %v8454_v0 }
 0x3df   : > { %8074 = vmatprep.subr.bf16.mxu1 %v10732_v43 }
 0x3e2   : > { %8075 = vmatpush3.bf16.msra.mxu1 %v8455_v39 }
 0x3e3   : > { %8076 = vmatprep.subr.bf16.mxu1 %v10732_v43 }
 0x3e6   : > { %8077 = vmatpush3.bf16.msra.mxu1 %v8456_v53 }
 0x3e7   : > { %8082 = vmatprep.subr.bf16.mxu1 %v10732_v43 }
 0x3e9   : > { %8079 = vmatmul.mubr.bf16.vlgmr.msra.gmra.mrb[148].mxu1 %v5761_v30 }
 0x3ea   : > { %8083 = vmatpush3.bf16.msra.mxu1 %v8457_v48  ;;  %8098 = vmatprep.mubr.msk.bf16.mxu1 %vm8550_vm5, %v10732_v43 }
 0x3eb   : > { %8084 = vmatprep.subr.bf16.mxu1 %v10732_v43 }
 0x3ee   : > { %8085 = vmatpush3.bf16.msra.mxu1 %v8458_v11 }
 0x3ef   : > { %8086 = vmatprep.subr.bf16.mxu1 %v10732_v43 }
 0x3f2   : > { %8087 = vmatpush3.bf16.msra.mxu1 %v8459_v26 }
 0x3f3   : > { %8088 = vmatprep.subr.bf16.mxu1 %v10732_v43 }
 0x3f6   : > { %8089 = vmatpush3.bf16.msra.mxu1 %v8460_v20 }
 0x3f7   : > { %8090 = vmatprep.subr.bf16.mxu1 %v10732_v43 }
 0x3fa   : > { %8091 = vmatpush3.bf16.msra.mxu1 %v8461_v29 }
 0x3fb   : > { %8092 = vmatprep.subr.bf16.mxu1 %v10732_v43 }
 0x3fc   : > { %v4638_v5 = vpop.f32.mrb[124].mxu1 }
 0x3fd   : > { %v7960_v25 = vpop.f32.mrb[125].mxu1 }
 0x3fe   : > { %8093 = vmatpush3.bf16.msra.mxu1 %v8462_v17  ;;  %v4641_v46 = vpop.f32.mrb[126].mxu1 }
 0x3ff   : > { %v7961_v6 = vpop.f32.mrb[127].mxu1  ;;  %8094 = vmatprep.subr.bf16.mxu1 %v10732_v43  ;;  %v7229_v46 = vld [vmem:[%s10709_s4] ss:$0 sm:$0xff] }
 0x402   : > { %8095 = vmatpush3.bf16.msra.mxu1 %v8463_v40 }
 0x403   : > { %8096 = vmatprep.subr.bf16.mxu1 %v10732_v43 }
 0x406   : > { %8097 = vmatpush3.bf16.msra.mxu1 %v8464_v22 }
 0x407   : > { %8102 = vmatprep.subr.bf16.mxu1 %v10732_v43 }
 0x409   : > { %8099 = vmatmul.mubr.bf16.vlgmr.msra.gmra.mrb[152].mxu1 %v5980_v50 }
 0x40a   : > { %8103 = vmatpush3.bf16.msra.mxu1 %v8465_v54  ;;  %8118 = vmatprep.mubr.msk.bf16.mxu1 %vm8550_vm5, %v10732_v43 }
 0x40b   : > { %8104 = vmatprep.subr.bf16.mxu1 %v10732_v43 }
 0x40e   : > { %8105 = vmatpush3.bf16.msra.mxu1 %v8466_v3 }
 0x40f   : > { %8106 = vmatprep.subr.bf16.mxu1 %v10732_v43 }
 0x412   : > { %8107 = vmatpush3.bf16.msra.mxu1 %v8467_v56 }
 0x413   : > { %8108 = vmatprep.subr.bf16.mxu1 %v10732_v43 }
 0x416   : > { %8109 = vmatpush3.bf16.msra.mxu1 %v8468_v32 }
 0x417   : > { %8110 = vmatprep.subr.bf16.mxu1 %v10732_v43 }
 0x41a   : > { %8111 = vmatpush3.bf16.msra.mxu1 %v8469_v44 }
 0x41b   : > { %8112 = vmatprep.subr.bf16.mxu1 %v10732_v43 }
 0x41c   : > { %v4751_v57 = vpop.f32.mrb[128].mxu1 }
 0x41d   : > { %v4752_v24 = vadd.f32 %v4751_v57, %v4638_v5  ;;  %v7980_v49 = vpop.f32.mrb[129].mxu1 }
 0x41e   : > { %v4754_v60 = vpop.f32.mrb[130].mxu1  ;;  %8113 = vmatpush3.bf16.msra.mxu1 %v8470_v35 }
 0x41f   : > { %v7981_v45 = vpop.f32.mrb[131].mxu1  ;;  %8114 = vmatprep.subr.bf16.mxu1 %v10732_v43 }
 0x422   : > { %8115 = vmatpush3.bf16.msra.mxu1 %v8471_v51 }
 0x423   : > { %8116 = vmatprep.subr.bf16.mxu1 %v10732_v43 }
 0x426   : > { %8117 = vmatpush3.bf16.msra.mxu1 %v8472_v41 }
 0x427   : > { %8122 = vmatprep.subr.bf16.mxu1 %v10732_v43 }
 0x429   : > { %8119 = vmatmul.mubr.bf16.vlgmr.msra.gmra.mrb[156].mxu1 %v6199_v2 }
 0x42a   : > { %8123 = vmatpush3.bf16.msra.mxu1 %v8473_v38  ;;  %8138 = vmatprep.mubr.msk.bf16.mxu1 %vm8550_vm5, %v10732_v43 }
 0x42b   : > { %8124 = vmatprep.subr.bf16.mxu1 %v10732_v43 }
 0x42e   : > { %8125 = vmatpush3.bf16.msra.mxu1 %v8474_v55 }
 0x42f   : > { %8126 = vmatprep.subr.bf16.mxu1 %v10732_v43 }
 0x432   : > { %8127 = vmatpush3.bf16.msra.mxu1 %v8475_v10 }
 0x433   : > { %8128 = vmatprep.subr.bf16.mxu1 %v10732_v43 }
 0x436   : > { %8129 = vmatpush3.bf16.msra.mxu1 %v8476_v31 }
 0x437   : > { %8130 = vmatprep.subr.bf16.mxu1 %v10732_v43 }
 0x43a   : > { %8131 = vmatpush3.bf16.msra.mxu1 %v8477_v42 }
 0x43b   : > { %8132 = vmatprep.subr.bf16.mxu1 %v10732_v43 }
 0x43c   : > { %v4969_v36 = vpop.f32.mrb[132].mxu1 }
 0x43d   : > { %v4975_v47 = vadd.f32 %v4969_v36, %v4752_v24  ;;  %v8000_v58 = vpop.f32.mrb[133].mxu1 }
 0x43e   : > { %v4972_v18 = vpop.f32.mrb[134].mxu1  ;;  %8133 = vmatpush3.bf16.msra.mxu1 %v8478_v59 }
 0x43f   : > { %v8001_v33 = vpop.f32.mrb[135].mxu1  ;;  %8134 = vmatprep.subr.bf16.mxu1 %v10732_v43 }
 0x442   : > { %8135 = vmatpush3.bf16.msra.mxu1 %v8479_v23 }
 0x443   : > { %8136 = vmatprep.subr.bf16.mxu1 %v10732_v43 }
 0x446   : > { %8137 = vmatpush3.bf16.msra.mxu1 %v8480_v14 }
 0x449   : > { %8139 = vmatmul.mubr.bf16.vlgmr.msra.gmra.mrb[160].mxu1 %v6418_v12 }
 0x45c   : > { %v5188_v9 = vpop.f32.mrb[136].mxu1 }
 0x45d   : > { %v5194_v63 = vadd.f32 %v5188_v9, %v4975_v47  ;;  %v8020_v7 = vpop.f32.mrb[137].mxu1 }
 0x45e   : > { %v5191_v62 = vpop.f32.mrb[138].mxu1 }
 0x45f   : > { %v8021_v34 = vpop.f32.mrb[139].mxu1 }
 0x47c   : > { %v5407_v28 = vpop.f32.mrb[140].mxu1 }
 0x47d   : > { %v5413_v21 = vadd.f32 %v5407_v28, %v5194_v63  ;;  %v8040_v61 = vpop.f32.mrb[141].mxu1 }
 0x47e   : > { %v5410_v16 = vpop.f32.mrb[142].mxu1 }
 0x47f   : > { %v8041_v8 = vpop.f32.mrb[143].mxu1 }
 0x49c   : > { %v5626_v4 = vpop.f32.mrb[144].mxu1 }
 0x49d   : > { %v5632_v27 = vadd.f32 %v5626_v4, %v5413_v21  ;;  %v8060_v37 = vpop.f32.mrb[145].mxu1 }
 0x49e   : > { %v5629_v19 = vpop.f32.mrb[146].mxu1 }
 0x49f   : > { %v8061_v43 = vpop.f32.mrb[147].mxu1 }
 0x4bc   : > { %v5845_v52 = vpop.f32.mrb[148].mxu1 }
 0x4bd   : > { %v5851_v13 = vadd.f32 %v5845_v52, %v5632_v27  ;;  %v8080_v1 = vpop.f32.mrb[149].mxu1 }
 0x4be   : > { %v5848_v15 = vpop.f32.mrb[150].mxu1 }
 0x4bf   : > { %v8081_v0 = vpop.f32.mrb[151].mxu1 }
 0x4dc   : > { %v6064_v39 = vpop.f32.mrb[152].mxu1 }
 0x4dd   : > { %v6070_v53 = vadd.f32 %v6064_v39, %v5851_v13  ;;  %v8100_v48 = vpop.f32.mrb[153].mxu1 }
 0x4de   : > { %v6067_v30 = vpop.f32.mrb[154].mxu1 }
 0x4df   : > { %v8101_v11 = vpop.f32.mrb[155].mxu1 }
 0x4fc   : > { %v6283_v26 = vpop.f32.mrb[156].mxu1 }
 0x4fd   : > { %v6289_v20 = vadd.f32 %v6283_v26, %v6070_v53  ;;  %v8120_v29 = vpop.f32.mrb[157].mxu1 }
 0x4fe   : > { %v6286_v17 = vpop.f32.mrb[158].mxu1 }
 0x4ff   : > { %v8121_v5 = vpop.f32.mrb[159].mxu1 }
 0x51c   : > { %v6502_v25 = vpop.f32.mrb[160].mxu1 }
 0x51d   : > { %v6508_v40 = vadd.f32 %v6502_v25, %v6289_v20  ;;  %v8140_v6 = vpop.f32.mrb[161].mxu1 }
 0x51e   : > { %v6505_v22 = vpop.f32.mrb[162].mxu1 }
 0x51f   : > { %v6516_v54 = vadd.f32 %v7229_v46, %v6508_v40  ;;  %v8141_v50 = vpop.f32.mrb[163].mxu1 }
 0x521   : > { %v6517_v3 = vmax.f32 %v6516_v54, 0.0 }
 0x523   : > { %6518 = vst [vmem:[%s218_s6] sm:$0xff] %v6517_v3 }
 0x524   : > { %8498 = shalt.err (!%p8495_p3)
}
 0x525   : > { %s8499_s14 = scalar_lea.hbm %s10663_s9, 128  ;;  %s8503_s23 = scalar_lea.hbm %s10710_s5, 384 }
 0x526   : > { %p8500_p4 = scmp.ne.s32.totalorder %s10663_s9, %s8499_s14  ;;  %p8504_p9 = scmp.lt.u32.totalorder %s10663_s9, %s10710_s5 }
 0x527   : > { %p8505_p10 = scmp.lt.u32.totalorder %s8503_s23, %s8499_s14  ;;  %p8507_p12 = scmp.lt.u32.totalorder %s8499_s14, %s10663_s9 }
 0x528   : > { %p8501_p7 = pnand %p8500_p4, %p8620_p5 }
 0x529   : > { %p8506_p11 = por %p8505_p10, %p8504_p9 }
 0x52a   : > { %p8502_p8 = pneg %p8501_p7 }
 0x52b   : > { %p8508_p13 = por %p8507_p12, %p8506_p11 }
 0x52d   : > { %p8509_p0 = pnand %p8508_p13, %p8502_p8 }
 0x52f   : > { %8512 = shalt.err (!%p8509_p0)
}
 0x530   : > { %8154 = dma.vmem_to_hbm [thread:$0]  (%p8620_p5), %s10665_s17, 128, %s10663_s9, %s6520_s10  }
 0x531 PF: > { %p8160_p1 = scmp.ge.s32.totalorder %s8547_s21, 2  ;;  %s6545_s30 = sand.u32 1, %s8535_s18  }
 0x532   : > { %s6546_s6 = scalar_lea.sflag [#allocation3], %s6545_s30 }
 0x533   : > { %p8157_p2 = pnand %p8160_p1, %p8624_p6 }
 0x535   : > { %8530 = dma.done.wait (!%p8157_p2), %s6546_s6, 128  }
 0x536   : > { %8532 = vsyncadd (!%p8157_p2), %s6546_s6, 4294967168  ;;  %p15_p3 = scmp.ge.s32.totalorder %s8607_s24, 5   ;;  %s10847_s18 = smov %s8539_s19 }
 0x537   : > { %s10848_s19 = smov %s8543_s20  ;;  %s10849_s20 = smov %s8618_s27 }
 0x538   : > { %s10850_s21 = smov %s8607_s24  ;;  %17 = sbr.rel (!%p15_p3) target bundleno = 3 (0x3), region = 84 }
 0x53f   :  { %6551 = vsyncpa [#allocation3], 1 }
 0x540   :  { %6553 = vsyncpa [#allocation3 + $0x1], 1 }

</bundles_post_ra>
